<compile_context>
chip_gen: v7x
topology: tpu7x:2x2x1
jax: 0.10.0
libtpu: 0.0.40
codegen_flags: <defaults>
</compile_context>

<pallas_src>
import jax
import jax.numpy as jnp
from jax.experimental import pallas as pl
from jax.experimental.pallas import tpu as pltpu

# TCN architecture constants (fixed by the PyTorch spec)
_K1, _P1 = 10, 10     # TCN.conv     : Conv1d(kernel=10, stride=1, padding=10)
_K2, _P2 = 20, 4      # TCN.conv_out : Conv1d(kernel=20, stride=1, padding=4)


def _sigmoid(v):
    # explicit formula (exp goes to the EUP slot); keep math in f32
    return 1.0 / (1.0 + jnp.exp(-v))


def _zero_pad_rows(ref, pad, interior_len):
    """Zero only the `pad` leading/trailing rows of a padded scratch buffer.

    The interior rows are fully overwritten every grid step, so re-zeroing
    them would be wasted VMEM store bandwidth.
    """
    c = ref.shape[1]
    zeros = jnp.zeros((pad, c), jnp.float32)
    ref[0:pad, :] = zeros
    ref[pad + interior_len:pad + interior_len + pad, :] = zeros


def _conv1d_taps(pad_ref, w_ref, b_ref):
    """Cross-correlation over a zero-padded (L_pad, C_in) VMEM scratch ref.

    pad_ref : (L_pad, C_in)    VMEM scratch, already zero-padded along L
    w_ref   : (K, C_in, C_out) VMEM weights (pre-transposed in the wrapper)
    b_ref   : (1, C_out)       VMEM bias
    returns : (L_pad - K + 1, C_out) float32
    """
    K, _, c_out = w_ref.shape
    l_out = pad_ref.shape[0] - K + 1
    # Fold the bias into the accumulator init (saves one VPU add per conv).
    acc = jnp.broadcast_to(b_ref[...], (l_out, c_out)).astype(jnp.float32)
    for k in range(K):                       # static unroll over the K taps
        acc = acc + jnp.dot(pad_ref[k:k + l_out, :], w_ref[k],
                            preferred_element_type=jnp.float32)
    return acc


def _tcn_module_kernel(x_ref, w1_ref, b1_ref, w2_ref, b2_ref,
                       w3_ref, b3_ref, w4_ref, b4_ref, o_ref,
                       pA, pB, pC, pD):
    """Whole TCNModule forward for one batch element, fully in VMEM.

    x_ref : (1, L, n)        input tile (channel-last)
    w*_ref: (K, C_in, C_out) conv weights, b*_ref: (1, C_out) biases
    o_ref : (1, L, n)        output tile
    pA..pD: zero-padded VMEM scratch buffers for the four convolutions
    """
    L = x_ref.shape[1]
    L1 = L + 2 * _P1 - _K1 + 1                            # length after TCN.conv

    # ---- TCN(n, 2n): conv(k=10,p=10) -> sigmoid -> conv_out(k=20,p=4) ----
    _zero_pad_rows(pA, _P1, L)
    pA[_P1:_P1 + L, :] = x_ref[0].astype(jnp.float32)
    h = _sigmoid(_conv1d_taps(pA, w1_ref, b1_ref))        # (L+11, 10n)

    _zero_pad_rows(pB, _P2, L1)
    pB[_P2:_P2 + L1, :] = h
    h = _conv1d_taps(pB, w2_ref, b2_ref)                  # (L, 2n)

    # ---- Sequential Sigmoid between the two TCN blocks ----
    h = _sigmoid(h)

    # ---- TCN(2n, n): conv(k=10,p=10) -> sigmoid -> conv_out(k=20,p=4) ----
    _zero_pad_rows(pC, _P1, L)
    pC[_P1:_P1 + L, :] = h
    h = _sigmoid(_conv1d_taps(pC, w3_ref, b3_ref))        # (L+11, 5n)

    _zero_pad_rows(pD, _P2, L1)
    pD[_P2:_P2 + L1, :] = h
    h = _conv1d_taps(pD, w4_ref, b4_ref)                  # (L, n)

    # TODO(synk): nn.Dropout(0.3) is identity in eval mode; training-mode
    # stochastic dropout (pltpu.prng_seed + prng_random_bits mask) not applied.
    o_ref[0] = h.astype(o_ref.dtype)


def tcn_module_forward(x, params):
    """x: (B, n_embd, L) float32, PyTorch Conv1d layout.  Returns (B, n_embd, L)."""
    B, n, L = x.shape

    # --- glue (plain JAX): channel-last activations, (K, C_in, C_out) weights ---
    xt = jnp.transpose(x, (0, 2, 1)).astype(jnp.float32)      # (B, L, n)
    w1 = jnp.transpose(params["w1"], (2, 1, 0)).astype(jnp.float32)  # (10,  n,  10n)
    w2 = jnp.transpose(params["w2"], (2, 1, 0)).astype(jnp.float32)  # (20, 10n,  2n)
    w3 = jnp.transpose(params["w3"], (2, 1, 0)).astype(jnp.float32)  # (10, 2n,   5n)
    w4 = jnp.transpose(params["w4"], (2, 1, 0)).astype(jnp.float32)  # (20, 5n,    n)
    b1 = params["b1"].reshape(1, -1).astype(jnp.float32)
    b2 = params["b2"].reshape(1, -1).astype(jnp.float32)
    b3 = params["b3"].reshape(1, -1).astype(jnp.float32)
    b4 = params["b4"].reshape(1, -1).astype(jnp.float32)

    L1 = L + 2 * _P1 - _K1 + 1          # length after TCN.conv      (= L + 11)
    L2 = L1 + 2 * _P2 - _K2 + 1         # length after TCN.conv_out  (= L)
    assert L2 == L, "TCN kernel/padding combination must preserve length"

    def full(shape):
        ndim = len(shape)
        return pl.BlockSpec(shape, lambda b: (0,) * ndim)

    out = pl.pallas_call(
        _tcn_module_kernel,
        out_shape=jax.ShapeDtypeStruct((B, L, n), jnp.float32),
        grid_spec=pltpu.PrefetchScalarGridSpec(
            num_scalar_prefetch=0,
            grid=(B,),
            in_specs=[
                pl.BlockSpec((1, L, n), lambda b: (b, 0, 0)),
                full(w1.shape), full(b1.shape),
                full(w2.shape), full(b2.shape),
                full(w3.shape), full(b3.shape),
                full(w4.shape), full(b4.shape),
            ],
            out_specs=pl.BlockSpec((1, L, n), lambda b: (b, 0, 0)),
            scratch_shapes=[
                pltpu.VMEM((L + 2 * _P1, n), jnp.float32),        # padded in to conv1
                pltpu.VMEM((L1 + 2 * _P2, 10 * n), jnp.float32),  # padded in to conv_out1
                pltpu.VMEM((L + 2 * _P1, 2 * n), jnp.float32),    # padded in to conv2
                pltpu.VMEM((L1 + 2 * _P2, 5 * n), jnp.float32),   # padded in to conv_out2
            ],
        ),
        compiler_params=pltpu.CompilerParams(
            dimension_semantics=("parallel",)),   # B axis shards across megacore TCs
    )(xt, w1, b1, w2, b2, w3, b3, w4, b4)

    return jnp.transpose(out, (0, 2, 1))          # back to (B, n_embd, L)


# ----------------------- pure-JAX reference (eval mode) -----------------------
def _conv1d_ref(x, w, b, padding):
    out = jax.lax.conv_general_dilated(
        x, w, window_strides=(1,), padding=[(padding, padding)],
        dimension_numbers=("NCH", "OIH", "NCH"),
        precision=jax.lax.Precision.HIGHEST)
    return out + b[None, :, None]


def _reference(x, p):
    h = _conv1d_ref(x, p["w1"], p["b1"], _P1)     # TCN1.conv
    h = jax.nn.sigmoid(h)
    h = _conv1d_ref(h, p["w2"], p["b2"], _P2)     # TCN1.conv_out
    h = jax.nn.sigmoid(h)                         # Sequential Sigmoid
    h = _conv1d_ref(h, p["w3"], p["b3"], _P1)     # TCN2.conv
    h = jax.nn.sigmoid(h)
    h = _conv1d_ref(h, p["w4"], p["b4"], _P2)     # TCN2.conv_out
    return h                                      # Dropout(0.3): identity in eval


if __name__ == "__main__":
    B, n_embd, L = 2, 8, 16                       # small shapes for the module

    key = jax.random.PRNGKey(0)
    ks = jax.random.split(key, 9)

    def normal(k, shape, std=0.02):
        return std * jax.random.normal(k, shape, dtype=jnp.float32)

    x = jax.random.normal(ks[0], (B, n_embd, L), dtype=jnp.float32)

    # Conv1d weights in PyTorch layout (C_out, C_in, K); init_2-style scale.
    params = {
        "w1": normal(ks[1], (10 * n_embd, n_embd, _K1)),
        "b1": normal(ks[2], (10 * n_embd,)),
        "w2": normal(ks[3], (2 * n_embd, 10 * n_embd, _K2)),
        "b2": normal(ks[4], (2 * n_embd,)),
        "w3": normal(ks[5], (5 * n_embd, 2 * n_embd, _K1)),
        "b3": normal(ks[6], (5 * n_embd,)),
        "w4": normal(ks[7], (n_embd, 5 * n_embd, _K2)),
        "b4": normal(ks[8], (n_embd,)),
    }

    out = jax.jit(tcn_module_forward)(x, params)
    out = jax.block_until_ready(out)

    ref = _reference(x, params)
    assert out.shape == (B, n_embd, L), out.shape
    assert jnp.allclose(out, ref, atol=1e-4, rtol=1e-4), \
        float(jnp.max(jnp.abs(out - ref)))

    print("KERNEL_OK")
</pallas_src>

<mosaic_0001>
module attributes {stable_mosaic.version = 11 : i64} {
  func.func @_tcn_module_kernel(%arg0: i32, %arg1: memref<1x16x8xf32, #tpu.memory_space<vmem>>, %arg2: memref<10x8x80xf32, #tpu.memory_space<vmem>>, %arg3: memref<1x80xf32, #tpu.memory_space<vmem>>, %arg4: memref<20x80x16xf32, #tpu.memory_space<vmem>>, %arg5: memref<1x16xf32, #tpu.memory_space<vmem>>, %arg6: memref<10x16x40xf32, #tpu.memory_space<vmem>>, %arg7: memref<1x40xf32, #tpu.memory_space<vmem>>, %arg8: memref<20x40x8xf32, #tpu.memory_space<vmem>>, %arg9: memref<1x8xf32, #tpu.memory_space<vmem>>, %arg10: memref<1x16x8xf32, #tpu.memory_space<vmem>>, %arg11: memref<36x8xf32, #tpu.memory_space<vmem>>, %arg12: memref<35x80xf32, #tpu.memory_space<vmem>>, %arg13: memref<36x16xf32, #tpu.memory_space<vmem>>, %arg14: memref<35x40xf32, #tpu.memory_space<vmem>>) attributes {dimension_semantics = [#tpu.dimension_semantics<parallel>], iteration_bounds = array<i64: 2>, scalar_prefetch = 0 : i64, scratch_operands = 4 : i64, tpu.core_type = #tpu.core_type<tc>, window_params = [{transform_indices = @transform_0, window_bounds = array<i64: 1, 16, 8>}, {pipeline_mode = #tpu.pipeline_mode<synchronous>, transform_indices = @transform_1, window_bounds = array<i64: 10, 8, 80>}, {pipeline_mode = #tpu.pipeline_mode<synchronous>, transform_indices = @transform_2, window_bounds = array<i64: 1, 80>}, {pipeline_mode = #tpu.pipeline_mode<synchronous>, transform_indices = @transform_3, window_bounds = array<i64: 20, 80, 16>}, {pipeline_mode = #tpu.pipeline_mode<synchronous>, transform_indices = @transform_4, window_bounds = array<i64: 1, 16>}, {pipeline_mode = #tpu.pipeline_mode<synchronous>, transform_indices = @transform_5, window_bounds = array<i64: 10, 16, 40>}, {pipeline_mode = #tpu.pipeline_mode<synchronous>, transform_indices = @transform_6, window_bounds = array<i64: 1, 40>}, {pipeline_mode = #tpu.pipeline_mode<synchronous>, transform_indices = @transform_7, window_bounds = array<i64: 20, 40, 8>}, {pipeline_mode = #tpu.pipeline_mode<synchronous>, transform_indices = @transform_8, window_bounds = array<i64: 1, 8>}, {transform_indices = @transform_9, window_bounds = array<i64: 1, 16, 8>}]} {
    %cst = arith.constant 0.000000e+00 : f32
    %0 = vector.broadcast %cst : f32 to vector<10x8xf32>
    %c0 = arith.constant 0 : index
    %c0_0 = arith.constant 0 : index
    %1 = vector.load %arg11[%c0, %c0_0] : memref<36x8xf32, #tpu.memory_space<vmem>>, vector<10x8xf32>
    tpu.vector_store %arg11[%c0, %c0_0], %0 {strides = array<i32>} : memref<36x8xf32, #tpu.memory_space<vmem>>, vector<10x8xf32>,
    %c26 = arith.constant 26 : index
    %c0_1 = arith.constant 0 : index
    %2 = vector.load %arg11[%c26, %c0_1] : memref<36x8xf32, #tpu.memory_space<vmem>>, vector<10x8xf32>
    tpu.vector_store %arg11[%c26, %c0_1], %0 {strides = array<i32>} : memref<36x8xf32, #tpu.memory_space<vmem>>, vector<10x8xf32>,
    %c0_2 = arith.constant 0 : index
    %c0_3 = arith.constant 0 : index
    %c0_4 = arith.constant 0 : index
    %3 = vector.load %arg1[%c0_2, %c0_3, %c0_4] : memref<1x16x8xf32, #tpu.memory_space<vmem>>, vector<1x16x8xf32>
    %4 = vector.shape_cast %3 : vector<1x16x8xf32> to vector<16x8xf32>
    %c10 = arith.constant 10 : index
    %c0_5 = arith.constant 0 : index
    %5 = vector.load %arg11[%c10, %c0_5] : memref<36x8xf32, #tpu.memory_space<vmem>>, vector<16x8xf32>
    tpu.vector_store %arg11[%c10, %c0_5], %4 {strides = array<i32>} : memref<36x8xf32, #tpu.memory_space<vmem>>, vector<16x8xf32>,
    %c0_6 = arith.constant 0 : index
    %c0_7 = arith.constant 0 : index
    %6 = vector.load %arg3[%c0_6, %c0_7] : memref<1x80xf32, #tpu.memory_space<vmem>>, vector<1x80xf32>
    %7 = vector.shape_cast %6 : vector<1x80xf32> to vector<1x80xf32>
    %8 = vector.broadcast %7 : vector<1x80xf32> to vector<27x80xf32>
    %c0_8 = arith.constant 0 : index
    %c0_9 = arith.constant 0 : index
    %9 = vector.load %arg11[%c0_8, %c0_9] : memref<36x8xf32, #tpu.memory_space<vmem>>, vector<27x8xf32>
    %c0_10 = arith.constant 0 : index
    %c0_11 = arith.constant 0 : index
    %c0_12 = arith.constant 0 : index
    %10 = vector.load %arg2[%c0_10, %c0_11, %c0_12] : memref<10x8x80xf32, #tpu.memory_space<vmem>>, vector<1x8x80xf32>
    %11 = vector.shape_cast %10 : vector<1x8x80xf32> to vector<8x80xf32>
    %cst_13 = arith.constant dense<0.000000e+00> : vector<27x80xf32>
    %12 = tpu.matmul %9, %11, %cst_13 {dimension_numbers = #tpu.dot_dimension_numbers<[1], [0], [0], [1], [0, 0, 1, 1], [], []>} : vector<27x8xf32>, vector<8x80xf32>, vector<27x80xf32> -> vector<27x80xf32>
    %13 = arith.addf %8, %12 : vector<27x80xf32>
    %c1 = arith.constant 1 : index
    %c0_14 = arith.constant 0 : index
    %14 = vector.load %arg11[%c1, %c0_14] : memref<36x8xf32, #tpu.memory_space<vmem>>, vector<27x8xf32>
    %c1_15 = arith.constant 1 : index
    %c0_16 = arith.constant 0 : index
    %c0_17 = arith.constant 0 : index
    %15 = vector.load %arg2[%c1_15, %c0_16, %c0_17] : memref<10x8x80xf32, #tpu.memory_space<vmem>>, vector<1x8x80xf32>
    %16 = vector.shape_cast %15 : vector<1x8x80xf32> to vector<8x80xf32>
    %cst_18 = arith.constant dense<0.000000e+00> : vector<27x80xf32>
    %17 = tpu.matmul %14, %16, %cst_18 {dimension_numbers = #tpu.dot_dimension_numbers<[1], [0], [0], [1], [0, 0, 1, 1], [], []>} : vector<27x8xf32>, vector<8x80xf32>, vector<27x80xf32> -> vector<27x80xf32>
    %18 = arith.addf %13, %17 : vector<27x80xf32>
    %c2 = arith.constant 2 : index
    %c0_19 = arith.constant 0 : index
    %19 = vector.load %arg11[%c2, %c0_19] : memref<36x8xf32, #tpu.memory_space<vmem>>, vector<27x8xf32>
    %c2_20 = arith.constant 2 : index
    %c0_21 = arith.constant 0 : index
    %c0_22 = arith.constant 0 : index
    %20 = vector.load %arg2[%c2_20, %c0_21, %c0_22] : memref<10x8x80xf32, #tpu.memory_space<vmem>>, vector<1x8x80xf32>
    %21 = vector.shape_cast %20 : vector<1x8x80xf32> to vector<8x80xf32>
    %cst_23 = arith.constant dense<0.000000e+00> : vector<27x80xf32>
    %22 = tpu.matmul %19, %21, %cst_23 {dimension_numbers = #tpu.dot_dimension_numbers<[1], [0], [0], [1], [0, 0, 1, 1], [], []>} : vector<27x8xf32>, vector<8x80xf32>, vector<27x80xf32> -> vector<27x80xf32>
    %23 = arith.addf %18, %22 : vector<27x80xf32>
    %c3 = arith.constant 3 : index
    %c0_24 = arith.constant 0 : index
    %24 = vector.load %arg11[%c3, %c0_24] : memref<36x8xf32, #tpu.memory_space<vmem>>, vector<27x8xf32>
    %c3_25 = arith.constant 3 : index
    %c0_26 = arith.constant 0 : index
    %c0_27 = arith.constant 0 : index
    %25 = vector.load %arg2[%c3_25, %c0_26, %c0_27] : memref<10x8x80xf32, #tpu.memory_space<vmem>>, vector<1x8x80xf32>
    %26 = vector.shape_cast %25 : vector<1x8x80xf32> to vector<8x80xf32>
    %cst_28 = arith.constant dense<0.000000e+00> : vector<27x80xf32>
    %27 = tpu.matmul %24, %26, %cst_28 {dimension_numbers = #tpu.dot_dimension_numbers<[1], [0], [0], [1], [0, 0, 1, 1], [], []>} : vector<27x8xf32>, vector<8x80xf32>, vector<27x80xf32> -> vector<27x80xf32>
    %28 = arith.addf %23, %27 : vector<27x80xf32>
    %c4 = arith.constant 4 : index
    %c0_29 = arith.constant 0 : index
    %29 = vector.load %arg11[%c4, %c0_29] : memref<36x8xf32, #tpu.memory_space<vmem>>, vector<27x8xf32>
    %c4_30 = arith.constant 4 : index
    %c0_31 = arith.constant 0 : index
    %c0_32 = arith.constant 0 : index
    %30 = vector.load %arg2[%c4_30, %c0_31, %c0_32] : memref<10x8x80xf32, #tpu.memory_space<vmem>>, vector<1x8x80xf32>
    %31 = vector.shape_cast %30 : vector<1x8x80xf32> to vector<8x80xf32>
    %cst_33 = arith.constant dense<0.000000e+00> : vector<27x80xf32>
    %32 = tpu.matmul %29, %31, %cst_33 {dimension_numbers = #tpu.dot_dimension_numbers<[1], [0], [0], [1], [0, 0, 1, 1], [], []>} : vector<27x8xf32>, vector<8x80xf32>, vector<27x80xf32> -> vector<27x80xf32>
    %33 = arith.addf %28, %32 : vector<27x80xf32>
    %c5 = arith.constant 5 : index
    %c0_34 = arith.constant 0 : index
    %34 = vector.load %arg11[%c5, %c0_34] : memref<36x8xf32, #tpu.memory_space<vmem>>, vector<27x8xf32>
    %c5_35 = arith.constant 5 : index
    %c0_36 = arith.constant 0 : index
    %c0_37 = arith.constant 0 : index
    %35 = vector.load %arg2[%c5_35, %c0_36, %c0_37] : memref<10x8x80xf32, #tpu.memory_space<vmem>>, vector<1x8x80xf32>
    %36 = vector.shape_cast %35 : vector<1x8x80xf32> to vector<8x80xf32>
    %cst_38 = arith.constant dense<0.000000e+00> : vector<27x80xf32>
    %37 = tpu.matmul %34, %36, %cst_38 {dimension_numbers = #tpu.dot_dimension_numbers<[1], [0], [0], [1], [0, 0, 1, 1], [], []>} : vector<27x8xf32>, vector<8x80xf32>, vector<27x80xf32> -> vector<27x80xf32>
    %38 = arith.addf %33, %37 : vector<27x80xf32>
    %c6 = arith.constant 6 : index
    %c0_39 = arith.constant 0 : index
    %39 = vector.load %arg11[%c6, %c0_39] : memref<36x8xf32, #tpu.memory_space<vmem>>, vector<27x8xf32>
    %c6_40 = arith.constant 6 : index
    %c0_41 = arith.constant 0 : index
    %c0_42 = arith.constant 0 : index
    %40 = vector.load %arg2[%c6_40, %c0_41, %c0_42] : memref<10x8x80xf32, #tpu.memory_space<vmem>>, vector<1x8x80xf32>
    %41 = vector.shape_cast %40 : vector<1x8x80xf32> to vector<8x80xf32>
    %cst_43 = arith.constant dense<0.000000e+00> : vector<27x80xf32>
    %42 = tpu.matmul %39, %41, %cst_43 {dimension_numbers = #tpu.dot_dimension_numbers<[1], [0], [0], [1], [0, 0, 1, 1], [], []>} : vector<27x8xf32>, vector<8x80xf32>, vector<27x80xf32> -> vector<27x80xf32>
    %43 = arith.addf %38, %42 : vector<27x80xf32>
    %c7 = arith.constant 7 : index
    %c0_44 = arith.constant 0 : index
    %44 = vector.load %arg11[%c7, %c0_44] : memref<36x8xf32, #tpu.memory_space<vmem>>, vector<27x8xf32>
    %c7_45 = arith.constant 7 : index
    %c0_46 = arith.constant 0 : index
    %c0_47 = arith.constant 0 : index
    %45 = vector.load %arg2[%c7_45, %c0_46, %c0_47] : memref<10x8x80xf32, #tpu.memory_space<vmem>>, vector<1x8x80xf32>
    %46 = vector.shape_cast %45 : vector<1x8x80xf32> to vector<8x80xf32>
    %cst_48 = arith.constant dense<0.000000e+00> : vector<27x80xf32>
    %47 = tpu.matmul %44, %46, %cst_48 {dimension_numbers = #tpu.dot_dimension_numbers<[1], [0], [0], [1], [0, 0, 1, 1], [], []>} : vector<27x8xf32>, vector<8x80xf32>, vector<27x80xf32> -> vector<27x80xf32>
    %48 = arith.addf %43, %47 : vector<27x80xf32>
    %c8 = arith.constant 8 : index
    %c0_49 = arith.constant 0 : index
    %49 = vector.load %arg11[%c8, %c0_49] : memref<36x8xf32, #tpu.memory_space<vmem>>, vector<27x8xf32>
    %c8_50 = arith.constant 8 : index
    %c0_51 = arith.constant 0 : index
    %c0_52 = arith.constant 0 : index
    %50 = vector.load %arg2[%c8_50, %c0_51, %c0_52] : memref<10x8x80xf32, #tpu.memory_space<vmem>>, vector<1x8x80xf32>
    %51 = vector.shape_cast %50 : vector<1x8x80xf32> to vector<8x80xf32>
    %cst_53 = arith.constant dense<0.000000e+00> : vector<27x80xf32>
    %52 = tpu.matmul %49, %51, %cst_53 {dimension_numbers = #tpu.dot_dimension_numbers<[1], [0], [0], [1], [0, 0, 1, 1], [], []>} : vector<27x8xf32>, vector<8x80xf32>, vector<27x80xf32> -> vector<27x80xf32>
    %53 = arith.addf %48, %52 : vector<27x80xf32>
    %c9 = arith.constant 9 : index
    %c0_54 = arith.constant 0 : index
    %54 = vector.load %arg11[%c9, %c0_54] : memref<36x8xf32, #tpu.memory_space<vmem>>, vector<27x8xf32>
    %c9_55 = arith.constant 9 : index
    %c0_56 = arith.constant 0 : index
    %c0_57 = arith.constant 0 : index
    %55 = vector.load %arg2[%c9_55, %c0_56, %c0_57] : memref<10x8x80xf32, #tpu.memory_space<vmem>>, vector<1x8x80xf32>
    %56 = vector.shape_cast %55 : vector<1x8x80xf32> to vector<8x80xf32>
    %cst_58 = arith.constant dense<0.000000e+00> : vector<27x80xf32>
    %57 = tpu.matmul %54, %56, %cst_58 {dimension_numbers = #tpu.dot_dimension_numbers<[1], [0], [0], [1], [0, 0, 1, 1], [], []>} : vector<27x8xf32>, vector<8x80xf32>, vector<27x80xf32> -> vector<27x80xf32>
    %58 = arith.addf %53, %57 : vector<27x80xf32>
    %cst_59 = arith.constant 0.000000e+00 : f32
    %59 = vector.broadcast %cst_59 : f32 to vector<27x80xf32>
    %60 = arith.subf %59, %58 : vector<27x80xf32>
    %61 = math.exp %60 : vector<27x80xf32>
    %cst_60 = arith.constant 1.000000e+00 : f32
    %62 = vector.broadcast %cst_60 : f32 to vector<27x80xf32>
    %63 = arith.addf %62, %61 : vector<27x80xf32>
    %cst_61 = arith.constant 1.000000e+00 : f32
    %64 = vector.broadcast %cst_61 : f32 to vector<27x80xf32>
    %65 = arith.divf %64, %63 : vector<27x80xf32>
    %cst_62 = arith.constant 0.000000e+00 : f32
    %66 = vector.broadcast %cst_62 : f32 to vector<4x80xf32>
    %c0_63 = arith.constant 0 : index
    %c0_64 = arith.constant 0 : index
    %67 = vector.load %arg12[%c0_63, %c0_64] : memref<35x80xf32, #tpu.memory_space<vmem>>, vector<4x80xf32>
    tpu.vector_store %arg12[%c0_63, %c0_64], %66 {strides = array<i32>} : memref<35x80xf32, #tpu.memory_space<vmem>>, vector<4x80xf32>,
    %c31 = arith.constant 31 : index
    %c0_65 = arith.constant 0 : index
    %68 = vector.load %arg12[%c31, %c0_65] : memref<35x80xf32, #tpu.memory_space<vmem>>, vector<4x80xf32>
    tpu.vector_store %arg12[%c31, %c0_65], %66 {strides = array<i32>} : memref<35x80xf32, #tpu.memory_space<vmem>>, vector<4x80xf32>,
    %c4_66 = arith.constant 4 : index
    %c0_67 = arith.constant 0 : index
    %69 = vector.load %arg12[%c4_66, %c0_67] : memref<35x80xf32, #tpu.memory_space<vmem>>, vector<27x80xf32>
    tpu.vector_store %arg12[%c4_66, %c0_67], %65 {strides = array<i32>} : memref<35x80xf32, #tpu.memory_space<vmem>>, vector<27x80xf32>,
    %c0_68 = arith.constant 0 : index
    %c0_69 = arith.constant 0 : index
    %70 = vector.load %arg5[%c0_68, %c0_69] : memref<1x16xf32, #tpu.memory_space<vmem>>, vector<1x16xf32>
    %71 = vector.shape_cast %70 : vector<1x16xf32> to vector<1x16xf32>
    %72 = vector.broadcast %71 : vector<1x16xf32> to vector<16x16xf32>
    %c0_70 = arith.constant 0 : index
    %c0_71 = arith.constant 0 : index
    %73 = vector.load %arg12[%c0_70, %c0_71] : memref<35x80xf32, #tpu.memory_space<vmem>>, vector<16x80xf32>
    %c0_72 = arith.constant 0 : index
    %c0_73 = arith.constant 0 : index
    %c0_74 = arith.constant 0 : index
    %74 = vector.load %arg4[%c0_72, %c0_73, %c0_74] : memref<20x80x16xf32, #tpu.memory_space<vmem>>, vector<1x80x16xf32>
    %75 = vector.shape_cast %74 : vector<1x80x16xf32> to vector<80x16xf32>
    %cst_75 = arith.constant dense<0.000000e+00> : vector<16x16xf32>
    %76 = tpu.matmul %73, %75, %cst_75 {dimension_numbers = #tpu.dot_dimension_numbers<[1], [0], [0], [1], [0, 0, 1, 1], [], []>} : vector<16x80xf32>, vector<80x16xf32>, vector<16x16xf32> -> vector<16x16xf32>
    %77 = arith.addf %72, %76 : vector<16x16xf32>
    %c1_76 = arith.constant 1 : index
    %c0_77 = arith.constant 0 : index
    %78 = vector.load %arg12[%c1_76, %c0_77] : memref<35x80xf32, #tpu.memory_space<vmem>>, vector<16x80xf32>
    %c1_78 = arith.constant 1 : index
    %c0_79 = arith.constant 0 : index
    %c0_80 = arith.constant 0 : index
    %79 = vector.load %arg4[%c1_78, %c0_79, %c0_80] : memref<20x80x16xf32, #tpu.memory_space<vmem>>, vector<1x80x16xf32>
    %80 = vector.shape_cast %79 : vector<1x80x16xf32> to vector<80x16xf32>
    %cst_81 = arith.constant dense<0.000000e+00> : vector<16x16xf32>
    %81 = tpu.matmul %78, %80, %cst_81 {dimension_numbers = #tpu.dot_dimension_numbers<[1], [0], [0], [1], [0, 0, 1, 1], [], []>} : vector<16x80xf32>, vector<80x16xf32>, vector<16x16xf32> -> vector<16x16xf32>
    %82 = arith.addf %77, %81 : vector<16x16xf32>
    %c2_82 = arith.constant 2 : index
    %c0_83 = arith.constant 0 : index
    %83 = vector.load %arg12[%c2_82, %c0_83] : memref<35x80xf32, #tpu.memory_space<vmem>>, vector<16x80xf32>
    %c2_84 = arith.constant 2 : index
    %c0_85 = arith.constant 0 : index
    %c0_86 = arith.constant 0 : index
    %84 = vector.load %arg4[%c2_84, %c0_85, %c0_86] : memref<20x80x16xf32, #tpu.memory_space<vmem>>, vector<1x80x16xf32>
    %85 = vector.shape_cast %84 : vector<1x80x16xf32> to vector<80x16xf32>
    %cst_87 = arith.constant dense<0.000000e+00> : vector<16x16xf32>
    %86 = tpu.matmul %83, %85, %cst_87 {dimension_numbers = #tpu.dot_dimension_numbers<[1], [0], [0], [1], [0, 0, 1, 1], [], []>} : vector<16x80xf32>, vector<80x16xf32>, vector<16x16xf32> -> vector<16x16xf32>
    %87 = arith.addf %82, %86 : vector<16x16xf32>
    %c3_88 = arith.constant 3 : index
    %c0_89 = arith.constant 0 : index
    %88 = vector.load %arg12[%c3_88, %c0_89] : memref<35x80xf32, #tpu.memory_space<vmem>>, vector<16x80xf32>
    %c3_90 = arith.constant 3 : index
    %c0_91 = arith.constant 0 : index
    %c0_92 = arith.constant 0 : index
    %89 = vector.load %arg4[%c3_90, %c0_91, %c0_92] : memref<20x80x16xf32, #tpu.memory_space<vmem>>, vector<1x80x16xf32>
    %90 = vector.shape_cast %89 : vector<1x80x16xf32> to vector<80x16xf32>
    %cst_93 = arith.constant dense<0.000000e+00> : vector<16x16xf32>
    %91 = tpu.matmul %88, %90, %cst_93 {dimension_numbers = #tpu.dot_dimension_numbers<[1], [0], [0], [1], [0, 0, 1, 1], [], []>} : vector<16x80xf32>, vector<80x16xf32>, vector<16x16xf32> -> vector<16x16xf32>
    %92 = arith.addf %87, %91 : vector<16x16xf32>
    %c4_94 = arith.constant 4 : index
    %c0_95 = arith.constant 0 : index
    %93 = vector.load %arg12[%c4_94, %c0_95] : memref<35x80xf32, #tpu.memory_space<vmem>>, vector<16x80xf32>
    %c4_96 = arith.constant 4 : index
    %c0_97 = arith.constant 0 : index
    %c0_98 = arith.constant 0 : index
    %94 = vector.load %arg4[%c4_96, %c0_97, %c0_98] : memref<20x80x16xf32, #tpu.memory_space<vmem>>, vector<1x80x16xf32>
    %95 = vector.shape_cast %94 : vector<1x80x16xf32> to vector<80x16xf32>
    %cst_99 = arith.constant dense<0.000000e+00> : vector<16x16xf32>
    %96 = tpu.matmul %93, %95, %cst_99 {dimension_numbers = #tpu.dot_dimension_numbers<[1], [0], [0], [1], [0, 0, 1, 1], [], []>} : vector<16x80xf32>, vector<80x16xf32>, vector<16x16xf32> -> vector<16x16xf32>
    %97 = arith.addf %92, %96 : vector<16x16xf32>
    %c5_100 = arith.constant 5 : index
    %c0_101 = arith.constant 0 : index
    %98 = vector.load %arg12[%c5_100, %c0_101] : memref<35x80xf32, #tpu.memory_space<vmem>>, vector<16x80xf32>
    %c5_102 = arith.constant 5 : index
    %c0_103 = arith.constant 0 : index
    %c0_104 = arith.constant 0 : index
    %99 = vector.load %arg4[%c5_102, %c0_103, %c0_104] : memref<20x80x16xf32, #tpu.memory_space<vmem>>, vector<1x80x16xf32>
    %100 = vector.shape_cast %99 : vector<1x80x16xf32> to vector<80x16xf32>
    %cst_105 = arith.constant dense<0.000000e+00> : vector<16x16xf32>
    %101 = tpu.matmul %98, %100, %cst_105 {dimension_numbers = #tpu.dot_dimension_numbers<[1], [0], [0], [1], [0, 0, 1, 1], [], []>} : vector<16x80xf32>, vector<80x16xf32>, vector<16x16xf32> -> vector<16x16xf32>
    %102 = arith.addf %97, %101 : vector<16x16xf32>
    %c6_106 = arith.constant 6 : index
    %c0_107 = arith.constant 0 : index
    %103 = vector.load %arg12[%c6_106, %c0_107] : memref<35x80xf32, #tpu.memory_space<vmem>>, vector<16x80xf32>
    %c6_108 = arith.constant 6 : index
    %c0_109 = arith.constant 0 : index
    %c0_110 = arith.constant 0 : index
    %104 = vector.load %arg4[%c6_108, %c0_109, %c0_110] : memref<20x80x16xf32, #tpu.memory_space<vmem>>, vector<1x80x16xf32>
    %105 = vector.shape_cast %104 : vector<1x80x16xf32> to vector<80x16xf32>
    %cst_111 = arith.constant dense<0.000000e+00> : vector<16x16xf32>
    %106 = tpu.matmul %103, %105, %cst_111 {dimension_numbers = #tpu.dot_dimension_numbers<[1], [0], [0], [1], [0, 0, 1, 1], [], []>} : vector<16x80xf32>, vector<80x16xf32>, vector<16x16xf32> -> vector<16x16xf32>
    %107 = arith.addf %102, %106 : vector<16x16xf32>
    %c7_112 = arith.constant 7 : index
    %c0_113 = arith.constant 0 : index
    %108 = vector.load %arg12[%c7_112, %c0_113] : memref<35x80xf32, #tpu.memory_space<vmem>>, vector<16x80xf32>
    %c7_114 = arith.constant 7 : index
    %c0_115 = arith.constant 0 : index
    %c0_116 = arith.constant 0 : index
    %109 = vector.load %arg4[%c7_114, %c0_115, %c0_116] : memref<20x80x16xf32, #tpu.memory_space<vmem>>, vector<1x80x16xf32>
    %110 = vector.shape_cast %109 : vector<1x80x16xf32> to vector<80x16xf32>
    %cst_117 = arith.constant dense<0.000000e+00> : vector<16x16xf32>
    %111 = tpu.matmul %108, %110, %cst_117 {dimension_numbers = #tpu.dot_dimension_numbers<[1], [0], [0], [1], [0, 0, 1, 1], [], []>} : vector<16x80xf32>, vector<80x16xf32>, vector<16x16xf32> -> vector<16x16xf32>
    %112 = arith.addf %107, %111 : vector<16x16xf32>
    %c8_118 = arith.constant 8 : index
    %c0_119 = arith.constant 0 : index
    %113 = vector.load %arg12[%c8_118, %c0_119] : memref<35x80xf32, #tpu.memory_space<vmem>>, vector<16x80xf32>
    %c8_120 = arith.constant 8 : index
    %c0_121 = arith.constant 0 : index
    %c0_122 = arith.constant 0 : index
    %114 = vector.load %arg4[%c8_120, %c0_121, %c0_122] : memref<20x80x16xf32, #tpu.memory_space<vmem>>, vector<1x80x16xf32>
    %115 = vector.shape_cast %114 : vector<1x80x16xf32> to vector<80x16xf32>
    %cst_123 = arith.constant dense<0.000000e+00> : vector<16x16xf32>
    %116 = tpu.matmul %113, %115, %cst_123 {dimension_numbers = #tpu.dot_dimension_numbers<[1], [0], [0], [1], [0, 0, 1, 1], [], []>} : vector<16x80xf32>, vector<80x16xf32>, vector<16x16xf32> -> vector<16x16xf32>
    %117 = arith.addf %112, %116 : vector<16x16xf32>
    %c9_124 = arith.constant 9 : index
    %c0_125 = arith.constant 0 : index
    %118 = vector.load %arg12[%c9_124, %c0_125] : memref<35x80xf32, #tpu.memory_space<vmem>>, vector<16x80xf32>
    %c9_126 = arith.constant 9 : index
    %c0_127 = arith.constant 0 : index
    %c0_128 = arith.constant 0 : index
    %119 = vector.load %arg4[%c9_126, %c0_127, %c0_128] : memref<20x80x16xf32, #tpu.memory_space<vmem>>, vector<1x80x16xf32>
    %120 = vector.shape_cast %119 : vector<1x80x16xf32> to vector<80x16xf32>
    %cst_129 = arith.constant dense<0.000000e+00> : vector<16x16xf32>
    %121 = tpu.matmul %118, %120, %cst_129 {dimension_numbers = #tpu.dot_dimension_numbers<[1], [0], [0], [1], [0, 0, 1, 1], [], []>} : vector<16x80xf32>, vector<80x16xf32>, vector<16x16xf32> -> vector<16x16xf32>
    %122 = arith.addf %117, %121 : vector<16x16xf32>
    %c10_130 = arith.constant 10 : index
    %c0_131 = arith.constant 0 : index
    %123 = vector.load %arg12[%c10_130, %c0_131] : memref<35x80xf32, #tpu.memory_space<vmem>>, vector<16x80xf32>
    %c10_132 = arith.constant 10 : index
    %c0_133 = arith.constant 0 : index
    %c0_134 = arith.constant 0 : index
    %124 = vector.load %arg4[%c10_132, %c0_133, %c0_134] : memref<20x80x16xf32, #tpu.memory_space<vmem>>, vector<1x80x16xf32>
    %125 = vector.shape_cast %124 : vector<1x80x16xf32> to vector<80x16xf32>
    %cst_135 = arith.constant dense<0.000000e+00> : vector<16x16xf32>
    %126 = tpu.matmul %123, %125, %cst_135 {dimension_numbers = #tpu.dot_dimension_numbers<[1], [0], [0], [1], [0, 0, 1, 1], [], []>} : vector<16x80xf32>, vector<80x16xf32>, vector<16x16xf32> -> vector<16x16xf32>
    %127 = arith.addf %122, %126 : vector<16x16xf32>
    %c11 = arith.constant 11 : index
    %c0_136 = arith.constant 0 : index
    %128 = vector.load %arg12[%c11, %c0_136] : memref<35x80xf32, #tpu.memory_space<vmem>>, vector<16x80xf32>
    %c11_137 = arith.constant 11 : index
    %c0_138 = arith.constant 0 : index
    %c0_139 = arith.constant 0 : index
    %129 = vector.load %arg4[%c11_137, %c0_138, %c0_139] : memref<20x80x16xf32, #tpu.memory_space<vmem>>, vector<1x80x16xf32>
    %130 = vector.shape_cast %129 : vector<1x80x16xf32> to vector<80x16xf32>
    %cst_140 = arith.constant dense<0.000000e+00> : vector<16x16xf32>
    %131 = tpu.matmul %128, %130, %cst_140 {dimension_numbers = #tpu.dot_dimension_numbers<[1], [0], [0], [1], [0, 0, 1, 1], [], []>} : vector<16x80xf32>, vector<80x16xf32>, vector<16x16xf32> -> vector<16x16xf32>
    %132 = arith.addf %127, %131 : vector<16x16xf32>
    %c12 = arith.constant 12 : index
    %c0_141 = arith.constant 0 : index
    %133 = vector.load %arg12[%c12, %c0_141] : memref<35x80xf32, #tpu.memory_space<vmem>>, vector<16x80xf32>
    %c12_142 = arith.constant 12 : index
    %c0_143 = arith.constant 0 : index
    %c0_144 = arith.constant 0 : index
    %134 = vector.load %arg4[%c12_142, %c0_143, %c0_144] : memref<20x80x16xf32, #tpu.memory_space<vmem>>, vector<1x80x16xf32>
    %135 = vector.shape_cast %134 : vector<1x80x16xf32> to vector<80x16xf32>
    %cst_145 = arith.constant dense<0.000000e+00> : vector<16x16xf32>
    %136 = tpu.matmul %133, %135, %cst_145 {dimension_numbers = #tpu.dot_dimension_numbers<[1], [0], [0], [1], [0, 0, 1, 1], [], []>} : vector<16x80xf32>, vector<80x16xf32>, vector<16x16xf32> -> vector<16x16xf32>
    %137 = arith.addf %132, %136 : vector<16x16xf32>
    %c13 = arith.constant 13 : index
    %c0_146 = arith.constant 0 : index
    %138 = vector.load %arg12[%c13, %c0_146] : memref<35x80xf32, #tpu.memory_space<vmem>>, vector<16x80xf32>
    %c13_147 = arith.constant 13 : index
    %c0_148 = arith.constant 0 : index
    %c0_149 = arith.constant 0 : index
    %139 = vector.load %arg4[%c13_147, %c0_148, %c0_149] : memref<20x80x16xf32, #tpu.memory_space<vmem>>, vector<1x80x16xf32>
    %140 = vector.shape_cast %139 : vector<1x80x16xf32> to vector<80x16xf32>
    %cst_150 = arith.constant dense<0.000000e+00> : vector<16x16xf32>
    %141 = tpu.matmul %138, %140, %cst_150 {dimension_numbers = #tpu.dot_dimension_numbers<[1], [0], [0], [1], [0, 0, 1, 1], [], []>} : vector<16x80xf32>, vector<80x16xf32>, vector<16x16xf32> -> vector<16x16xf32>
    %142 = arith.addf %137, %141 : vector<16x16xf32>
    %c14 = arith.constant 14 : index
    %c0_151 = arith.constant 0 : index
    %143 = vector.load %arg12[%c14, %c0_151] : memref<35x80xf32, #tpu.memory_space<vmem>>, vector<16x80xf32>
    %c14_152 = arith.constant 14 : index
    %c0_153 = arith.constant 0 : index
    %c0_154 = arith.constant 0 : index
    %144 = vector.load %arg4[%c14_152, %c0_153, %c0_154] : memref<20x80x16xf32, #tpu.memory_space<vmem>>, vector<1x80x16xf32>
    %145 = vector.shape_cast %144 : vector<1x80x16xf32> to vector<80x16xf32>
    %cst_155 = arith.constant dense<0.000000e+00> : vector<16x16xf32>
    %146 = tpu.matmul %143, %145, %cst_155 {dimension_numbers = #tpu.dot_dimension_numbers<[1], [0], [0], [1], [0, 0, 1, 1], [], []>} : vector<16x80xf32>, vector<80x16xf32>, vector<16x16xf32> -> vector<16x16xf32>
    %147 = arith.addf %142, %146 : vector<16x16xf32>
    %c15 = arith.constant 15 : index
    %c0_156 = arith.constant 0 : index
    %148 = vector.load %arg12[%c15, %c0_156] : memref<35x80xf32, #tpu.memory_space<vmem>>, vector<16x80xf32>
    %c15_157 = arith.constant 15 : index
    %c0_158 = arith.constant 0 : index
    %c0_159 = arith.constant 0 : index
    %149 = vector.load %arg4[%c15_157, %c0_158, %c0_159] : memref<20x80x16xf32, #tpu.memory_space<vmem>>, vector<1x80x16xf32>
    %150 = vector.shape_cast %149 : vector<1x80x16xf32> to vector<80x16xf32>
    %cst_160 = arith.constant dense<0.000000e+00> : vector<16x16xf32>
    %151 = tpu.matmul %148, %150, %cst_160 {dimension_numbers = #tpu.dot_dimension_numbers<[1], [0], [0], [1], [0, 0, 1, 1], [], []>} : vector<16x80xf32>, vector<80x16xf32>, vector<16x16xf32> -> vector<16x16xf32>
    %152 = arith.addf %147, %151 : vector<16x16xf32>
    %c16 = arith.constant 16 : index
    %c0_161 = arith.constant 0 : index
    %153 = vector.load %arg12[%c16, %c0_161] : memref<35x80xf32, #tpu.memory_space<vmem>>, vector<16x80xf32>
    %c16_162 = arith.constant 16 : index
    %c0_163 = arith.constant 0 : index
    %c0_164 = arith.constant 0 : index
    %154 = vector.load %arg4[%c16_162, %c0_163, %c0_164] : memref<20x80x16xf32, #tpu.memory_space<vmem>>, vector<1x80x16xf32>
    %155 = vector.shape_cast %154 : vector<1x80x16xf32> to vector<80x16xf32>
    %cst_165 = arith.constant dense<0.000000e+00> : vector<16x16xf32>
    %156 = tpu.matmul %153, %155, %cst_165 {dimension_numbers = #tpu.dot_dimension_numbers<[1], [0], [0], [1], [0, 0, 1, 1], [], []>} : vector<16x80xf32>, vector<80x16xf32>, vector<16x16xf32> -> vector<16x16xf32>
    %157 = arith.addf %152, %156 : vector<16x16xf32>
    %c17 = arith.constant 17 : index
    %c0_166 = arith.constant 0 : index
    %158 = vector.load %arg12[%c17, %c0_166] : memref<35x80xf32, #tpu.memory_space<vmem>>, vector<16x80xf32>
    %c17_167 = arith.constant 17 : index
    %c0_168 = arith.constant 0 : index
    %c0_169 = arith.constant 0 : index
    %159 = vector.load %arg4[%c17_167, %c0_168, %c0_169] : memref<20x80x16xf32, #tpu.memory_space<vmem>>, vector<1x80x16xf32>
    %160 = vector.shape_cast %159 : vector<1x80x16xf32> to vector<80x16xf32>
    %cst_170 = arith.constant dense<0.000000e+00> : vector<16x16xf32>
    %161 = tpu.matmul %158, %160, %cst_170 {dimension_numbers = #tpu.dot_dimension_numbers<[1], [0], [0], [1], [0, 0, 1, 1], [], []>} : vector<16x80xf32>, vector<80x16xf32>, vector<16x16xf32> -> vector<16x16xf32>
    %162 = arith.addf %157, %161 : vector<16x16xf32>
    %c18 = arith.constant 18 : index
    %c0_171 = arith.constant 0 : index
    %163 = vector.load %arg12[%c18, %c0_171] : memref<35x80xf32, #tpu.memory_space<vmem>>, vector<16x80xf32>
    %c18_172 = arith.constant 18 : index
    %c0_173 = arith.constant 0 : index
    %c0_174 = arith.constant 0 : index
    %164 = vector.load %arg4[%c18_172, %c0_173, %c0_174] : memref<20x80x16xf32, #tpu.memory_space<vmem>>, vector<1x80x16xf32>
    %165 = vector.shape_cast %164 : vector<1x80x16xf32> to vector<80x16xf32>
    %cst_175 = arith.constant dense<0.000000e+00> : vector<16x16xf32>
    %166 = tpu.matmul %163, %165, %cst_175 {dimension_numbers = #tpu.dot_dimension_numbers<[1], [0], [0], [1], [0, 0, 1, 1], [], []>} : vector<16x80xf32>, vector<80x16xf32>, vector<16x16xf32> -> vector<16x16xf32>
    %167 = arith.addf %162, %166 : vector<16x16xf32>
    %c19 = arith.constant 19 : index
    %c0_176 = arith.constant 0 : index
    %168 = vector.load %arg12[%c19, %c0_176] : memref<35x80xf32, #tpu.memory_space<vmem>>, vector<16x80xf32>
    %c19_177 = arith.constant 19 : index
    %c0_178 = arith.constant 0 : index
    %c0_179 = arith.constant 0 : index
    %169 = vector.load %arg4[%c19_177, %c0_178, %c0_179] : memref<20x80x16xf32, #tpu.memory_space<vmem>>, vector<1x80x16xf32>
    %170 = vector.shape_cast %169 : vector<1x80x16xf32> to vector<80x16xf32>
    %cst_180 = arith.constant dense<0.000000e+00> : vector<16x16xf32>
    %171 = tpu.matmul %168, %170, %cst_180 {dimension_numbers = #tpu.dot_dimension_numbers<[1], [0], [0], [1], [0, 0, 1, 1], [], []>} : vector<16x80xf32>, vector<80x16xf32>, vector<16x16xf32> -> vector<16x16xf32>
    %172 = arith.addf %167, %171 : vector<16x16xf32>
    %cst_181 = arith.constant 0.000000e+00 : f32
    %173 = vector.broadcast %cst_181 : f32 to vector<16x16xf32>
    %174 = arith.subf %173, %172 : vector<16x16xf32>
    %175 = math.exp %174 : vector<16x16xf32>
    %cst_182 = arith.constant 1.000000e+00 : f32
    %176 = vector.broadcast %cst_182 : f32 to vector<16x16xf32>
    %177 = arith.addf %176, %175 : vector<16x16xf32>
    %cst_183 = arith.constant 1.000000e+00 : f32
    %178 = vector.broadcast %cst_183 : f32 to vector<16x16xf32>
    %179 = arith.divf %178, %177 : vector<16x16xf32>
    %cst_184 = arith.constant 0.000000e+00 : f32
    %180 = vector.broadcast %cst_184 : f32 to vector<10x16xf32>
    %c0_185 = arith.constant 0 : index
    %c0_186 = arith.constant 0 : index
    %181 = vector.load %arg13[%c0_185, %c0_186] : memref<36x16xf32, #tpu.memory_space<vmem>>, vector<10x16xf32>
    tpu.vector_store %arg13[%c0_185, %c0_186], %180 {strides = array<i32>} : memref<36x16xf32, #tpu.memory_space<vmem>>, vector<10x16xf32>,
    %c26_187 = arith.constant 26 : index
    %c0_188 = arith.constant 0 : index
    %182 = vector.load %arg13[%c26_187, %c0_188] : memref<36x16xf32, #tpu.memory_space<vmem>>, vector<10x16xf32>
    tpu.vector_store %arg13[%c26_187, %c0_188], %180 {strides = array<i32>} : memref<36x16xf32, #tpu.memory_space<vmem>>, vector<10x16xf32>,
    %c10_189 = arith.constant 10 : index
    %c0_190 = arith.constant 0 : index
    %183 = vector.load %arg13[%c10_189, %c0_190] : memref<36x16xf32, #tpu.memory_space<vmem>>, vector<16x16xf32>
    tpu.vector_store %arg13[%c10_189, %c0_190], %179 {strides = array<i32>} : memref<36x16xf32, #tpu.memory_space<vmem>>, vector<16x16xf32>,
    %c0_191 = arith.constant 0 : index
    %c0_192 = arith.constant 0 : index
    %184 = vector.load %arg7[%c0_191, %c0_192] : memref<1x40xf32, #tpu.memory_space<vmem>>, vector<1x40xf32>
    %185 = vector.shape_cast %184 : vector<1x40xf32> to vector<1x40xf32>
    %186 = vector.broadcast %185 : vector<1x40xf32> to vector<27x40xf32>
    %c0_193 = arith.constant 0 : index
    %c0_194 = arith.constant 0 : index
    %187 = vector.load %arg13[%c0_193, %c0_194] : memref<36x16xf32, #tpu.memory_space<vmem>>, vector<27x16xf32>
    %c0_195 = arith.constant 0 : index
    %c0_196 = arith.constant 0 : index
    %c0_197 = arith.constant 0 : index
    %188 = vector.load %arg6[%c0_195, %c0_196, %c0_197] : memref<10x16x40xf32, #tpu.memory_space<vmem>>, vector<1x16x40xf32>
    %189 = vector.shape_cast %188 : vector<1x16x40xf32> to vector<16x40xf32>
    %cst_198 = arith.constant dense<0.000000e+00> : vector<27x40xf32>
    %190 = tpu.matmul %187, %189, %cst_198 {dimension_numbers = #tpu.dot_dimension_numbers<[1], [0], [0], [1], [0, 0, 1, 1], [], []>} : vector<27x16xf32>, vector<16x40xf32>, vector<27x40xf32> -> vector<27x40xf32>
    %191 = arith.addf %186, %190 : vector<27x40xf32>
    %c1_199 = arith.constant 1 : index
    %c0_200 = arith.constant 0 : index
    %192 = vector.load %arg13[%c1_199, %c0_200] : memref<36x16xf32, #tpu.memory_space<vmem>>, vector<27x16xf32>
    %c1_201 = arith.constant 1 : index
    %c0_202 = arith.constant 0 : index
    %c0_203 = arith.constant 0 : index
    %193 = vector.load %arg6[%c1_201, %c0_202, %c0_203] : memref<10x16x40xf32, #tpu.memory_space<vmem>>, vector<1x16x40xf32>
    %194 = vector.shape_cast %193 : vector<1x16x40xf32> to vector<16x40xf32>
    %cst_204 = arith.constant dense<0.000000e+00> : vector<27x40xf32>
    %195 = tpu.matmul %192, %194, %cst_204 {dimension_numbers = #tpu.dot_dimension_numbers<[1], [0], [0], [1], [0, 0, 1, 1], [], []>} : vector<27x16xf32>, vector<16x40xf32>, vector<27x40xf32> -> vector<27x40xf32>
    %196 = arith.addf %191, %195 : vector<27x40xf32>
    %c2_205 = arith.constant 2 : index
    %c0_206 = arith.constant 0 : index
    %197 = vector.load %arg13[%c2_205, %c0_206] : memref<36x16xf32, #tpu.memory_space<vmem>>, vector<27x16xf32>
    %c2_207 = arith.constant 2 : index
    %c0_208 = arith.constant 0 : index
    %c0_209 = arith.constant 0 : index
    %198 = vector.load %arg6[%c2_207, %c0_208, %c0_209] : memref<10x16x40xf32, #tpu.memory_space<vmem>>, vector<1x16x40xf32>
    %199 = vector.shape_cast %198 : vector<1x16x40xf32> to vector<16x40xf32>
    %cst_210 = arith.constant dense<0.000000e+00> : vector<27x40xf32>
    %200 = tpu.matmul %197, %199, %cst_210 {dimension_numbers = #tpu.dot_dimension_numbers<[1], [0], [0], [1], [0, 0, 1, 1], [], []>} : vector<27x16xf32>, vector<16x40xf32>, vector<27x40xf32> -> vector<27x40xf32>
    %201 = arith.addf %196, %200 : vector<27x40xf32>
    %c3_211 = arith.constant 3 : index
    %c0_212 = arith.constant 0 : index
    %202 = vector.load %arg13[%c3_211, %c0_212] : memref<36x16xf32, #tpu.memory_space<vmem>>, vector<27x16xf32>
    %c3_213 = arith.constant 3 : index
    %c0_214 = arith.constant 0 : index
    %c0_215 = arith.constant 0 : index
    %203 = vector.load %arg6[%c3_213, %c0_214, %c0_215] : memref<10x16x40xf32, #tpu.memory_space<vmem>>, vector<1x16x40xf32>
    %204 = vector.shape_cast %203 : vector<1x16x40xf32> to vector<16x40xf32>
    %cst_216 = arith.constant dense<0.000000e+00> : vector<27x40xf32>
    %205 = tpu.matmul %202, %204, %cst_216 {dimension_numbers = #tpu.dot_dimension_numbers<[1], [0], [0], [1], [0, 0, 1, 1], [], []>} : vector<27x16xf32>, vector<16x40xf32>, vector<27x40xf32> -> vector<27x40xf32>
    %206 = arith.addf %201, %205 : vector<27x40xf32>
    %c4_217 = arith.constant 4 : index
    %c0_218 = arith.constant 0 : index
    %207 = vector.load %arg13[%c4_217, %c0_218] : memref<36x16xf32, #tpu.memory_space<vmem>>, vector<27x16xf32>
    %c4_219 = arith.constant 4 : index
    %c0_220 = arith.constant 0 : index
    %c0_221 = arith.constant 0 : index
    %208 = vector.load %arg6[%c4_219, %c0_220, %c0_221] : memref<10x16x40xf32, #tpu.memory_space<vmem>>, vector<1x16x40xf32>
    %209 = vector.shape_cast %208 : vector<1x16x40xf32> to vector<16x40xf32>
    %cst_222 = arith.constant dense<0.000000e+00> : vector<27x40xf32>
    %210 = tpu.matmul %207, %209, %cst_222 {dimension_numbers = #tpu.dot_dimension_numbers<[1], [0], [0], [1], [0, 0, 1, 1], [], []>} : vector<27x16xf32>, vector<16x40xf32>, vector<27x40xf32> -> vector<27x40xf32>
    %211 = arith.addf %206, %210 : vector<27x40xf32>
    %c5_223 = arith.constant 5 : index
    %c0_224 = arith.constant 0 : index
    %212 = vector.load %arg13[%c5_223, %c0_224] : memref<36x16xf32, #tpu.memory_space<vmem>>, vector<27x16xf32>
    %c5_225 = arith.constant 5 : index
    %c0_226 = arith.constant 0 : index
    %c0_227 = arith.constant 0 : index
    %213 = vector.load %arg6[%c5_225, %c0_226, %c0_227] : memref<10x16x40xf32, #tpu.memory_space<vmem>>, vector<1x16x40xf32>
    %214 = vector.shape_cast %213 : vector<1x16x40xf32> to vector<16x40xf32>
    %cst_228 = arith.constant dense<0.000000e+00> : vector<27x40xf32>
    %215 = tpu.matmul %212, %214, %cst_228 {dimension_numbers = #tpu.dot_dimension_numbers<[1], [0], [0], [1], [0, 0, 1, 1], [], []>} : vector<27x16xf32>, vector<16x40xf32>, vector<27x40xf32> -> vector<27x40xf32>
    %216 = arith.addf %211, %215 : vector<27x40xf32>
    %c6_229 = arith.constant 6 : index
    %c0_230 = arith.constant 0 : index
    %217 = vector.load %arg13[%c6_229, %c0_230] : memref<36x16xf32, #tpu.memory_space<vmem>>, vector<27x16xf32>
    %c6_231 = arith.constant 6 : index
    %c0_232 = arith.constant 0 : index
    %c0_233 = arith.constant 0 : index
    %218 = vector.load %arg6[%c6_231, %c0_232, %c0_233] : memref<10x16x40xf32, #tpu.memory_space<vmem>>, vector<1x16x40xf32>
    %219 = vector.shape_cast %218 : vector<1x16x40xf32> to vector<16x40xf32>
    %cst_234 = arith.constant dense<0.000000e+00> : vector<27x40xf32>
    %220 = tpu.matmul %217, %219, %cst_234 {dimension_numbers = #tpu.dot_dimension_numbers<[1], [0], [0], [1], [0, 0, 1, 1], [], []>} : vector<27x16xf32>, vector<16x40xf32>, vector<27x40xf32> -> vector<27x40xf32>
    %221 = arith.addf %216, %220 : vector<27x40xf32>
    %c7_235 = arith.constant 7 : index
    %c0_236 = arith.constant 0 : index
    %222 = vector.load %arg13[%c7_235, %c0_236] : memref<36x16xf32, #tpu.memory_space<vmem>>, vector<27x16xf32>
    %c7_237 = arith.constant 7 : index
    %c0_238 = arith.constant 0 : index
    %c0_239 = arith.constant 0 : index
    %223 = vector.load %arg6[%c7_237, %c0_238, %c0_239] : memref<10x16x40xf32, #tpu.memory_space<vmem>>, vector<1x16x40xf32>
    %224 = vector.shape_cast %223 : vector<1x16x40xf32> to vector<16x40xf32>
    %cst_240 = arith.constant dense<0.000000e+00> : vector<27x40xf32>
    %225 = tpu.matmul %222, %224, %cst_240 {dimension_numbers = #tpu.dot_dimension_numbers<[1], [0], [0], [1], [0, 0, 1, 1], [], []>} : vector<27x16xf32>, vector<16x40xf32>, vector<27x40xf32> -> vector<27x40xf32>
    %226 = arith.addf %221, %225 : vector<27x40xf32>
    %c8_241 = arith.constant 8 : index
    %c0_242 = arith.constant 0 : index
    %227 = vector.load %arg13[%c8_241, %c0_242] : memref<36x16xf32, #tpu.memory_space<vmem>>, vector<27x16xf32>
    %c8_243 = arith.constant 8 : index
    %c0_244 = arith.constant 0 : index
    %c0_245 = arith.constant 0 : index
    %228 = vector.load %arg6[%c8_243, %c0_244, %c0_245] : memref<10x16x40xf32, #tpu.memory_space<vmem>>, vector<1x16x40xf32>
    %229 = vector.shape_cast %228 : vector<1x16x40xf32> to vector<16x40xf32>
    %cst_246 = arith.constant dense<0.000000e+00> : vector<27x40xf32>
    %230 = tpu.matmul %227, %229, %cst_246 {dimension_numbers = #tpu.dot_dimension_numbers<[1], [0], [0], [1], [0, 0, 1, 1], [], []>} : vector<27x16xf32>, vector<16x40xf32>, vector<27x40xf32> -> vector<27x40xf32>
    %231 = arith.addf %226, %230 : vector<27x40xf32>
    %c9_247 = arith.constant 9 : index
    %c0_248 = arith.constant 0 : index
    %232 = vector.load %arg13[%c9_247, %c0_248] : memref<36x16xf32, #tpu.memory_space<vmem>>, vector<27x16xf32>
    %c9_249 = arith.constant 9 : index
    %c0_250 = arith.constant 0 : index
    %c0_251 = arith.constant 0 : index
    %233 = vector.load %arg6[%c9_249, %c0_250, %c0_251] : memref<10x16x40xf32, #tpu.memory_space<vmem>>, vector<1x16x40xf32>
    %234 = vector.shape_cast %233 : vector<1x16x40xf32> to vector<16x40xf32>
    %cst_252 = arith.constant dense<0.000000e+00> : vector<27x40xf32>
    %235 = tpu.matmul %232, %234, %cst_252 {dimension_numbers = #tpu.dot_dimension_numbers<[1], [0], [0], [1], [0, 0, 1, 1], [], []>} : vector<27x16xf32>, vector<16x40xf32>, vector<27x40xf32> -> vector<27x40xf32>
    %236 = arith.addf %231, %235 : vector<27x40xf32>
    %cst_253 = arith.constant 0.000000e+00 : f32
    %237 = vector.broadcast %cst_253 : f32 to vector<27x40xf32>
    %238 = arith.subf %237, %236 : vector<27x40xf32>
    %239 = math.exp %238 : vector<27x40xf32>
    %cst_254 = arith.constant 1.000000e+00 : f32
    %240 = vector.broadcast %cst_254 : f32 to vector<27x40xf32>
    %241 = arith.addf %240, %239 : vector<27x40xf32>
    %cst_255 = arith.constant 1.000000e+00 : f32
    %242 = vector.broadcast %cst_255 : f32 to vector<27x40xf32>
    %243 = arith.divf %242, %241 : vector<27x40xf32>
    %cst_256 = arith.constant 0.000000e+00 : f32
    %244 = vector.broadcast %cst_256 : f32 to vector<4x40xf32>
    %c0_257 = arith.constant 0 : index
    %c0_258 = arith.constant 0 : index
    %245 = vector.load %arg14[%c0_257, %c0_258] : memref<35x40xf32, #tpu.memory_space<vmem>>, vector<4x40xf32>
    tpu.vector_store %arg14[%c0_257, %c0_258], %244 {strides = array<i32>} : memref<35x40xf32, #tpu.memory_space<vmem>>, vector<4x40xf32>,
    %c31_259 = arith.constant 31 : index
    %c0_260 = arith.constant 0 : index
    %246 = vector.load %arg14[%c31_259, %c0_260] : memref<35x40xf32, #tpu.memory_space<vmem>>, vector<4x40xf32>
    tpu.vector_store %arg14[%c31_259, %c0_260], %244 {strides = array<i32>} : memref<35x40xf32, #tpu.memory_space<vmem>>, vector<4x40xf32>,
    %c4_261 = arith.constant 4 : index
    %c0_262 = arith.constant 0 : index
    %247 = vector.load %arg14[%c4_261, %c0_262] : memref<35x40xf32, #tpu.memory_space<vmem>>, vector<27x40xf32>
    tpu.vector_store %arg14[%c4_261, %c0_262], %243 {strides = array<i32>} : memref<35x40xf32, #tpu.memory_space<vmem>>, vector<27x40xf32>,
    %c0_263 = arith.constant 0 : index
    %c0_264 = arith.constant 0 : index
    %248 = vector.load %arg9[%c0_263, %c0_264] : memref<1x8xf32, #tpu.memory_space<vmem>>, vector<1x8xf32>
    %249 = vector.shape_cast %248 : vector<1x8xf32> to vector<1x8xf32>
    %250 = vector.broadcast %249 : vector<1x8xf32> to vector<16x8xf32>
    %c0_265 = arith.constant 0 : index
    %c0_266 = arith.constant 0 : index
    %251 = vector.load %arg14[%c0_265, %c0_266] : memref<35x40xf32, #tpu.memory_space<vmem>>, vector<16x40xf32>
    %c0_267 = arith.constant 0 : index
    %c0_268 = arith.constant 0 : index
    %c0_269 = arith.constant 0 : index
    %252 = vector.load %arg8[%c0_267, %c0_268, %c0_269] : memref<20x40x8xf32, #tpu.memory_space<vmem>>, vector<1x40x8xf32>
    %253 = vector.shape_cast %252 : vector<1x40x8xf32> to vector<40x8xf32>
    %cst_270 = arith.constant dense<0.000000e+00> : vector<16x8xf32>
    %254 = tpu.matmul %251, %253, %cst_270 {dimension_numbers = #tpu.dot_dimension_numbers<[1], [0], [0], [1], [0, 0, 1, 1], [], []>} : vector<16x40xf32>, vector<40x8xf32>, vector<16x8xf32> -> vector<16x8xf32>
    %255 = arith.addf %250, %254 : vector<16x8xf32>
    %c1_271 = arith.constant 1 : index
    %c0_272 = arith.constant 0 : index
    %256 = vector.load %arg14[%c1_271, %c0_272] : memref<35x40xf32, #tpu.memory_space<vmem>>, vector<16x40xf32>
    %c1_273 = arith.constant 1 : index
    %c0_274 = arith.constant 0 : index
    %c0_275 = arith.constant 0 : index
    %257 = vector.load %arg8[%c1_273, %c0_274, %c0_275] : memref<20x40x8xf32, #tpu.memory_space<vmem>>, vector<1x40x8xf32>
    %258 = vector.shape_cast %257 : vector<1x40x8xf32> to vector<40x8xf32>
    %cst_276 = arith.constant dense<0.000000e+00> : vector<16x8xf32>
    %259 = tpu.matmul %256, %258, %cst_276 {dimension_numbers = #tpu.dot_dimension_numbers<[1], [0], [0], [1], [0, 0, 1, 1], [], []>} : vector<16x40xf32>, vector<40x8xf32>, vector<16x8xf32> -> vector<16x8xf32>
    %260 = arith.addf %255, %259 : vector<16x8xf32>
    %c2_277 = arith.constant 2 : index
    %c0_278 = arith.constant 0 : index
    %261 = vector.load %arg14[%c2_277, %c0_278] : memref<35x40xf32, #tpu.memory_space<vmem>>, vector<16x40xf32>
    %c2_279 = arith.constant 2 : index
    %c0_280 = arith.constant 0 : index
    %c0_281 = arith.constant 0 : index
    %262 = vector.load %arg8[%c2_279, %c0_280, %c0_281] : memref<20x40x8xf32, #tpu.memory_space<vmem>>, vector<1x40x8xf32>
    %263 = vector.shape_cast %262 : vector<1x40x8xf32> to vector<40x8xf32>
    %cst_282 = arith.constant dense<0.000000e+00> : vector<16x8xf32>
    %264 = tpu.matmul %261, %263, %cst_282 {dimension_numbers = #tpu.dot_dimension_numbers<[1], [0], [0], [1], [0, 0, 1, 1], [], []>} : vector<16x40xf32>, vector<40x8xf32>, vector<16x8xf32> -> vector<16x8xf32>
    %265 = arith.addf %260, %264 : vector<16x8xf32>
    %c3_283 = arith.constant 3 : index
    %c0_284 = arith.constant 0 : index
    %266 = vector.load %arg14[%c3_283, %c0_284] : memref<35x40xf32, #tpu.memory_space<vmem>>, vector<16x40xf32>
    %c3_285 = arith.constant 3 : index
    %c0_286 = arith.constant 0 : index
    %c0_287 = arith.constant 0 : index
    %267 = vector.load %arg8[%c3_285, %c0_286, %c0_287] : memref<20x40x8xf32, #tpu.memory_space<vmem>>, vector<1x40x8xf32>
    %268 = vector.shape_cast %267 : vector<1x40x8xf32> to vector<40x8xf32>
    %cst_288 = arith.constant dense<0.000000e+00> : vector<16x8xf32>
    %269 = tpu.matmul %266, %268, %cst_288 {dimension_numbers = #tpu.dot_dimension_numbers<[1], [0], [0], [1], [0, 0, 1, 1], [], []>} : vector<16x40xf32>, vector<40x8xf32>, vector<16x8xf32> -> vector<16x8xf32>
    %270 = arith.addf %265, %269 : vector<16x8xf32>
    %c4_289 = arith.constant 4 : index
    %c0_290 = arith.constant 0 : index
    %271 = vector.load %arg14[%c4_289, %c0_290] : memref<35x40xf32, #tpu.memory_space<vmem>>, vector<16x40xf32>
    %c4_291 = arith.constant 4 : index
    %c0_292 = arith.constant 0 : index
    %c0_293 = arith.constant 0 : index
    %272 = vector.load %arg8[%c4_291, %c0_292, %c0_293] : memref<20x40x8xf32, #tpu.memory_space<vmem>>, vector<1x40x8xf32>
    %273 = vector.shape_cast %272 : vector<1x40x8xf32> to vector<40x8xf32>
    %cst_294 = arith.constant dense<0.000000e+00> : vector<16x8xf32>
    %274 = tpu.matmul %271, %273, %cst_294 {dimension_numbers = #tpu.dot_dimension_numbers<[1], [0], [0], [1], [0, 0, 1, 1], [], []>} : vector<16x40xf32>, vector<40x8xf32>, vector<16x8xf32> -> vector<16x8xf32>
    %275 = arith.addf %270, %274 : vector<16x8xf32>
    %c5_295 = arith.constant 5 : index
    %c0_296 = arith.constant 0 : index
    %276 = vector.load %arg14[%c5_295, %c0_296] : memref<35x40xf32, #tpu.memory_space<vmem>>, vector<16x40xf32>
    %c5_297 = arith.constant 5 : index
    %c0_298 = arith.constant 0 : index
    %c0_299 = arith.constant 0 : index
    %277 = vector.load %arg8[%c5_297, %c0_298, %c0_299] : memref<20x40x8xf32, #tpu.memory_space<vmem>>, vector<1x40x8xf32>
    %278 = vector.shape_cast %277 : vector<1x40x8xf32> to vector<40x8xf32>
    %cst_300 = arith.constant dense<0.000000e+00> : vector<16x8xf32>
    %279 = tpu.matmul %276, %278, %cst_300 {dimension_numbers = #tpu.dot_dimension_numbers<[1], [0], [0], [1], [0, 0, 1, 1], [], []>} : vector<16x40xf32>, vector<40x8xf32>, vector<16x8xf32> -> vector<16x8xf32>
    %280 = arith.addf %275, %279 : vector<16x8xf32>
    %c6_301 = arith.constant 6 : index
    %c0_302 = arith.constant 0 : index
    %281 = vector.load %arg14[%c6_301, %c0_302] : memref<35x40xf32, #tpu.memory_space<vmem>>, vector<16x40xf32>
    %c6_303 = arith.constant 6 : index
    %c0_304 = arith.constant 0 : index
    %c0_305 = arith.constant 0 : index
    %282 = vector.load %arg8[%c6_303, %c0_304, %c0_305] : memref<20x40x8xf32, #tpu.memory_space<vmem>>, vector<1x40x8xf32>
    %283 = vector.shape_cast %282 : vector<1x40x8xf32> to vector<40x8xf32>
    %cst_306 = arith.constant dense<0.000000e+00> : vector<16x8xf32>
    %284 = tpu.matmul %281, %283, %cst_306 {dimension_numbers = #tpu.dot_dimension_numbers<[1], [0], [0], [1], [0, 0, 1, 1], [], []>} : vector<16x40xf32>, vector<40x8xf32>, vector<16x8xf32> -> vector<16x8xf32>
    %285 = arith.addf %280, %284 : vector<16x8xf32>
    %c7_307 = arith.constant 7 : index
    %c0_308 = arith.constant 0 : index
    %286 = vector.load %arg14[%c7_307, %c0_308] : memref<35x40xf32, #tpu.memory_space<vmem>>, vector<16x40xf32>
    %c7_309 = arith.constant 7 : index
    %c0_310 = arith.constant 0 : index
    %c0_311 = arith.constant 0 : index
    %287 = vector.load %arg8[%c7_309, %c0_310, %c0_311] : memref<20x40x8xf32, #tpu.memory_space<vmem>>, vector<1x40x8xf32>
    %288 = vector.shape_cast %287 : vector<1x40x8xf32> to vector<40x8xf32>
    %cst_312 = arith.constant dense<0.000000e+00> : vector<16x8xf32>
    %289 = tpu.matmul %286, %288, %cst_312 {dimension_numbers = #tpu.dot_dimension_numbers<[1], [0], [0], [1], [0, 0, 1, 1], [], []>} : vector<16x40xf32>, vector<40x8xf32>, vector<16x8xf32> -> vector<16x8xf32>
    %290 = arith.addf %285, %289 : vector<16x8xf32>
    %c8_313 = arith.constant 8 : index
    %c0_314 = arith.constant 0 : index
    %291 = vector.load %arg14[%c8_313, %c0_314] : memref<35x40xf32, #tpu.memory_space<vmem>>, vector<16x40xf32>
    %c8_315 = arith.constant 8 : index
    %c0_316 = arith.constant 0 : index
    %c0_317 = arith.constant 0 : index
    %292 = vector.load %arg8[%c8_315, %c0_316, %c0_317] : memref<20x40x8xf32, #tpu.memory_space<vmem>>, vector<1x40x8xf32>
    %293 = vector.shape_cast %292 : vector<1x40x8xf32> to vector<40x8xf32>
    %cst_318 = arith.constant dense<0.000000e+00> : vector<16x8xf32>
    %294 = tpu.matmul %291, %293, %cst_318 {dimension_numbers = #tpu.dot_dimension_numbers<[1], [0], [0], [1], [0, 0, 1, 1], [], []>} : vector<16x40xf32>, vector<40x8xf32>, vector<16x8xf32> -> vector<16x8xf32>
    %295 = arith.addf %290, %294 : vector<16x8xf32>
    %c9_319 = arith.constant 9 : index
    %c0_320 = arith.constant 0 : index
    %296 = vector.load %arg14[%c9_319, %c0_320] : memref<35x40xf32, #tpu.memory_space<vmem>>, vector<16x40xf32>
    %c9_321 = arith.constant 9 : index
    %c0_322 = arith.constant 0 : index
    %c0_323 = arith.constant 0 : index
    %297 = vector.load %arg8[%c9_321, %c0_322, %c0_323] : memref<20x40x8xf32, #tpu.memory_space<vmem>>, vector<1x40x8xf32>
    %298 = vector.shape_cast %297 : vector<1x40x8xf32> to vector<40x8xf32>
    %cst_324 = arith.constant dense<0.000000e+00> : vector<16x8xf32>
    %299 = tpu.matmul %296, %298, %cst_324 {dimension_numbers = #tpu.dot_dimension_numbers<[1], [0], [0], [1], [0, 0, 1, 1], [], []>} : vector<16x40xf32>, vector<40x8xf32>, vector<16x8xf32> -> vector<16x8xf32>
    %300 = arith.addf %295, %299 : vector<16x8xf32>
    %c10_325 = arith.constant 10 : index
    %c0_326 = arith.constant 0 : index
    %301 = vector.load %arg14[%c10_325, %c0_326] : memref<35x40xf32, #tpu.memory_space<vmem>>, vector<16x40xf32>
    %c10_327 = arith.constant 10 : index
    %c0_328 = arith.constant 0 : index
    %c0_329 = arith.constant 0 : index
    %302 = vector.load %arg8[%c10_327, %c0_328, %c0_329] : memref<20x40x8xf32, #tpu.memory_space<vmem>>, vector<1x40x8xf32>
    %303 = vector.shape_cast %302 : vector<1x40x8xf32> to vector<40x8xf32>
    %cst_330 = arith.constant dense<0.000000e+00> : vector<16x8xf32>
    %304 = tpu.matmul %301, %303, %cst_330 {dimension_numbers = #tpu.dot_dimension_numbers<[1], [0], [0], [1], [0, 0, 1, 1], [], []>} : vector<16x40xf32>, vector<40x8xf32>, vector<16x8xf32> -> vector<16x8xf32>
    %305 = arith.addf %300, %304 : vector<16x8xf32>
    %c11_331 = arith.constant 11 : index
    %c0_332 = arith.constant 0 : index
    %306 = vector.load %arg14[%c11_331, %c0_332] : memref<35x40xf32, #tpu.memory_space<vmem>>, vector<16x40xf32>
    %c11_333 = arith.constant 11 : index
    %c0_334 = arith.constant 0 : index
    %c0_335 = arith.constant 0 : index
    %307 = vector.load %arg8[%c11_333, %c0_334, %c0_335] : memref<20x40x8xf32, #tpu.memory_space<vmem>>, vector<1x40x8xf32>
    %308 = vector.shape_cast %307 : vector<1x40x8xf32> to vector<40x8xf32>
    %cst_336 = arith.constant dense<0.000000e+00> : vector<16x8xf32>
    %309 = tpu.matmul %306, %308, %cst_336 {dimension_numbers = #tpu.dot_dimension_numbers<[1], [0], [0], [1], [0, 0, 1, 1], [], []>} : vector<16x40xf32>, vector<40x8xf32>, vector<16x8xf32> -> vector<16x8xf32>
    %310 = arith.addf %305, %309 : vector<16x8xf32>
    %c12_337 = arith.constant 12 : index
    %c0_338 = arith.constant 0 : index
    %311 = vector.load %arg14[%c12_337, %c0_338] : memref<35x40xf32, #tpu.memory_space<vmem>>, vector<16x40xf32>
    %c12_339 = arith.constant 12 : index
    %c0_340 = arith.constant 0 : index
    %c0_341 = arith.constant 0 : index
    %312 = vector.load %arg8[%c12_339, %c0_340, %c0_341] : memref<20x40x8xf32, #tpu.memory_space<vmem>>, vector<1x40x8xf32>
    %313 = vector.shape_cast %312 : vector<1x40x8xf32> to vector<40x8xf32>
    %cst_342 = arith.constant dense<0.000000e+00> : vector<16x8xf32>
    %314 = tpu.matmul %311, %313, %cst_342 {dimension_numbers = #tpu.dot_dimension_numbers<[1], [0], [0], [1], [0, 0, 1, 1], [], []>} : vector<16x40xf32>, vector<40x8xf32>, vector<16x8xf32> -> vector<16x8xf32>
    %315 = arith.addf %310, %314 : vector<16x8xf32>
    %c13_343 = arith.constant 13 : index
    %c0_344 = arith.constant 0 : index
    %316 = vector.load %arg14[%c13_343, %c0_344] : memref<35x40xf32, #tpu.memory_space<vmem>>, vector<16x40xf32>
    %c13_345 = arith.constant 13 : index
    %c0_346 = arith.constant 0 : index
    %c0_347 = arith.constant 0 : index
    %317 = vector.load %arg8[%c13_345, %c0_346, %c0_347] : memref<20x40x8xf32, #tpu.memory_space<vmem>>, vector<1x40x8xf32>
    %318 = vector.shape_cast %317 : vector<1x40x8xf32> to vector<40x8xf32>
    %cst_348 = arith.constant dense<0.000000e+00> : vector<16x8xf32>
    %319 = tpu.matmul %316, %318, %cst_348 {dimension_numbers = #tpu.dot_dimension_numbers<[1], [0], [0], [1], [0, 0, 1, 1], [], []>} : vector<16x40xf32>, vector<40x8xf32>, vector<16x8xf32> -> vector<16x8xf32>
    %320 = arith.addf %315, %319 : vector<16x8xf32>
    %c14_349 = arith.constant 14 : index
    %c0_350 = arith.constant 0 : index
    %321 = vector.load %arg14[%c14_349, %c0_350] : memref<35x40xf32, #tpu.memory_space<vmem>>, vector<16x40xf32>
    %c14_351 = arith.constant 14 : index
    %c0_352 = arith.constant 0 : index
    %c0_353 = arith.constant 0 : index
    %322 = vector.load %arg8[%c14_351, %c0_352, %c0_353] : memref<20x40x8xf32, #tpu.memory_space<vmem>>, vector<1x40x8xf32>
    %323 = vector.shape_cast %322 : vector<1x40x8xf32> to vector<40x8xf32>
    %cst_354 = arith.constant dense<0.000000e+00> : vector<16x8xf32>
    %324 = tpu.matmul %321, %323, %cst_354 {dimension_numbers = #tpu.dot_dimension_numbers<[1], [0], [0], [1], [0, 0, 1, 1], [], []>} : vector<16x40xf32>, vector<40x8xf32>, vector<16x8xf32> -> vector<16x8xf32>
    %325 = arith.addf %320, %324 : vector<16x8xf32>
    %c15_355 = arith.constant 15 : index
    %c0_356 = arith.constant 0 : index
    %326 = vector.load %arg14[%c15_355, %c0_356] : memref<35x40xf32, #tpu.memory_space<vmem>>, vector<16x40xf32>
    %c15_357 = arith.constant 15 : index
    %c0_358 = arith.constant 0 : index
    %c0_359 = arith.constant 0 : index
    %327 = vector.load %arg8[%c15_357, %c0_358, %c0_359] : memref<20x40x8xf32, #tpu.memory_space<vmem>>, vector<1x40x8xf32>
    %328 = vector.shape_cast %327 : vector<1x40x8xf32> to vector<40x8xf32>
    %cst_360 = arith.constant dense<0.000000e+00> : vector<16x8xf32>
    %329 = tpu.matmul %326, %328, %cst_360 {dimension_numbers = #tpu.dot_dimension_numbers<[1], [0], [0], [1], [0, 0, 1, 1], [], []>} : vector<16x40xf32>, vector<40x8xf32>, vector<16x8xf32> -> vector<16x8xf32>
    %330 = arith.addf %325, %329 : vector<16x8xf32>
    %c16_361 = arith.constant 16 : index
    %c0_362 = arith.constant 0 : index
    %331 = vector.load %arg14[%c16_361, %c0_362] : memref<35x40xf32, #tpu.memory_space<vmem>>, vector<16x40xf32>
    %c16_363 = arith.constant 16 : index
    %c0_364 = arith.constant 0 : index
    %c0_365 = arith.constant 0 : index
    %332 = vector.load %arg8[%c16_363, %c0_364, %c0_365] : memref<20x40x8xf32, #tpu.memory_space<vmem>>, vector<1x40x8xf32>
    %333 = vector.shape_cast %332 : vector<1x40x8xf32> to vector<40x8xf32>
    %cst_366 = arith.constant dense<0.000000e+00> : vector<16x8xf32>
    %334 = tpu.matmul %331, %333, %cst_366 {dimension_numbers = #tpu.dot_dimension_numbers<[1], [0], [0], [1], [0, 0, 1, 1], [], []>} : vector<16x40xf32>, vector<40x8xf32>, vector<16x8xf32> -> vector<16x8xf32>
    %335 = arith.addf %330, %334 : vector<16x8xf32>
    %c17_367 = arith.constant 17 : index
    %c0_368 = arith.constant 0 : index
    %336 = vector.load %arg14[%c17_367, %c0_368] : memref<35x40xf32, #tpu.memory_space<vmem>>, vector<16x40xf32>
    %c17_369 = arith.constant 17 : index
    %c0_370 = arith.constant 0 : index
    %c0_371 = arith.constant 0 : index
    %337 = vector.load %arg8[%c17_369, %c0_370, %c0_371] : memref<20x40x8xf32, #tpu.memory_space<vmem>>, vector<1x40x8xf32>
    %338 = vector.shape_cast %337 : vector<1x40x8xf32> to vector<40x8xf32>
    %cst_372 = arith.constant dense<0.000000e+00> : vector<16x8xf32>
    %339 = tpu.matmul %336, %338, %cst_372 {dimension_numbers = #tpu.dot_dimension_numbers<[1], [0], [0], [1], [0, 0, 1, 1], [], []>} : vector<16x40xf32>, vector<40x8xf32>, vector<16x8xf32> -> vector<16x8xf32>
    %340 = arith.addf %335, %339 : vector<16x8xf32>
    %c18_373 = arith.constant 18 : index
    %c0_374 = arith.constant 0 : index
    %341 = vector.load %arg14[%c18_373, %c0_374] : memref<35x40xf32, #tpu.memory_space<vmem>>, vector<16x40xf32>
    %c18_375 = arith.constant 18 : index
    %c0_376 = arith.constant 0 : index
    %c0_377 = arith.constant 0 : index
    %342 = vector.load %arg8[%c18_375, %c0_376, %c0_377] : memref<20x40x8xf32, #tpu.memory_space<vmem>>, vector<1x40x8xf32>
    %343 = vector.shape_cast %342 : vector<1x40x8xf32> to vector<40x8xf32>
    %cst_378 = arith.constant dense<0.000000e+00> : vector<16x8xf32>
    %344 = tpu.matmul %341, %343, %cst_378 {dimension_numbers = #tpu.dot_dimension_numbers<[1], [0], [0], [1], [0, 0, 1, 1], [], []>} : vector<16x40xf32>, vector<40x8xf32>, vector<16x8xf32> -> vector<16x8xf32>
    %345 = arith.addf %340, %344 : vector<16x8xf32>
    %c19_379 = arith.constant 19 : index
    %c0_380 = arith.constant 0 : index
    %346 = vector.load %arg14[%c19_379, %c0_380] : memref<35x40xf32, #tpu.memory_space<vmem>>, vector<16x40xf32>
    %c19_381 = arith.constant 19 : index
    %c0_382 = arith.constant 0 : index
    %c0_383 = arith.constant 0 : index
    %347 = vector.load %arg8[%c19_381, %c0_382, %c0_383] : memref<20x40x8xf32, #tpu.memory_space<vmem>>, vector<1x40x8xf32>
    %348 = vector.shape_cast %347 : vector<1x40x8xf32> to vector<40x8xf32>
    %cst_384 = arith.constant dense<0.000000e+00> : vector<16x8xf32>
    %349 = tpu.matmul %346, %348, %cst_384 {dimension_numbers = #tpu.dot_dimension_numbers<[1], [0], [0], [1], [0, 0, 1, 1], [], []>} : vector<16x40xf32>, vector<40x8xf32>, vector<16x8xf32> -> vector<16x8xf32>
    %350 = arith.addf %345, %349 : vector<16x8xf32>
    %c0_385 = arith.constant 0 : index
    %c0_386 = arith.constant 0 : index
    %c0_387 = arith.constant 0 : index
    %351 = vector.load %arg10[%c0_385, %c0_386, %c0_387] : memref<1x16x8xf32, #tpu.memory_space<vmem>>, vector<1x16x8xf32>
    %352 = vector.shape_cast %351 : vector<1x16x8xf32> to vector<16x8xf32>
    %353 = vector.shape_cast %350 : vector<16x8xf32> to vector<1x16x8xf32>
    tpu.vector_store %arg10[%c0_385, %c0_386, %c0_387], %353 {strides = array<i32>} : memref<1x16x8xf32, #tpu.memory_space<vmem>>, vector<1x16x8xf32>,
    return
  }
  func.func @transform_0(%arg0: i32) -> (i32, i32, i32) {
    %c0_i32 = arith.constant 0 : i32
    %c0_i32_0 = arith.constant 0 : i32
    %c0_i32_1 = arith.constant 0 : i32
    return %arg0, %c0_i32, %c0_i32_0 : i32, i32, i32
  }
  func.func @transform_1(%arg0: i32) -> (i32, i32, i32) {
    %c0_i32 = arith.constant 0 : i32
    %c0_i32_0 = arith.constant 0 : i32
    %c0_i32_1 = arith.constant 0 : i32
    %c0_i32_2 = arith.constant 0 : i32
    return %c0_i32, %c0_i32_0, %c0_i32_1 : i32, i32, i32
  }
  func.func @transform_2(%arg0: i32) -> (i32, i32) {
    %c0_i32 = arith.constant 0 : i32
    %c0_i32_0 = arith.constant 0 : i32
    %c0_i32_1 = arith.constant 0 : i32
    return %c0_i32, %c0_i32_0 : i32, i32
  }
  func.func @transform_3(%arg0: i32) -> (i32, i32, i32) {
    %c0_i32 = arith.constant 0 : i32
    %c0_i32_0 = arith.constant 0 : i32
    %c0_i32_1 = arith.constant 0 : i32
    %c0_i32_2 = arith.constant 0 : i32
    return %c0_i32, %c0_i32_0, %c0_i32_1 : i32, i32, i32
  }
  func.func @transform_4(%arg0: i32) -> (i32, i32) {
    %c0_i32 = arith.constant 0 : i32
    %c0_i32_0 = arith.constant 0 : i32
    %c0_i32_1 = arith.constant 0 : i32
    return %c0_i32, %c0_i32_0 : i32, i32
  }
  func.func @transform_5(%arg0: i32) -> (i32, i32, i32) {
    %c0_i32 = arith.constant 0 : i32
    %c0_i32_0 = arith.constant 0 : i32
    %c0_i32_1 = arith.constant 0 : i32
    %c0_i32_2 = arith.constant 0 : i32
    return %c0_i32, %c0_i32_0, %c0_i32_1 : i32, i32, i32
  }
  func.func @transform_6(%arg0: i32) -> (i32, i32) {
    %c0_i32 = arith.constant 0 : i32
    %c0_i32_0 = arith.constant 0 : i32
    %c0_i32_1 = arith.constant 0 : i32
    return %c0_i32, %c0_i32_0 : i32, i32
  }
  func.func @transform_7(%arg0: i32) -> (i32, i32, i32) {
    %c0_i32 = arith.constant 0 : i32
    %c0_i32_0 = arith.constant 0 : i32
    %c0_i32_1 = arith.constant 0 : i32
    %c0_i32_2 = arith.constant 0 : i32
    return %c0_i32, %c0_i32_0, %c0_i32_1 : i32, i32, i32
  }
  func.func @transform_8(%arg0: i32) -> (i32, i32) {
    %c0_i32 = arith.constant 0 : i32
    %c0_i32_0 = arith.constant 0 : i32
    %c0_i32_1 = arith.constant 0 : i32
    return %c0_i32, %c0_i32_0 : i32, i32
  }
  func.func @transform_9(%arg0: i32) -> (i32, i32, i32) {
    %c0_i32 = arith.constant 0 : i32
    %c0_i32_0 = arith.constant 0 : i32
    %c0_i32_1 = arith.constant 0 : i32
    return %arg0, %c0_i32, %c0_i32_0 : i32, i32, i32
  }
}

</mosaic_0001>

<bundles_post_ra>
// kernel: tcn_module_forward.1
= control target key start
LH: loop header
LB: loop body
LE: loop exit
PB: predicated region body
PF: predicated region fallthrough
CT: control target
= control target key end

     0   :  { %s9147_s30 = smov 0   ;;  %s10495_s0 = inlined_call_operand.vmem [shape: f32[2,16,8], index: 0, kind: input, shape index: {}]   ;;  %s10496_s1 = inlined_call_operand.vmem [shape: f32[10,8,80], index: 1, kind: input, shape index: {}]   ;;  %s10497_s2 = inlined_call_operand.vmem [shape: f32[1,80], index: 2, kind: input, shape index: {}]   ;;  %s10498_s3 = inlined_call_operand.vmem [shape: f32[20,80,16], index: 3, kind: input, shape index: {}]   ;;  %s10499_s4 = inlined_call_operand.vmem [shape: f32[1,16], index: 4, kind: input, shape index: {}]   ;;  %s10500_s5 = inlined_call_operand.vmem [shape: f32[10,16,40], index: 5, kind: input, shape index: {}]   ;;  %s10501_s6 = inlined_call_operand.vmem [shape: f32[1,40], index: 6, kind: input, shape index: {}]   ;;  %s10502_s7 = inlined_call_operand.vmem [shape: f32[20,40,8], index: 7, kind: input, shape index: {}]   ;;  %s10503_s8 = inlined_call_operand.vmem [shape: f32[1,8], index: 8, kind: input, shape index: {}]   ;;  %s10504_s9 = inlined_call_operand.vmem [shape: f32[2,16,8], index: 9, kind: output, shape index: {}]  }
   0x1 LB: > { %s6400_s10 = sadd.s32 4294967295, %s9094_s30   ;;  %p6404_p0 = scmp.ge.s32.totalorder %s9094_s30, 1  ;;  %s9094_s30 = sphi %s9147_s30, %s19_s30  }
   0x2   : > { %p287_p1 = scmp.lt.s32.totalorder %s9094_s30, 3 }
   0x4   : > { %p288_p2 = pnand %p6404_p0, %p287_p1 }
   0x5   : > { %v354_v0 = vld [vmem:[%s10496_s1] sm:$0xff] (!%p288_p2)  ;;  %vm333_vm0 = vcmask (!%p288_p2), 64512   ;;  %p323_p3 = scmp.lt.s32.totalorder (!%p288_p2), %s6400_s10, 1  ;;  %vm335_vm1 = vcmask (!%p288_p2), 58368   ;;  %v6414_v1 = vld [vmem:[%s10496_s1 + $0x8] sm:$0xff] (!%p288_p2)  ;;  %v9096_v2 = vmov (!%p288_p2), 0.0  }
   0x6   : > { %291 = sbr.rel (%p288_p2) target bundleno = 1691 (0x69b), region = 56  ;;  %7379 = vmatprep.subr.mxu0 (!%p288_p2), %v354_v0  ;;  %334 = vst.msk [vmem:[#allocation2] sm:$0xff] (!%p288_p2), %vm333_vm0, %v9096_v2  ;;  %337 = vst.msk [vmem:[#allocation2 + $0x1a] sm:$0xff] (!%p288_p2), %vm333_vm0, %v9096_v2  ;;  %v6419_v8 = vld [vmem:[%s10496_s1 + $0x10] sm:$0xff] (!%p288_p2)  ;;  %v6424_v13 = vld [vmem:[%s10496_s1 + $0x18] sm:$0xff] (!%p288_p2)  ;;  %vm1443_vm2 = vcmask (!%p288_p2), 650240  }
   0x7   : > { %336 = vst.msk [vmem:[#allocation2 + $0x8] sm:$0x3] (!%p288_p2), %vm335_vm1, %v9096_v2  ;;  %338 = vst.msk [vmem:[#allocation2 + $0x22] sm:$0x3] (!%p288_p2), %vm335_vm1, %v9096_v2  ;;  %7380 = vmatpush3.msra.mxu0 (!%p288_p2), %v354_v0  ;;  %v6429_v18 = vld [vmem:[%s10496_s1 + $0x20] sm:$0xff] (!%p288_p2)  ;;  %v6434_v23 = vld [vmem:[%s10496_s1 + $0x28] sm:$0xff] (!%p288_p2) }
   0x8   : > { %7387 = vmatprep.subr.mxu0 (!%p288_p2), %v6414_v1  ;;  %v6439_v28 = vld [vmem:[%s10496_s1 + $0x30] sm:$0xff] (!%p288_p2)  ;;  %v6444_v33 = vld [vmem:[%s10496_s1 + $0x38] sm:$0xff] (!%p288_p2)  ;;  %v6449_v38 = vld [vmem:[%s10496_s1 + $0x40] sm:$0xff] (!%p288_p2)  ;;  %1444 = vst.msk [vmem:[#allocation3] sm:$0xf] (!%p288_p2), %vm1443_vm2, %v9096_v2  ;;  %vm1446_vm3 = vcmask (!%p288_p2), 654336  }
   0x9   : > { %v6454_v43 = vld [vmem:[%s10496_s1 + $0x48] sm:$0xff] (!%p288_p2)  ;;  %v6462_v49 = vld [vmem:[%s10498_s3 + $0x50] sm:$0xff] (!%p288_p2)  ;;  %v6463_v50 = vld [vmem:[%s10498_s3 + $0x58] sm:$0xff] (!%p288_p2)  ;;  %1445 = vst.msk [vmem:[#allocation3 + $0x1f] sm:$0xf] (!%p288_p2), %vm1443_vm2, %v9096_v2  ;;  %vm1450_vm4 = vcmask (!%p288_p2), 649216  }
   0xa   : > { %v8299_v51 = vpack.c.bf16 (!%p288_p2), %v6463_v50, %v6462_v49  ;;  %v1461_v52 = vld [vmem:[%s10498_s3] sm:$0xff] (!%p288_p2)  ;;  %v1462_v53 = vld [vmem:[%s10498_s3 + $0x8] sm:$0xff] (!%p288_p2)  ;;  %v1463_v58 = vld [vmem:[%s10498_s3 + $0x10] sm:$0xff] (!%p288_p2)  ;;  %vm3390_vm5 = vcmask (!%p288_p2), 130048   ;;  %vm3392_vm6 = vcmask (!%p288_p2), 123904   ;;  %vm4508_vm7 = vcmask (!%p288_p2), 322560  }
   0xb   : > { %v8279_v54 = vpack.c.bf16 (!%p288_p2), %v1462_v53, %v1461_v52  ;;  %v6464_v55 = vld [vmem:[%s10498_s3 + $0x60] sm:$0xff] (!%p288_p2)  ;;  %v6465_v56 = vld [vmem:[%s10498_s3 + $0x68] sm:$0xff] (!%p288_p2)  ;;  %v1464_v59 = vld [vmem:[%s10498_s3 + $0x18] sm:$0xff] (!%p288_p2)  ;;  %3391 = vst.msk [vmem:[#allocation4] sm:$0xff] (!%p288_p2), %vm3390_vm5, %v9096_v2  ;;  %vm4511_vm8 = vcmask (!%p288_p2), 326656   ;;  %vm4515_vm9 = vcmask (!%p288_p2), 321536  }
   0xc   : > { %8300 = vmatprep.subr.bf16.mxu1 (!%p288_p2), %v8299_v51  ;;  %v8303_v57 = vpack.c.bf16 (!%p288_p2), %v6465_v56, %v6464_v55  ;;  %v8283_v60 = vpack.c.bf16 (!%p288_p2), %v1464_v59, %v1463_v58  ;;  %v6466_v61 = vld [vmem:[%s10498_s3 + $0x70] sm:$0xff] (!%p288_p2)  ;;  %v6467_v62 = vld [vmem:[%s10498_s3 + $0x78] sm:$0xff] (!%p288_p2)  ;;  %v1465_v0 = vld [vmem:[%s10498_s3 + $0x20] sm:$0xff] (!%p288_p2)  ;;  %3394 = vst.msk [vmem:[#allocation4 + $0x1a] sm:$0xff] (!%p288_p2), %vm3390_vm5, %v9096_v2 }
   0xd   : > { %s10506_s10 = smov (!%p323_p3, %s6400_s10), 1  ;;  %v350_v5 = vld [vmem:[#allocation2] sm:$0xff]  ;;  %v566_v19 = vld [vmem:[#allocation2 + $0x1a] sm:$0x7]  ;;  %v887_v34 = vld [vmem:[#allocation2 + $0x1d] sm:$0x7]  ;;  %8302 = vmatpush3.bf16.msra.mxu1 %v8299_v51  ;;  %v8307_v63 = vpack.c.bf16 %v6467_v62, %v6466_v61 }
   0xe   : > { %s6887_s15 = sshll.u32 %s10506_s10, 4  ;;  %7381 = vmatprep.mubr.msk.f32.mxu0 %vm333_vm0, %v350_v5  ;;  %v456_v10 = vld [vmem:[#allocation2 + $0x1] sm:$0xff]  ;;  %v673_v24 = vld [vmem:[#allocation2 + $0x1b] sm:$0x7]  ;;  %v994_v39 = vld [vmem:[#allocation2 + $0x1e] sm:$0x7]  ;;  %8304 = vmatprep.subr.bf16.mxu1 %v8303_v57 }
   0xf   : > { %s327_s18 = scalar_lea.vmem %s10495_s0, %s6887_s15  ;;  %v563_v15 = vld [vmem:[#allocation2 + $0x2] sm:$0xff]  ;;  %v780_v29 = vld [vmem:[#allocation2 + $0x1c] sm:$0x7]  ;;  %v1101_v44 = vld [vmem:[#allocation2 + $0x1f] sm:$0x7]  ;;  %s332_s19 = scalar_lea.vmem %s10504_s9, %s6887_s15 }
  0x10   : > { %v339_v3 = vld [vmem:[%s327_s18] sm:$0xff]  ;;  %v340_v4 = vld [vmem:[%s327_s18 + $0x8] sm:$0xff]  ;;  %v6477_v49 = vld [vmem:[%s10498_s3 + $0xb8] sm:$0xff]  ;;  %3393 = vst.msk [vmem:[#allocation4 + $0x8] sm:$0x3] %vm3392_vm6, %v9096_v2 }
  0x11   : > { %341 = vst.msk [vmem:[#allocation2 + $0xa] sm:$0xff] %vm333_vm0, %v339_v3  ;;  %342 = vst.msk [vmem:[#allocation2 + $0x12] sm:$0xff] %vm333_vm0, %v340_v4  ;;  %v1208_v46 = vld [vmem:[#allocation2 + $0x20] sm:$0x7]  ;;  %8306 = vmatpush3.bf16.msra.mxu1 %v8303_v57  ;;  %v6469_v5 = vld [vmem:[%s10498_s3 + $0x88] sm:$0xff] }
  0x12   : > { %v1315_v48 = vld [vmem:[#allocation2 + $0x21] sm:$0x7]  ;;  %8308 = vmatprep.subr.bf16.mxu1 %v8307_v63  ;;  %v6479_v56 = vld [vmem:[%s10498_s3 + $0xc8] sm:$0xff]  ;;  %v6480_v59 = vld [vmem:[%s10498_s3 + $0xd0] sm:$0xff]  ;;  %3395 = vst.msk [vmem:[#allocation4 + $0x22] sm:$0x3] %vm3392_vm6, %v9096_v2 }
  0x13   : > { %v6468_v4 = vld [vmem:[%s10498_s3 + $0x80] sm:$0xff]  ;;  %4509 = vst.msk [vmem:[#allocation5] sm:$0xf] %vm4508_vm7, %v9096_v2  ;;  %4510 = vst.msk [vmem:[#allocation5 + $0x1f] sm:$0xf] %vm4508_vm7, %v9096_v2 }
  0x14   : > { %v6478_v55 = vld [vmem:[%s10498_s3 + $0xc0] sm:$0xff] }
  0x15   : > { %8310 = vmatpush3.bf16.msra.mxu1 %v8307_v63  ;;  %v8327_v58 = vpack.c.bf16 %v6479_v56, %v6478_v55  ;;  %v6482_v62 = vld [vmem:[%s10498_s3 + $0xe0] sm:$0xff]  ;;  %v6483_v63 = vld [vmem:[%s10498_s3 + $0xe8] sm:$0xff] }
  0x16   : > { %v6522_v55 = vld [vmem:[%s10498_s3 + $0x1e0] sm:$0xff]  ;;  %v6523_v56 = vld [vmem:[%s10498_s3 + $0x1e8] sm:$0xff] }
  0x17   : > { %v6690_v2 = vld [vmem:[%s10501_s6] ss:$0 sm:$0xff] }
  0x18   : > { %v9178_v6 = vld [vmem:[#allocation2 + $0x8] sm:$0xff]  ;;  %v9180_v7 = vld [vmem:[#allocation2 + $0x10] sm:$0xff]  ;;  %v353_v9 = vld [vmem:[#allocation2 + $0x18] sm:$0x7] }
  0x19   : > { %7382 = vmatmul.mubr.msk.f32.vlgmr.msra.gmra.mrb[0].mxu0 %vm333_vm0, %v9178_v6  ;;  %v9191_v11 = vld [vmem:[#allocation2 + $0x9] sm:$0xff]  ;;  %v9193_v12 = vld [vmem:[#allocation2 + $0x11] sm:$0xff]  ;;  %v459_v14 = vld [vmem:[#allocation2 + $0x19] sm:$0x7] }
  0x1a   : > { %7388 = vmatpush3.msra.mxu0 %v6414_v1  ;;  %7384 = vmatprep.mubr.msk.f32.mxu0 %vm333_vm0, %v9180_v7  ;;  %v564_v16 = vld [vmem:[#allocation2 + $0xa] sm:$0xff]  ;;  %v565_v17 = vld [vmem:[#allocation2 + $0x12] sm:$0xff] }
  0x1b   : > { %7395 = vmatprep.subr.mxu0 %v6419_v8  ;;  %v670_v20 = vld [vmem:[#allocation2 + $0x3] sm:$0xff]  ;;  %v671_v21 = vld [vmem:[#allocation2 + $0xb] sm:$0xff]  ;;  %v672_v22 = vld [vmem:[#allocation2 + $0x13] sm:$0xff] }
  0x1c   : > { %v777_v25 = vld [vmem:[#allocation2 + $0x4] sm:$0xff]  ;;  %v778_v26 = vld [vmem:[#allocation2 + $0xc] sm:$0xff]  ;;  %v779_v27 = vld [vmem:[#allocation2 + $0x14] sm:$0xff] }
  0x1d   : > { %7385 = vmatmul.mubr.msk.f32.gmra.mrb[2].mxu0 %vm333_vm0, %v353_v9  ;;  %v884_v30 = vld [vmem:[#allocation2 + $0x5] sm:$0xff]  ;;  %v885_v31 = vld [vmem:[#allocation2 + $0xd] sm:$0xff]  ;;  %v886_v32 = vld [vmem:[#allocation2 + $0x15] sm:$0xff] }
  0x1e   : > { %7389 = vmatprep.mubr.msk.f32.mxu0 %vm333_vm0, %v456_v10  ;;  %v991_v35 = vld [vmem:[#allocation2 + $0x6] sm:$0xff]  ;;  %v992_v36 = vld [vmem:[#allocation2 + $0xe] sm:$0xff]  ;;  %v993_v37 = vld [vmem:[#allocation2 + $0x16] sm:$0xff] }
  0x1f   : > { %v1098_v40 = vld [vmem:[#allocation2 + $0x7] sm:$0xff]  ;;  %v1099_v41 = vld [vmem:[#allocation2 + $0xf] sm:$0xff]  ;;  %v1100_v42 = vld [vmem:[#allocation2 + $0x17] sm:$0xff] }
  0x20   : > { %v1207_v45 = vld [vmem:[#allocation2 + $0x18] sm:$0xff]  ;;  %v1466_v1 = vld [vmem:[%s10498_s3 + $0x28] sm:$0xff]  ;;  %v6470_v10 = vld [vmem:[%s10498_s3 + $0x90] sm:$0xff] }
  0x21   : > { %7390 = vmatmul.mubr.msk.f32.vlgmr.msra.gmra.mrb[0].mxu0 %vm333_vm0, %v9191_v11  ;;  %v1314_v47 = vld [vmem:[#allocation2 + $0x19] sm:$0xff]  ;;  %v8287_v3 = vpack.c.bf16 %v1466_v1, %v1465_v0  ;;  %v8335_v0 = vpack.c.bf16 %v6483_v63, %v6482_v62  ;;  %v6486_v1 = vld [vmem:[%s10498_s3 + $0xf0] sm:$0xff]  ;;  %v6527_v63 = vld [vmem:[%s10498_s3 + $0x208] sm:$0xff] }
  0x22   : > { %7396 = vmatpush3.msra.mxu0 %v6419_v8  ;;  %7392 = vmatprep.mubr.msk.f32.mxu0 %vm333_vm0, %v9193_v12  ;;  %v1468_v8 = vld [vmem:[%s10498_s3 + $0x38] sm:$0xff]  ;;  %v6526_v62 = vld [vmem:[%s10498_s3 + $0x200] sm:$0xff] }
  0x23   : > { %7403 = vmatprep.subr.mxu0 %v6424_v13 }
  0x25   : > { %7393 = vmatmul.mubr.msk.f32.gmra.mrb[2].mxu0 %vm333_vm0, %v459_v14  ;;  %v1470_v14 = vld [vmem:[%s10498_s3 + $0x48] sm:$0xff] }
  0x26   : > { %7397 = vmatprep.mubr.msk.f32.mxu0 %vm333_vm0, %v563_v15 }
  0x29   : > { %7398 = vmatmul.mubr.msk.f32.vlgmr.msra.gmra.mrb[0].mxu0 %vm333_vm0, %v564_v16  ;;  %v6474_v16 = vld [vmem:[%s10498_s3 + $0xa0] sm:$0xff] }
  0x2a   : > { %7404 = vmatpush3.msra.mxu0 %v6424_v13  ;;  %7400 = vmatprep.mubr.msk.f32.mxu0 %vm333_vm0, %v565_v17  ;;  %v1469_v13 = vld [vmem:[%s10498_s3 + $0x40] sm:$0xff]  ;;  %v6475_v17 = vld [vmem:[%s10498_s3 + $0xa8] sm:$0xff] }
  0x2b   : > { %7411 = vmatprep.subr.mxu0 %v6429_v18  ;;  %v8295_v15 = vpack.c.bf16 %v1470_v14, %v1469_v13  ;;  %v6492_v13 = vld [vmem:[%s10498_s3 + $0x120] sm:$0xff]  ;;  %v6493_v14 = vld [vmem:[%s10498_s3 + $0x128] sm:$0xff] }
  0x2d   : > { %7401 = vmatmul.mubr.msk.f32.gmra.mrb[2].mxu0 %vm333_vm0, %v566_v19  ;;  %v6409_v19 = vld [vmem:[%s10497_s2] ss:$0 sm:$0xff] }
  0x2e   : > { %7405 = vmatprep.mubr.msk.f32.mxu0 %vm333_vm0, %v670_v20 }
  0x31   : > { %7406 = vmatmul.mubr.msk.f32.vlgmr.msra.gmra.mrb[0].mxu0 %vm333_vm0, %v671_v21 }
  0x32   : > { %7412 = vmatpush3.msra.mxu0 %v6429_v18  ;;  %7408 = vmatprep.mubr.msk.f32.mxu0 %vm333_vm0, %v672_v22  ;;  %v8319_v18 = vpack.c.bf16 %v6475_v17, %v6474_v16  ;;  %v6494_v16 = vld [vmem:[%s10498_s3 + $0x130] sm:$0xff]  ;;  %v6495_v17 = vld [vmem:[%s10498_s3 + $0x138] sm:$0xff] }
  0x33   : > { %7419 = vmatprep.subr.mxu0 %v6434_v23 }
  0x35   : > { %7409 = vmatmul.mubr.msk.f32.gmra.mrb[2].mxu0 %vm333_vm0, %v673_v24 }
  0x36   : > { %7413 = vmatprep.mubr.msk.f32.mxu0 %vm333_vm0, %v777_v25 }
  0x39   : > { %7414 = vmatmul.mubr.msk.f32.vlgmr.msra.gmra.mrb[0].mxu0 %vm333_vm0, %v778_v26 }
  0x3a   : > { %7420 = vmatpush3.msra.mxu0 %v6434_v23  ;;  %7416 = vmatprep.mubr.msk.f32.mxu0 %vm333_vm0, %v779_v27 }
  0x3b   : > { %7427 = vmatprep.subr.mxu0 %v6439_v28 }
  0x3d   : > { %7417 = vmatmul.mubr.msk.f32.gmra.mrb[2].mxu0 %vm333_vm0, %v780_v29 }
  0x3e   : > { %7421 = vmatprep.mubr.msk.f32.mxu0 %vm333_vm0, %v884_v30 }
  0x41   : > { %7422 = vmatmul.mubr.msk.f32.vlgmr.msra.gmra.mrb[0].mxu0 %vm333_vm0, %v885_v31 }
  0x42   : > { %7428 = vmatpush3.msra.mxu0 %v6439_v28  ;;  %7424 = vmatprep.mubr.msk.f32.mxu0 %vm333_vm0, %v886_v32 }
  0x43   : > { %7435 = vmatprep.subr.mxu0 %v6444_v33 }
  0x45   : > { %7425 = vmatmul.mubr.msk.f32.gmra.mrb[2].mxu0 %vm333_vm0, %v887_v34 }
  0x46   : > { %7429 = vmatprep.mubr.msk.f32.mxu0 %vm333_vm0, %v991_v35 }
  0x49   : > { %7430 = vmatmul.mubr.msk.f32.vlgmr.msra.gmra.mrb[0].mxu0 %vm333_vm0, %v992_v36 }
  0x4a   : > { %7436 = vmatpush3.msra.mxu0 %v6444_v33  ;;  %7432 = vmatprep.mubr.msk.f32.mxu0 %vm333_vm0, %v993_v37 }
  0x4b   : > { %7443 = vmatprep.subr.mxu0 %v6449_v38 }
  0x4d   : > { %7433 = vmatmul.mubr.msk.f32.gmra.mrb[2].mxu0 %vm333_vm0, %v994_v39 }
  0x4e   : > { %7437 = vmatprep.mubr.msk.f32.mxu0 %vm333_vm0, %v1098_v40 }
  0x51   : > { %7438 = vmatmul.mubr.msk.f32.vlgmr.msra.gmra.mrb[0].mxu0 %vm333_vm0, %v1099_v41 }
  0x52   : > { %7444 = vmatpush3.msra.mxu0 %v6449_v38  ;;  %7440 = vmatprep.mubr.msk.f32.mxu0 %vm333_vm0, %v1100_v42 }
  0x53   : > { %7451 = vmatprep.subr.mxu0 %v6454_v43 }
  0x55   : > { %7441 = vmatmul.mubr.msk.f32.gmra.mrb[2].mxu0 %vm333_vm0, %v1101_v44 }
  0x56   : > { %7445 = vmatprep.mubr.msk.f32.mxu0 %vm333_vm0, %v9178_v6  ;;  %v8311_v6 = vpack.c.bf16 %v6469_v5, %v6468_v4  ;;  %v6488_v5 = vld [vmem:[%s10498_s3 + $0x100] sm:$0xff] }
  0x58   : > { %8312 = vmatprep.subr.bf16.mxu1 %v8311_v6 }
  0x59   : > { %7446 = vmatmul.mubr.msk.f32.vlgmr.msra.gmra.mrb[0].mxu0 %vm333_vm0, %v9180_v7  ;;  %v1467_v7 = vld [vmem:[%s10498_s3 + $0x30] sm:$0xff]  ;;  %8314 = vmatpush3.bf16.msra.mxu1 %v8311_v6  ;;  %v6489_v6 = vld [vmem:[%s10498_s3 + $0x108] sm:$0xff] }
  0x5a   : > { %7452 = vmatpush3.msra.mxu0 %v6454_v43  ;;  %7448 = vmatprep.mubr.msk.f32.mxu0 %vm333_vm0, %v1207_v45  ;;  %v8291_v9 = vpack.c.bf16 %v1468_v8, %v1467_v7  ;;  %v8343_v7 = vpack.c.bf16 %v6489_v6, %v6488_v5  ;;  %v6530_v6 = vld [vmem:[%s10498_s3 + $0x220] sm:$0xff] }
  0x5b   : > { %8280 = vmatprep.subr.bf16.mxu0 %v8279_v54 }
  0x5d   : > { %7449 = vmatmul.mubr.msk.f32.gmra.mrb[2].mxu0 %vm333_vm0, %v1208_v46 }
  0x5e   : > { %7453 = vmatprep.mubr.msk.f32.mxu0 %vm333_vm0, %v9191_v11  ;;  %v6471_v11 = vld [vmem:[%s10498_s3 + $0x98] sm:$0xff] }
  0x61   : > { %7454 = vmatmul.mubr.msk.f32.vlgmr.msra.gmra.mrb[0].mxu0 %vm333_vm0, %v9193_v12  ;;  %v8315_v12 = vpack.c.bf16 %v6471_v11, %v6470_v10  ;;  %v6491_v10 = vld [vmem:[%s10498_s3 + $0x118] sm:$0xff] }
  0x62   : > { %7456 = vmatprep.mubr.msk.f32.mxu0 %vm333_vm0, %v1314_v47  ;;  %8282 = vmatpush3.bf16.msra.mxu0 %v8279_v54 }
  0x63   : > { %8284 = vmatprep.subr.bf16.mxu0 %v8283_v60  ;;  %8316 = vmatprep.subr.bf16.mxu1 %v8315_v12 }
  0x64   : > { %8318 = vmatpush3.bf16.msra.mxu1 %v8315_v12 }
  0x65   : > { %7457 = vmatmul.mubr.msk.f32.gmra.mrb[2].mxu0 %vm333_vm0, %v1315_v48  ;;  %8320 = vmatprep.subr.bf16.mxu1 %v8319_v18  ;;  %v6476_v48 = vld [vmem:[%s10498_s3 + $0xb0] sm:$0xff] }
  0x66   : > { %8286 = vmatpush3.bf16.msra.mxu0 %v8283_v60  ;;  %v8323_v53 = vpack.c.bf16 %v6477_v49, %v6476_v48  ;;  %v6481_v60 = vld [vmem:[%s10498_s3 + $0xd8] sm:$0xff]  ;;  %v6517_v48 = vld [vmem:[%s10498_s3 + $0x1c8] sm:$0xff] }
  0x67   : > { %8288 = vmatprep.subr.bf16.mxu0 %v8287_v3  ;;  %v8331_v61 = vpack.c.bf16 %v6481_v60, %v6480_v59  ;;  %v6525_v59 = vld [vmem:[%s10498_s3 + $0x1f8] sm:$0xff] }
  0x6a   : > { %8290 = vmatpush3.bf16.msra.mxu0 %v8287_v3  ;;  %v6487_v3 = vld [vmem:[%s10498_s3 + $0xf8] sm:$0xff] }
  0x6b   : > { %8292 = vmatprep.subr.bf16.mxu0 %v8291_v9  ;;  %v8339_v4 = vpack.c.bf16 %v6487_v3, %v6486_v1  ;;  %v8407_v1 = vpack.c.bf16 %v6527_v63, %v6526_v62  ;;  %v6528_v3 = vld [vmem:[%s10498_s3 + $0x210] sm:$0xff]  ;;  %v6570_v62 = vld [vmem:[%s10498_s3 + $0x320] sm:$0xff]  ;;  %v6571_v63 = vld [vmem:[%s10498_s3 + $0x328] sm:$0xff] }
  0x6e   : > { %8294 = vmatpush3.bf16.msra.mxu0 %v8291_v9  ;;  %v6490_v9 = vld [vmem:[%s10498_s3 + $0x110] sm:$0xff] }
  0x6f   : > { %8296 = vmatprep.subr.bf16.mxu0 %v8295_v15  ;;  %v8347_v12 = vpack.c.bf16 %v6491_v10, %v6490_v9  ;;  %v6534_v10 = vld [vmem:[%s10498_s3 + $0x230] sm:$0xff] }
  0x72   : > { %8298 = vmatpush3.bf16.msra.mxu0 %v8295_v15  ;;  %v8351_v15 = vpack.c.bf16 %v6493_v14, %v6492_v13  ;;  %v6536_v13 = vld [vmem:[%s10498_s3 + $0x240] sm:$0xff]  ;;  %v6537_v14 = vld [vmem:[%s10498_s3 + $0x248] sm:$0xff] }
 0x134   : > { %v7455_v20 = vpop.f32.mrb[0].mxu0 }
 0x135   : > { %v8879_v21 = vadd.f32 %v7455_v20, %v6409_v19  ;;  %v1396_v22 = vpop.f32.mrb[1].mxu0  ;;  %v6499_v20 = vld [vmem:[%s10498_s3 + $0x148] sm:$0xff] }
 0x136   : > { %v8880_v23 = vadd.f32 %v6409_v19, %v1396_v22  ;;  %v6500_v22 = vld [vmem:[%s10498_s3 + $0x150] sm:$0xff] }
 0x137   : > { %v1420_v24 = vsub.f32 0.0, %v8879_v21 }
 0x138   : > { %v1419_v25 = vsub.f32 0.0, %v8880_v23  ;;  %v7458_v26 = vpop.f32.mrb[2].mxu0  ;;  %v6501_v23 = vld [vmem:[%s10498_s3 + $0x158] sm:$0xff] }
 0x139   : > { %v1425_v27 = vmul.f32 1.442695, %v1420_v24  ;;  %v8881_v28 = vadd.f32 %v7458_v26, %v6409_v19  ;;  %v1406_v29 = vpop.f32.mrb[3].mxu0  ;;  %v8363_v24 = vpack.c.bf16 %v6501_v23, %v6500_v22  ;;  %v6502_v26 = vld [vmem:[%s10498_s3 + $0x160] sm:$0xff]  ;;  %v6541_v22 = vld [vmem:[%s10498_s3 + $0x268] sm:$0xff] }
 0x13a   : > { %v1423_v30 = vmul.f32 1.442695, %v1419_v25  ;;  %v8882_v31 = vadd.f32 %v6409_v19, %v1406_v29  ;;  %v6498_v19 = vld [vmem:[%s10498_s3 + $0x140] sm:$0xff] }
 0x13b   : > { %9048 = vpow2.f32 %v1425_v27  ;;  %v1422_v32 = vsub.f32 0.0, %v8881_v28  ;;  %v8359_v21 = vpack.c.bf16 %v6499_v20, %v6498_v19  ;;  %v6503_v27 = vld [vmem:[%s10498_s3 + $0x168] sm:$0xff] }
 0x13c   : > { %9050 = vpow2.f32 %v1423_v30  ;;  %v1421_v33 = vsub.f32 0.0, %v8882_v31  ;;  %v8367_v29 = vpack.c.bf16 %v6503_v27, %v6502_v26  ;;  %v6504_v30 = vld [vmem:[%s10498_s3 + $0x170] sm:$0xff]  ;;  %v6505_v31 = vld [vmem:[%s10498_s3 + $0x178] sm:$0xff] }
 0x13d   : > { %v1429_v34 = vmul.f32 1.442695, %v1422_v32  ;;  %v8371_v32 = vpack.c.bf16 %v6505_v31, %v6504_v30  ;;  %v6543_v26 = vld [vmem:[%s10498_s3 + $0x278] sm:$0xff]  ;;  %v6548_v31 = vld [vmem:[%s10498_s3 + $0x290] sm:$0xff] }
 0x13e   : > { %v1427_v35 = vmul.f32 1.442695, %v1421_v33  ;;  %v6506_v33 = vld [vmem:[%s10498_s3 + $0x180] sm:$0xff] }
 0x13f   : > { %9052 = vpow2.f32 %v1429_v34  ;;  %v6507_v34 = vld [vmem:[%s10498_s3 + $0x188] sm:$0xff] }
 0x140   : > { %9054 = vpow2.f32 %v1427_v35  ;;  %v8375_v35 = vpack.c.bf16 %v6507_v34, %v6506_v33 }
 0x145   : > { %v9049_v36 = vpop.eup %9048 }
 0x146   : > { %v9051_v37 = vpop.eup %9050  ;;  %v1432_v38 = vadd.f32 1.0, %v9049_v36  ;;  %v6510_v36 = vld [vmem:[%s10498_s3 + $0x190] sm:$0xff] }
 0x147   : > { %v1431_v39 = vadd.f32 1.0, %v9051_v37  ;;  %v6511_v37 = vld [vmem:[%s10498_s3 + $0x198] sm:$0xff] }
 0x148   : > { %9056 = vrcp.f32 %v1432_v38  ;;  %v8379_v38 = vpack.c.bf16 %v6511_v37, %v6510_v36  ;;  %v6551_v36 = vld [vmem:[%s10498_s3 + $0x2a8] sm:$0xff] }
 0x149   : > { %v9053_v40 = vpop.eup %9052  ;;  %9058 = vrcp.f32 %v1431_v39  ;;  %v6512_v39 = vld [vmem:[%s10498_s3 + $0x1a0] sm:$0xff] }
 0x14a   : > { %v9055_v41 = vpop.eup %9054  ;;  %v1434_v42 = vadd.f32 1.0, %v9053_v40  ;;  %v6513_v40 = vld [vmem:[%s10498_s3 + $0x1a8] sm:$0xff] }
 0x14b   : > { %v1433_v43 = vadd.f32 1.0, %v9055_v41  ;;  %v8383_v41 = vpack.c.bf16 %v6513_v40, %v6512_v39  ;;  %v6553_v39 = vld [vmem:[%s10498_s3 + $0x2b8] sm:$0xff] }
 0x14c   : > { %9060 = vrcp.f32 %v1434_v42 }
 0x14d   : > { %9062 = vrcp.f32 %v1433_v43  ;;  %v6514_v43 = vld [vmem:[%s10498_s3 + $0x1b0] sm:$0xff] }
 0x152   : > { %v9057_v44 = vpop.eup %9056 }
 0x153   : > { %v9059_v45 = vpop.eup %9058  ;;  %1448 = vst.msk [vmem:[#allocation3 + $0xc] sm:$0xff] %vm1446_vm3, %v9057_v44  ;;  %v6515_v44 = vld [vmem:[%s10498_s3 + $0x1b8] sm:$0xff] }
 0x154   : > { %1447 = vst.msk [vmem:[#allocation3 + $0x4] sm:$0xff] %vm1446_vm3, %v9059_v45 }
 0x156   : > { %v9061_v46 = vpop.eup %9060 }
 0x157   : > { %v9063_v47 = vpop.eup %9062  ;;  %1451 = vst.msk [vmem:[#allocation3 + $0x1c] sm:$0x7] %vm1450_vm4, %v9061_v46  ;;  %v8387_v46 = vpack.c.bf16 %v6515_v44, %v6514_v43  ;;  %v6558_v44 = vld [vmem:[%s10498_s3 + $0x2d0] sm:$0xff] }
 0x158   : > { %1449 = vst.msk [vmem:[#allocation3 + $0x14] sm:$0xff] %vm1446_vm3, %v9063_v47  ;;  %v6516_v47 = vld [vmem:[%s10498_s3 + $0x1c0] sm:$0xff] }
 0x159   : > { %v8391_v49 = vpack.c.bf16 %v6517_v48, %v6516_v47  ;;  %v6560_v47 = vld [vmem:[%s10498_s3 + $0x2e0] sm:$0xff]  ;;  %v6561_v48 = vld [vmem:[%s10498_s3 + $0x2e8] sm:$0xff] }
 0x15a   : > { %v9448_v42 = vld [vmem:[#allocation3 + $0xc] sm:$0xff] }
 0x15b   : > { %v1459_v50 = vld [vmem:[#allocation3] sm:$0xff]  ;;  %v9337_v52 = vld [vmem:[#allocation3 + $0x8] sm:$0xff] }
 0x15c   : > { %v1554_v51 = vld [vmem:[#allocation3 + $0x1] sm:$0xff]  ;;  %7479 = vmatprep.mubr.msk.f32.mxu0 %vm1446_vm3, %v1459_v50  ;;  %v9341_v54 = vld [vmem:[#allocation3 + $0x9] sm:$0xff] }
 0x15d   : > { %7502 = vmatprep.mubr.msk.f32.mxu1 %vm1446_vm3, %v1554_v51  ;;  %7480 = vmatmul.mubr.msk.f32.vlgmr.msra.gmra.mrb[4].mxu0 %vm1446_vm3, %v9337_v52  ;;  %v1650_v57 = vld [vmem:[#allocation3 + $0x2] sm:$0xff]  ;;  %v9378_v8 = vld [vmem:[#allocation3 + $0xa] sm:$0xff] }
 0x15e   : > { %7503 = vmatmul.mubr.msk.f32.vlgmr.msra.gmra.mrb[0].mxu1 %vm1446_vm3, %v9341_v54  ;;  %v1746_v11 = vld [vmem:[#allocation3 + $0x3] sm:$0xff]  ;;  %v9413_v25 = vld [vmem:[#allocation3 + $0xb] sm:$0xff] }
 0x15f   : > { %8322 = vmatpush3.bf16.msra.mxu1 %v8319_v18  ;;  %7525 = vmatprep.mubr.msk.f32.mxu1 %vm1446_vm3, %v1650_v57  ;;  %v8355_v18 = vpack.c.bf16 %v6495_v17, %v6494_v16  ;;  %v1842_v28 = vld [vmem:[#allocation3 + $0x4] sm:$0xff]  ;;  %v6519_v51 = vld [vmem:[%s10498_s3 + $0x1d8] sm:$0xff]  ;;  %v8399_v57 = vpack.c.bf16 %v6523_v56, %v6522_v55  ;;  %v6564_v56 = vld [vmem:[%s10498_s3 + $0x300] sm:$0xff] }
 0x160   : > { %8324 = vmatprep.subr.bf16.mxu1 %v8323_v53  ;;  %v1938_v45 = vld [vmem:[#allocation3 + $0x5] sm:$0xff]  ;;  %v9518_v16 = vld [vmem:[#allocation3 + $0xe] sm:$0xff] }
 0x161   : > { %v6518_v50 = vld [vmem:[%s10498_s3 + $0x1d0] sm:$0xff] }
 0x162   : > { %v6538_v17 = vld [vmem:[%s10498_s3 + $0x250] sm:$0xff] }
 0x163   : > { %8326 = vmatpush3.bf16.msra.mxu1 %v8323_v53  ;;  %v8395_v53 = vpack.c.bf16 %v6519_v51, %v6518_v50  ;;  %v2130_v19 = vld [vmem:[#allocation3 + $0x7] sm:$0xff]  ;;  %v9553_v34 = vld [vmem:[#allocation3 + $0xf] sm:$0xff] }
 0x164   : > { %8328 = vmatprep.subr.bf16.mxu1 %v8327_v58  ;;  %v9589_v50 = vld [vmem:[#allocation3 + $0x10] sm:$0xff]  ;;  %v6562_v51 = vld [vmem:[%s10498_s3 + $0x2f0] sm:$0xff] }
 0x167   : > { %8330 = vmatpush3.bf16.msra.mxu1 %v8327_v58  ;;  %v6524_v58 = vld [vmem:[%s10498_s3 + $0x1f0] sm:$0xff] }
 0x168   : > { %8332 = vmatprep.subr.bf16.mxu1 %v8331_v61  ;;  %v8403_v60 = vpack.c.bf16 %v6525_v59, %v6524_v58  ;;  %v6566_v59 = vld [vmem:[%s10498_s3 + $0x310] sm:$0xff] }
 0x16b   : > { %8334 = vmatpush3.bf16.msra.mxu1 %v8331_v61  ;;  %v9483_v61 = vld [vmem:[#allocation3 + $0xd] sm:$0xff] }
 0x16c   : > { %8336 = vmatprep.subr.bf16.mxu1 %v8335_v0 }
 0x16f   : > { %8338 = vmatpush3.bf16.msra.mxu1 %v8335_v0  ;;  %v2034_v0 = vld [vmem:[#allocation3 + $0x6] sm:$0xff] }
 0x170   : > { %8340 = vmatprep.subr.bf16.mxu1 %v8339_v4 }
 0x172   : > { %7526 = vmatmul.mubr.msk.f32.vlgmr.msra.gmra.mrb[0].mxu1 %vm1446_vm3, %v9378_v8 }
 0x173   : > { %8342 = vmatpush3.bf16.msra.mxu1 %v8339_v4  ;;  %7548 = vmatprep.mubr.msk.f32.mxu1 %vm1446_vm3, %v1746_v11  ;;  %v6529_v4 = vld [vmem:[%s10498_s3 + $0x218] sm:$0xff] }
 0x174   : > { %8344 = vmatprep.subr.bf16.mxu1 %v8343_v7  ;;  %v8411_v5 = vpack.c.bf16 %v6529_v4, %v6528_v3  ;;  %v6535_v11 = vld [vmem:[%s10498_s3 + $0x238] sm:$0xff] }
 0x175   : > { %v6573_v3 = vld [vmem:[%s10498_s3 + $0x338] sm:$0xff] }
 0x177   : > { %8346 = vmatpush3.bf16.msra.mxu1 %v8343_v7  ;;  %v6531_v7 = vld [vmem:[%s10498_s3 + $0x228] sm:$0xff] }
 0x178   : > { %8348 = vmatprep.subr.bf16.mxu1 %v8347_v12  ;;  %v8415_v9 = vpack.c.bf16 %v6531_v7, %v6530_v6  ;;  %v6574_v6 = vld [vmem:[%s10498_s3 + $0x340] sm:$0xff]  ;;  %v6575_v7 = vld [vmem:[%s10498_s3 + $0x348] sm:$0xff] }
 0x17b   : > { %8350 = vmatpush3.bf16.msra.mxu1 %v8347_v12  ;;  %v8419_v12 = vpack.c.bf16 %v6535_v11, %v6534_v10  ;;  %v6576_v10 = vld [vmem:[%s10498_s3 + $0x350] sm:$0xff]  ;;  %v6577_v11 = vld [vmem:[%s10498_s3 + $0x358] sm:$0xff] }
 0x17c   : > { %8352 = vmatprep.subr.bf16.mxu1 %v8351_v15 }
 0x17f   : > { %8354 = vmatpush3.bf16.msra.mxu1 %v8351_v15  ;;  %v8423_v15 = vpack.c.bf16 %v6537_v14, %v6536_v13  ;;  %v6578_v13 = vld [vmem:[%s10498_s3 + $0x360] sm:$0xff] }
 0x180   : > { %8356 = vmatprep.subr.bf16.mxu1 %v8355_v18 }
 0x183   : > { %8358 = vmatpush3.bf16.msra.mxu1 %v8355_v18  ;;  %v6539_v18 = vld [vmem:[%s10498_s3 + $0x258] sm:$0xff] }
 0x184   : > { %8360 = vmatprep.subr.bf16.mxu1 %v8359_v21  ;;  %v8427_v20 = vpack.c.bf16 %v6539_v18, %v6538_v17  ;;  %v6583_v17 = vld [vmem:[%s10498_s3 + $0x378] sm:$0xff] }
 0x186   : > { %7549 = vmatmul.mubr.msk.f32.vlgmr.msra.gmra.mrb[0].mxu1 %vm1446_vm3, %v9413_v25 }
 0x187   : > { %8362 = vmatpush3.bf16.msra.mxu1 %v8359_v21  ;;  %7571 = vmatprep.mubr.msk.f32.mxu1 %vm1446_vm3, %v1842_v28  ;;  %v6540_v21 = vld [vmem:[%s10498_s3 + $0x260] sm:$0xff] }
 0x188   : > { %8364 = vmatprep.subr.bf16.mxu1 %v8363_v24  ;;  %v8431_v23 = vpack.c.bf16 %v6541_v22, %v6540_v21  ;;  %v6546_v28 = vld [vmem:[%s10498_s3 + $0x280] sm:$0xff] }
 0x189   : > { %v9661_v22 = vld [vmem:[#allocation3 + $0x12] sm:$0xff] }
 0x18b   : > { %8366 = vmatpush3.bf16.msra.mxu1 %v8363_v24  ;;  %v6542_v24 = vld [vmem:[%s10498_s3 + $0x270] sm:$0xff] }
 0x18c   : > { %8368 = vmatprep.subr.bf16.mxu1 %v8367_v29  ;;  %v8435_v27 = vpack.c.bf16 %v6543_v26, %v6542_v24  ;;  %v6587_v24 = vld [vmem:[%s10498_s3 + $0x398] sm:$0xff] }
 0x18f   : > { %8370 = vmatpush3.bf16.msra.mxu1 %v8367_v29  ;;  %v6547_v29 = vld [vmem:[%s10498_s3 + $0x288] sm:$0xff] }
 0x190   : > { %8372 = vmatprep.subr.bf16.mxu1 %v8371_v32  ;;  %v8439_v30 = vpack.c.bf16 %v6547_v29, %v6546_v28  ;;  %v6589_v28 = vld [vmem:[%s10498_s3 + $0x3a8] sm:$0xff] }
 0x193   : > { %8374 = vmatpush3.bf16.msra.mxu1 %v8371_v32  ;;  %v6549_v32 = vld [vmem:[%s10498_s3 + $0x298] sm:$0xff] }
 0x194   : > { %8376 = vmatprep.subr.bf16.mxu1 %v8375_v35  ;;  %v8443_v33 = vpack.c.bf16 %v6549_v32, %v6548_v31  ;;  %v6594_v32 = vld [vmem:[%s10498_s3 + $0x3c0] sm:$0xff] }
 0x197   : > { %8378 = vmatpush3.bf16.msra.mxu1 %v8375_v35  ;;  %v6550_v35 = vld [vmem:[%s10498_s3 + $0x2a0] sm:$0xff] }
 0x198   : > { %8380 = vmatprep.subr.bf16.mxu1 %v8379_v38  ;;  %v8447_v37 = vpack.c.bf16 %v6551_v36, %v6550_v35  ;;  %v6596_v36 = vld [vmem:[%s10498_s3 + $0x3d0] sm:$0xff] }
 0x19a   : > { %7572 = vmatmul.mubr.msk.f32.vlgmr.msra.gmra.mrb[0].mxu1 %vm1446_vm3, %v9448_v42 }
 0x19b   : > { %8382 = vmatpush3.bf16.msra.mxu1 %v8379_v38  ;;  %7594 = vmatprep.mubr.msk.f32.mxu1 %vm1446_vm3, %v1938_v45  ;;  %v6552_v38 = vld [vmem:[%s10498_s3 + $0x2b0] sm:$0xff]  ;;  %v6559_v45 = vld [vmem:[%s10498_s3 + $0x2d8] sm:$0xff] }
 0x19c   : > { %8384 = vmatprep.subr.bf16.mxu1 %v8383_v41  ;;  %v8451_v40 = vpack.c.bf16 %v6553_v39, %v6552_v38  ;;  %v9697_v39 = vld [vmem:[#allocation3 + $0x13] sm:$0xff] }
 0x19f   : > { %8386 = vmatpush3.bf16.msra.mxu1 %v8383_v41  ;;  %v6554_v41 = vld [vmem:[%s10498_s3 + $0x2c0] sm:$0xff] }
 0x1a0   : > { %8388 = vmatprep.subr.bf16.mxu1 %v8387_v46 }
 0x1a3   : > { %8390 = vmatpush3.bf16.msra.mxu1 %v8387_v46  ;;  %v8459_v46 = vpack.c.bf16 %v6559_v45, %v6558_v44  ;;  %v6601_v44 = vld [vmem:[%s10498_s3 + $0x3f8] sm:$0xff] }
 0x1a4   : > { %8392 = vmatprep.subr.bf16.mxu1 %v8391_v49 }
 0x1a7   : > { %8394 = vmatpush3.bf16.msra.mxu1 %v8391_v49  ;;  %v8463_v49 = vpack.c.bf16 %v6561_v48, %v6560_v47 }
 0x1a8   : > { %8396 = vmatprep.subr.bf16.mxu1 %v8395_v53 }
 0x1ab   : > { %8398 = vmatpush3.bf16.msra.mxu1 %v8395_v53  ;;  %v6563_v53 = vld [vmem:[%s10498_s3 + $0x2f8] sm:$0xff] }
 0x1ac   : > { %8400 = vmatprep.subr.bf16.mxu1 %v8399_v57  ;;  %v8467_v55 = vpack.c.bf16 %v6563_v53, %v6562_v51  ;;  %v6607_v51 = vld [vmem:[%s10498_s3 + $0x418] sm:$0xff] }
 0x1ae   : > { %7595 = vmatmul.mubr.msk.f32.vlgmr.msra.gmra.mrb[0].mxu1 %vm1446_vm3, %v9483_v61 }
 0x1af   : > { %8402 = vmatpush3.bf16.msra.mxu1 %v8399_v57  ;;  %7617 = vmatprep.mubr.msk.f32.mxu1 %vm1446_vm3, %v2034_v0  ;;  %v6565_v57 = vld [vmem:[%s10498_s3 + $0x308] sm:$0xff]  ;;  %v8479_v0 = vpack.c.bf16 %v6571_v63, %v6570_v62  ;;  %v6612_v63 = vld [vmem:[%s10498_s3 + $0x440] sm:$0xff] }
 0x1b0   : > { %8404 = vmatprep.subr.bf16.mxu1 %v8403_v60  ;;  %v8471_v58 = vpack.c.bf16 %v6565_v57, %v6564_v56  ;;  %v6608_v56 = vld [vmem:[%s10498_s3 + $0x420] sm:$0xff]  ;;  %v6609_v57 = vld [vmem:[%s10498_s3 + $0x428] sm:$0xff] }
 0x1b3   : > { %8406 = vmatpush3.bf16.msra.mxu1 %v8403_v60 }
 0x1b4   : > { %8408 = vmatprep.subr.bf16.mxu1 %v8407_v1 }
 0x1b7   : > { %8410 = vmatpush3.bf16.msra.mxu1 %v8407_v1  ;;  %v6572_v1 = vld [vmem:[%s10498_s3 + $0x330] sm:$0xff] }
 0x1b8   : > { %8412 = vmatprep.subr.bf16.mxu1 %v8411_v5  ;;  %v8483_v4 = vpack.c.bf16 %v6573_v3, %v6572_v1  ;;  %v6614_v3 = vld [vmem:[%s10498_s3 + $0x450] sm:$0xff] }
 0x1bb   : > { %8414 = vmatpush3.bf16.msra.mxu1 %v8411_v5  ;;  %v9625_v5 = vld [vmem:[#allocation3 + $0x11] sm:$0xff] }
 0x1bc   : > { %8416 = vmatprep.subr.bf16.mxu1 %v8415_v9 }
 0x1bf   : > { %8418 = vmatpush3.bf16.msra.mxu1 %v8415_v9  ;;  %v8487_v9 = vpack.c.bf16 %v6575_v7, %v6574_v6  ;;  %v6618_v6 = vld [vmem:[%s10498_s3 + $0x460] sm:$0xff]  ;;  %v6619_v7 = vld [vmem:[%s10498_s3 + $0x468] sm:$0xff] }
 0x1c0   : > { %8420 = vmatprep.subr.bf16.mxu1 %v8419_v12 }
 0x1c2   : > { %7618 = vmatmul.mubr.msk.f32.vlgmr.msra.gmra.mrb[0].mxu1 %vm1446_vm3, %v9518_v16 }
 0x1c3   : > { %8422 = vmatpush3.bf16.msra.mxu1 %v8419_v12  ;;  %7640 = vmatprep.mubr.msk.f32.mxu1 %vm1446_vm3, %v2130_v19  ;;  %v8491_v12 = vpack.c.bf16 %v6577_v11, %v6576_v10  ;;  %v6584_v19 = vld [vmem:[%s10498_s3 + $0x380] sm:$0xff]  ;;  %v6620_v10 = vld [vmem:[%s10498_s3 + $0x470] sm:$0xff]  ;;  %v6621_v11 = vld [vmem:[%s10498_s3 + $0x478] sm:$0xff] }
 0x1c4   : > { %8424 = vmatprep.subr.bf16.mxu1 %v8423_v15 }
 0x1c7   : > { %8426 = vmatpush3.bf16.msra.mxu1 %v8423_v15  ;;  %v6582_v15 = vld [vmem:[%s10498_s3 + $0x370] sm:$0xff] }
 0x1c8   : > { %8428 = vmatprep.subr.bf16.mxu1 %v8427_v20  ;;  %v8499_v18 = vpack.c.bf16 %v6583_v17, %v6582_v15  ;;  %v6624_v17 = vld [vmem:[%s10498_s3 + $0x490] sm:$0xff] }
 0x1cb   : > { %8430 = vmatpush3.bf16.msra.mxu1 %v8427_v20  ;;  %v6585_v20 = vld [vmem:[%s10498_s3 + $0x388] sm:$0xff] }
 0x1cc   : > { %8432 = vmatprep.subr.bf16.mxu1 %v8431_v23  ;;  %v8503_v21 = vpack.c.bf16 %v6585_v20, %v6584_v19  ;;  %v6626_v20 = vld [vmem:[%s10498_s3 + $0x4a0] sm:$0xff] }
 0x1cf   : > { %8434 = vmatpush3.bf16.msra.mxu1 %v8431_v23  ;;  %v6586_v23 = vld [vmem:[%s10498_s3 + $0x390] sm:$0xff] }
 0x1d0   : > { %8436 = vmatprep.subr.bf16.mxu1 %v8435_v27  ;;  %v8507_v26 = vpack.c.bf16 %v6587_v24, %v6586_v23  ;;  %v6630_v23 = vld [vmem:[%s10498_s3 + $0x4b0] sm:$0xff]  ;;  %v6631_v24 = vld [vmem:[%s10498_s3 + $0x4b8] sm:$0xff] }
 0x1d3   : > { %8438 = vmatpush3.bf16.msra.mxu1 %v8435_v27  ;;  %v6588_v27 = vld [vmem:[%s10498_s3 + $0x3a0] sm:$0xff] }
 0x1d4   : > { %8440 = vmatprep.subr.bf16.mxu1 %v8439_v30  ;;  %v8511_v29 = vpack.c.bf16 %v6589_v28, %v6588_v27  ;;  %v6632_v27 = vld [vmem:[%s10498_s3 + $0x4c0] sm:$0xff]  ;;  %v6633_v28 = vld [vmem:[%s10498_s3 + $0x4c8] sm:$0xff] }
 0x1d6   : > { %7641 = vmatmul.mubr.msk.f32.vlgmr.msra.gmra.mrb[0].mxu1 %vm1446_vm3, %v9553_v34 }
 0x1d7   : > { %8442 = vmatpush3.bf16.msra.mxu1 %v8439_v30  ;;  %7663 = vmatprep.mubr.msk.f32.mxu1 %vm1446_vm3, %v9337_v52  ;;  %v6555_v52 = vld [vmem:[%s10498_s3 + $0x2c8] sm:$0xff]  ;;  %v6590_v30 = vld [vmem:[%s10498_s3 + $0x3b0] sm:$0xff] }
 0x1d8   : > { %8444 = vmatprep.subr.bf16.mxu1 %v8443_v33  ;;  %v8455_v43 = vpack.c.bf16 %v6555_v52, %v6554_v41  ;;  %v6599_v41 = vld [vmem:[%s10498_s3 + $0x3e8] sm:$0xff] }
 0x1db   : > { %8446 = vmatpush3.bf16.msra.mxu1 %v8443_v33  ;;  %v6595_v33 = vld [vmem:[%s10498_s3 + $0x3c8] sm:$0xff] }
 0x1dc   : > { %8448 = vmatprep.subr.bf16.mxu1 %v8447_v37  ;;  %v8519_v35 = vpack.c.bf16 %v6595_v33, %v6594_v32  ;;  %v6636_v33 = vld [vmem:[%s10498_s3 + $0x4e0] sm:$0xff] }
 0x1df   : > { %8450 = vmatpush3.bf16.msra.mxu1 %v8447_v37  ;;  %v6597_v37 = vld [vmem:[%s10498_s3 + $0x3d8] sm:$0xff] }
 0x1e0   : > { %8452 = vmatprep.subr.bf16.mxu1 %v8451_v40  ;;  %v8523_v38 = vpack.c.bf16 %v6597_v37, %v6596_v36  ;;  %v6638_v37 = vld [vmem:[%s10498_s3 + $0x4f0] sm:$0xff] }
 0x1e3   : > { %8454 = vmatpush3.bf16.msra.mxu1 %v8451_v40  ;;  %v6598_v40 = vld [vmem:[%s10498_s3 + $0x3e0] sm:$0xff] }
 0x1e4   : > { %8456 = vmatprep.subr.bf16.mxu1 %v8455_v43  ;;  %v8527_v52 = vpack.c.bf16 %v6599_v41, %v6598_v40  ;;  %v6642_v40 = vld [vmem:[%s10498_s3 + $0x500] sm:$0xff]  ;;  %v6643_v41 = vld [vmem:[%s10498_s3 + $0x508] sm:$0xff] }
 0x1e7   : > { %8458 = vmatpush3.bf16.msra.mxu1 %v8455_v43  ;;  %v6600_v43 = vld [vmem:[%s10498_s3 + $0x3f0] sm:$0xff] }
 0x1e8   : > { %8460 = vmatprep.subr.bf16.mxu1 %v8459_v46  ;;  %v8531_v45 = vpack.c.bf16 %v6601_v44, %v6600_v43  ;;  %v6644_v43 = vld [vmem:[%s10498_s3 + $0x510] sm:$0xff]  ;;  %v6645_v44 = vld [vmem:[%s10498_s3 + $0x518] sm:$0xff] }
 0x1ea   : > { %7664 = vmatmul.mubr.msk.f32.vlgmr.msra.gmra.mrb[0].mxu1 %vm1446_vm3, %v9589_v50 }
 0x1eb   : > { %8462 = vmatpush3.bf16.msra.mxu1 %v8459_v46  ;;  %7686 = vmatprep.mubr.msk.f32.mxu1 %vm1446_vm3, %v9341_v54  ;;  %v6567_v54 = vld [vmem:[%s10498_s3 + $0x318] sm:$0xff]  ;;  %v6602_v46 = vld [vmem:[%s10498_s3 + $0x400] sm:$0xff] }
 0x1ec   : > { %8464 = vmatprep.subr.bf16.mxu1 %v8463_v49  ;;  %v8475_v60 = vpack.c.bf16 %v6567_v54, %v6566_v59  ;;  %v2611_v59 = vld [vmem:[#allocation3 + $0x14] sm:$0xff]  ;;  %v6610_v54 = vld [vmem:[%s10498_s3 + $0x430] sm:$0xff] }
 0x1ef   : > { %8466 = vmatpush3.bf16.msra.mxu1 %v8463_v49  ;;  %v6606_v49 = vld [vmem:[%s10498_s3 + $0x410] sm:$0xff] }
 0x1f0   : > { %8468 = vmatprep.subr.bf16.mxu1 %v8467_v55 }
 0x1f3   : > { %8470 = vmatpush3.bf16.msra.mxu1 %v8467_v55  ;;  %v8539_v55 = vpack.c.bf16 %v6607_v51, %v6606_v49  ;;  %v6648_v51 = vld [vmem:[%s10498_s3 + $0x530] sm:$0xff] }
 0x1f4   : > { %8472 = vmatprep.subr.bf16.mxu1 %v8471_v58 }
 0x1f7   : > { %8474 = vmatpush3.bf16.msra.mxu1 %v8471_v58  ;;  %v8543_v58 = vpack.c.bf16 %v6609_v57, %v6608_v56  ;;  %v6650_v57 = vld [vmem:[%s10498_s3 + $0x540] sm:$0xff] }
 0x1f8   : > { %8476 = vmatprep.subr.bf16.mxu1 %v8475_v60 }
 0x1fb   : > { %8478 = vmatpush3.bf16.msra.mxu1 %v8475_v60  ;;  %v6611_v60 = vld [vmem:[%s10498_s3 + $0x438] sm:$0xff] }
 0x1fc   : > { %8480 = vmatprep.subr.bf16.mxu1 %v8479_v0  ;;  %v8547_v62 = vpack.c.bf16 %v6611_v60, %v6610_v54  ;;  %v6655_v54 = vld [vmem:[%s10498_s3 + $0x558] sm:$0xff] }
 0x1fe   : > { %7687 = vmatmul.mubr.msk.f32.vlgmr.msra.gmra.mrb[0].mxu1 %vm1446_vm3, %v9625_v5 }
 0x1ff   : > { %8482 = vmatpush3.bf16.msra.mxu1 %v8479_v0  ;;  %7709 = vmatprep.mubr.msk.f32.mxu1 %vm1446_vm3, %v9378_v8  ;;  %v6579_v8 = vld [vmem:[%s10498_s3 + $0x368] sm:$0xff] }
 0x200   : > { %8484 = vmatprep.subr.bf16.mxu1 %v8483_v4  ;;  %v8495_v14 = vpack.c.bf16 %v6579_v8, %v6578_v13  ;;  %v6613_v0 = vld [vmem:[%s10498_s3 + $0x448] sm:$0xff]  ;;  %v2707_v13 = vld [vmem:[#allocation3 + $0x15] sm:$0xff] }
 0x201   : > { %v8551_v1 = vpack.c.bf16 %v6613_v0, %v6612_v63  ;;  %v6622_v8 = vld [vmem:[%s10498_s3 + $0x480] sm:$0xff]  ;;  %v6657_v63 = vld [vmem:[%s10498_s3 + $0x568] sm:$0xff] }
 0x203   : > { %8486 = vmatpush3.bf16.msra.mxu1 %v8483_v4 }
 0x204   : > { %8488 = vmatprep.subr.bf16.mxu1 %v8487_v9 }
 0x207   : > { %8490 = vmatpush3.bf16.msra.mxu1 %v8487_v9  ;;  %v8559_v9 = vpack.c.bf16 %v6619_v7, %v6618_v6  ;;  %v6660_v6 = vld [vmem:[%s10498_s3 + $0x580] sm:$0xff]  ;;  %v6661_v7 = vld [vmem:[%s10498_s3 + $0x588] sm:$0xff] }
 0x208   : > { %8492 = vmatprep.subr.bf16.mxu1 %v8491_v12 }
 0x20b   : > { %8494 = vmatpush3.bf16.msra.mxu1 %v8491_v12  ;;  %v8563_v12 = vpack.c.bf16 %v6621_v11, %v6620_v10  ;;  %v6662_v10 = vld [vmem:[%s10498_s3 + $0x590] sm:$0xff] }
 0x20c   : > { %8496 = vmatprep.subr.bf16.mxu1 %v8495_v14 }
 0x20f   : > { %8498 = vmatpush3.bf16.msra.mxu1 %v8495_v14  ;;  %v6623_v14 = vld [vmem:[%s10498_s3 + $0x488] sm:$0xff] }
 0x210   : > { %8500 = vmatprep.subr.bf16.mxu1 %v8499_v18  ;;  %v8567_v15 = vpack.c.bf16 %v6623_v14, %v6622_v8  ;;  %v6668_v14 = vld [vmem:[%s10498_s3 + $0x5b0] sm:$0xff] }
 0x212   : > { %7710 = vmatmul.mubr.msk.f32.vlgmr.msra.gmra.mrb[0].mxu1 %vm1446_vm3, %v9661_v22 }
 0x213   : > { %8502 = vmatpush3.bf16.msra.mxu1 %v8499_v18  ;;  %7732 = vmatprep.mubr.msk.f32.mxu1 %vm1446_vm3, %v9413_v25  ;;  %v6591_v25 = vld [vmem:[%s10498_s3 + $0x3b8] sm:$0xff] }
 0x214   : > { %8504 = vmatprep.subr.bf16.mxu1 %v8503_v21  ;;  %v8515_v31 = vpack.c.bf16 %v6591_v25, %v6590_v30  ;;  %v6625_v18 = vld [vmem:[%s10498_s3 + $0x498] sm:$0xff]  ;;  %v6634_v25 = vld [vmem:[%s10498_s3 + $0x4d0] sm:$0xff] }
 0x215   : > { %v8571_v19 = vpack.c.bf16 %v6625_v18, %v6624_v17  ;;  %v2803_v30 = vld [vmem:[#allocation3 + $0x16] sm:$0xff] }
 0x216   : > { %v3091_v18 = vld [vmem:[#allocation3 + $0x19] sm:$0xff] }
 0x217   : > { %8506 = vmatpush3.bf16.msra.mxu1 %v8503_v21 }
 0x218   : > { %8508 = vmatprep.subr.bf16.mxu1 %v8507_v26 }
 0x21b   : > { %8510 = vmatpush3.bf16.msra.mxu1 %v8507_v26  ;;  %v8579_v26 = vpack.c.bf16 %v6631_v24, %v6630_v23  ;;  %v6673_v23 = vld [vmem:[%s10498_s3 + $0x5d8] sm:$0xff] }
 0x21c   : > { %8512 = vmatprep.subr.bf16.mxu1 %v8511_v29 }
 0x21f   : > { %8514 = vmatpush3.bf16.msra.mxu1 %v8511_v29  ;;  %v8583_v29 = vpack.c.bf16 %v6633_v28, %v6632_v27  ;;  %v6678_v28 = vld [vmem:[%s10498_s3 + $0x5f0] sm:$0xff] }
 0x220   : > { %8516 = vmatprep.subr.bf16.mxu1 %v8515_v31 }
 0x223   : > { %8518 = vmatpush3.bf16.msra.mxu1 %v8515_v31  ;;  %v6635_v31 = vld [vmem:[%s10498_s3 + $0x4d8] sm:$0xff] }
 0x224   : > { %8520 = vmatprep.subr.bf16.mxu1 %v8519_v35  ;;  %v8587_v32 = vpack.c.bf16 %v6635_v31, %v6634_v25  ;;  %v6680_v25 = vld [vmem:[%s10498_s3 + $0x600] sm:$0xff]  ;;  %v6681_v31 = vld [vmem:[%s10498_s3 + $0x608] sm:$0xff] }
 0x226   : > { %7733 = vmatmul.mubr.msk.f32.vlgmr.msra.gmra.mrb[0].mxu1 %vm1446_vm3, %v9697_v39 }
 0x227   : > { %8522 = vmatpush3.bf16.msra.mxu1 %v8519_v35  ;;  %7755 = vmatprep.mubr.msk.f32.mxu1 %vm1446_vm3, %v9448_v42  ;;  %v6603_v42 = vld [vmem:[%s10498_s3 + $0x408] sm:$0xff] }
 0x228   : > { %8524 = vmatprep.subr.bf16.mxu1 %v8523_v38  ;;  %v8535_v47 = vpack.c.bf16 %v6603_v42, %v6602_v46  ;;  %v6637_v35 = vld [vmem:[%s10498_s3 + $0x4e8] sm:$0xff]  ;;  %v2899_v46 = vld [vmem:[#allocation3 + $0x17] sm:$0xff] }
 0x229   : > { %v8591_v36 = vpack.c.bf16 %v6637_v35, %v6636_v33  ;;  %v6646_v42 = vld [vmem:[%s10498_s3 + $0x520] sm:$0xff]  ;;  %v6682_v35 = vld [vmem:[%s10498_s3 + $0x610] sm:$0xff] }
 0x22a   : > { %v3187_v33 = vld [vmem:[#allocation3 + $0x1a] sm:$0xff] }
 0x22b   : > { %8526 = vmatpush3.bf16.msra.mxu1 %v8523_v38 }
 0x22c   : > { %8528 = vmatprep.subr.bf16.mxu1 %v8527_v52 }
 0x22f   : > { %8530 = vmatpush3.bf16.msra.mxu1 %v8527_v52  ;;  %v8599_v52 = vpack.c.bf16 %v6643_v41, %v6642_v40  ;;  %v6686_v41 = vld [vmem:[%s10498_s3 + $0x630] sm:$0xff] }
 0x230   : > { %8532 = vmatprep.subr.bf16.mxu1 %v8531_v45  ;;  %v9721_v48 = vpop.f32.mrb[4].mxu0 }
 0x231   : > { %v9729_v53 = vpop.f32.mrb[5].mxu0 }
 0x233   : > { %8534 = vmatpush3.bf16.msra.mxu1 %v8531_v45  ;;  %v8603_v45 = vpack.c.bf16 %v6645_v44, %v6644_v43  ;;  %v3283_v43 = vld [vmem:[#allocation3 + $0x1b] sm:$0xff] }
 0x234   : > { %8536 = vmatprep.subr.bf16.mxu1 %v8535_v47  ;;  %v3409_v44 = vld [vmem:[%s10500_s5] sm:$0xff] }
 0x237   : > { %8538 = vmatpush3.bf16.msra.mxu1 %v8535_v47  ;;  %v6647_v47 = vld [vmem:[%s10498_s3 + $0x528] sm:$0xff] }
 0x238   : > { %8540 = vmatprep.subr.bf16.mxu1 %v8539_v55  ;;  %v8607_v49 = vpack.c.bf16 %v6647_v47, %v6646_v42  ;;  %v6695_v47 = vld [vmem:[%s10500_s5 + $0x10] sm:$0xff] }
 0x23a   : > { %7756 = vmatmul.mubr.msk.f32.vlgmr.msra.gmra.mrb[0].mxu1 %vm1446_vm3, %v2611_v59  ;;  %v6654_v59 = vld [vmem:[%s10498_s3 + $0x550] sm:$0xff] }
 0x23b   : > { %8542 = vmatpush3.bf16.msra.mxu1 %v8539_v55  ;;  %7778 = vmatprep.mubr.msk.f32.mxu1 %vm1446_vm3, %v9483_v61  ;;  %v6615_v61 = vld [vmem:[%s10498_s3 + $0x458] sm:$0xff]  ;;  %v8619_v60 = vpack.c.bf16 %v6655_v54, %v6654_v59 }
 0x23c   : > { %8544 = vmatprep.subr.bf16.mxu1 %v8543_v58  ;;  %v8555_v4 = vpack.c.bf16 %v6615_v61, %v6614_v3  ;;  %v6649_v55 = vld [vmem:[%s10498_s3 + $0x538] sm:$0xff]  ;;  %v6658_v3 = vld [vmem:[%s10498_s3 + $0x570] sm:$0xff] }
 0x23d   : > { %v8611_v56 = vpack.c.bf16 %v6649_v55, %v6648_v51  ;;  %v6659_v61 = vld [vmem:[%s10498_s3 + $0x578] sm:$0xff]  ;;  %v6459_v55 = vld [vmem:[%s10499_s4] ss:$0 sm:$0xff] }
 0x23f   : > { %8546 = vmatpush3.bf16.msra.mxu1 %v8543_v58 }
 0x240   : > { %8548 = vmatprep.subr.bf16.mxu1 %v8547_v62 }
 0x243   : > { %8550 = vmatpush3.bf16.msra.mxu1 %v8547_v62  ;;  %v6656_v62 = vld [vmem:[%s10498_s3 + $0x560] sm:$0xff] }
 0x244   : > { %8552 = vmatprep.subr.bf16.mxu1 %v8551_v1  ;;  %v8623_v0 = vpack.c.bf16 %v6657_v63, %v6656_v62 }
 0x247   : > { %8554 = vmatpush3.bf16.msra.mxu1 %v8551_v1  ;;  %v2995_v1 = vld [vmem:[#allocation3 + $0x18] sm:$0xff] }
 0x248   : > { %8556 = vmatprep.subr.bf16.mxu1 %v8555_v4 }
 0x24b   : > { %8558 = vmatpush3.bf16.msra.mxu1 %v8555_v4  ;;  %v8627_v4 = vpack.c.bf16 %v6659_v61, %v6658_v3 }
 0x24c   : > { %8560 = vmatprep.subr.bf16.mxu1 %v8559_v9 }
 0x24e   : > { %7779 = vmatmul.mubr.msk.f32.vlgmr.msra.gmra.mrb[0].mxu1 %vm1446_vm3, %v2707_v13  ;;  %v6667_v13 = vld [vmem:[%s10498_s3 + $0x5a8] sm:$0xff] }
 0x24f   : > { %8562 = vmatpush3.bf16.msra.mxu1 %v8559_v9  ;;  %7801 = vmatprep.mubr.msk.f32.mxu1 %vm1446_vm3, %v9518_v16  ;;  %v6627_v16 = vld [vmem:[%s10498_s3 + $0x4a8] sm:$0xff]  ;;  %v8631_v9 = vpack.c.bf16 %v6661_v7, %v6660_v6 }
 0x250   : > { %8564 = vmatprep.subr.bf16.mxu1 %v8563_v12  ;;  %v8575_v21 = vpack.c.bf16 %v6627_v16, %v6626_v20  ;;  %v6671_v20 = vld [vmem:[%s10498_s3 + $0x5c8] sm:$0xff] }
 0x251   : > { %v6702_v7 = vld [vmem:[%s10500_s5 + $0x28] sm:$0xff] }
 0x253   : > { %8566 = vmatpush3.bf16.msra.mxu1 %v8563_v12  ;;  %v6666_v12 = vld [vmem:[%s10498_s3 + $0x5a0] sm:$0xff] }
 0x254   : > { %8568 = vmatprep.subr.bf16.mxu1 %v8567_v15  ;;  %v8639_v8 = vpack.c.bf16 %v6667_v13, %v6666_v12  ;;  %v6707_v13 = vld [vmem:[%s10500_s5 + $0x30] sm:$0xff] }
 0x257   : > { %8570 = vmatpush3.bf16.msra.mxu1 %v8567_v15  ;;  %v6669_v15 = vld [vmem:[%s10498_s3 + $0x5b8] sm:$0xff] }
 0x258   : > { %8572 = vmatprep.subr.bf16.mxu1 %v8571_v19  ;;  %v8643_v17 = vpack.c.bf16 %v6669_v15, %v6668_v14 }
 0x25b   : > { %8574 = vmatpush3.bf16.msra.mxu1 %v8571_v19  ;;  %v6670_v19 = vld [vmem:[%s10498_s3 + $0x5c0] sm:$0xff] }
 0x25c   : > { %8576 = vmatprep.subr.bf16.mxu1 %v8575_v21  ;;  %v8647_v16 = vpack.c.bf16 %v6671_v20, %v6670_v19  ;;  %v6713_v20 = vld [vmem:[%s10500_s5 + $0x40] sm:$0xff] }
 0x25f   : > { %8578 = vmatpush3.bf16.msra.mxu1 %v8575_v21  ;;  %v6672_v21 = vld [vmem:[%s10498_s3 + $0x5d0] sm:$0xff] }
 0x260   : > { %8580 = vmatprep.subr.bf16.mxu1 %v8579_v26  ;;  %v8651_v24 = vpack.c.bf16 %v6673_v23, %v6672_v21 }
 0x262   : > { %7802 = vmatmul.mubr.msk.f32.vlgmr.msra.gmra.mrb[0].mxu1 %vm1446_vm3, %v2803_v30 }
 0x263   : > { %8582 = vmatpush3.bf16.msra.mxu1 %v8579_v26  ;;  %7824 = vmatprep.mubr.msk.f32.mxu1 %vm1446_vm3, %v9553_v34  ;;  %v6639_v34 = vld [vmem:[%s10498_s3 + $0x4f8] sm:$0xff]  ;;  %v6674_v26 = vld [vmem:[%s10498_s3 + $0x5e0] sm:$0xff] }
 0x264   : > { %8584 = vmatprep.subr.bf16.mxu1 %v8583_v29  ;;  %v8595_v38 = vpack.c.bf16 %v6639_v34, %v6638_v37  ;;  %v6684_v34 = vld [vmem:[%s10498_s3 + $0x620] sm:$0xff] }
 0x267   : > { %8586 = vmatpush3.bf16.msra.mxu1 %v8583_v29  ;;  %v6679_v29 = vld [vmem:[%s10498_s3 + $0x5f8] sm:$0xff] }
 0x268   : > { %8588 = vmatprep.subr.bf16.mxu1 %v8587_v32  ;;  %v8659_v30 = vpack.c.bf16 %v6679_v29, %v6678_v28 }
 0x26b   : > { %8590 = vmatpush3.bf16.msra.mxu1 %v8587_v32  ;;  %v8663_v32 = vpack.c.bf16 %v6681_v31, %v6680_v25  ;;  %v3731_v31 = vld [vmem:[#allocation4 + $0x1b] sm:$0x7] }
 0x26c   : > { %8592 = vmatprep.subr.bf16.mxu1 %v8591_v36 }
 0x26f   : > { %8594 = vmatpush3.bf16.msra.mxu1 %v8591_v36  ;;  %v6683_v36 = vld [vmem:[%s10498_s3 + $0x618] sm:$0xff] }
 0x270   : > { %8596 = vmatprep.subr.bf16.mxu1 %v8595_v38  ;;  %v8667_v37 = vpack.c.bf16 %v6683_v36, %v6682_v35 }
 0x273   : > { %8598 = vmatpush3.bf16.msra.mxu1 %v8595_v38  ;;  %v6685_v38 = vld [vmem:[%s10498_s3 + $0x628] sm:$0xff] }
 0x274   : > { %8600 = vmatprep.subr.bf16.mxu1 %v8599_v52  ;;  %v8671_v40 = vpack.c.bf16 %v6685_v38, %v6684_v34  ;;  %v3839_v38 = vld [vmem:[#allocation4 + $0x1c] sm:$0x7] }
 0x276   : > { %7825 = vmatmul.mubr.msk.f32.vlgmr.msra.gmra.mrb[0].mxu1 %vm1446_vm3, %v2899_v46  ;;  %v3405_v46 = vld [vmem:[#allocation4] sm:$0xff] }
 0x277   : > { %8602 = vmatpush3.bf16.msra.mxu1 %v8599_v52  ;;  %7847 = vmatprep.mubr.msk.f32.mxu1 %vm1446_vm3, %v9589_v50  ;;  %v6651_v50 = vld [vmem:[%s10498_s3 + $0x548] sm:$0xff] }
 0x278   : > { %8604 = vmatprep.subr.bf16.mxu1 %v8603_v45  ;;  %v8615_v58 = vpack.c.bf16 %v6651_v50, %v6650_v57  ;;  %7923 = vmatprep.mubr.msk.f32.mxu0 %vm3390_vm5, %v3405_v46  ;;  %v1552_v57 = vadd.f32 %v6459_v55, %v9729_v53  ;;  %v6701_v53 = vld [vmem:[%s10500_s5 + $0x20] sm:$0xff] }
 0x279   : > { %v6737_v46 = vld [vmem:[%s10500_s5 + $0x80] sm:$0xff] }
 0x27b   : > { %8606 = vmatpush3.bf16.msra.mxu1 %v8603_v45  ;;  %v3410_v45 = vld [vmem:[%s10500_s5 + $0x8] sm:$0xff] }
 0x27c   : > { %8608 = vmatprep.subr.bf16.mxu1 %v8607_v49  ;;  %v8679_v42 = vpack.c.bf16 %v3410_v45, %v3409_v44  ;;  %v3947_v45 = vld [vmem:[#allocation4 + $0x1d] sm:$0x7] }
 0x27e   : > { %8680 = vmatprep.subr.bf16.mxu0 %v8679_v42 }
 0x27f   : > { %8610 = vmatpush3.bf16.msra.mxu1 %v8607_v49  ;;  %8682 = vmatpush3.bf16.msra.mxu0 %v8679_v42  ;;  %v6696_v49 = vld [vmem:[%s10500_s5 + $0x18] sm:$0xff]  ;;  %v6738_v42 = vld [vmem:[%s10500_s5 + $0x88] sm:$0xff] }
 0x280   : > { %8612 = vmatprep.subr.bf16.mxu1 %v8611_v56  ;;  %v8683_v51 = vpack.c.bf16 %v6696_v49, %v6695_v47  ;;  %v8711_v49 = vpack.c.bf16 %v6738_v42, %v6737_v46  ;;  %v6759_v46 = vld [vmem:[%s10502_s7 + $0x50] sm:$0xff]  ;;  %v6760_v42 = vld [vmem:[%s10502_s7 + $0x58] sm:$0xff] }
 0x282   : > { %8684 = vmatprep.subr.bf16.mxu0 %v8683_v51 }
 0x283   : > { %8614 = vmatpush3.bf16.msra.mxu1 %v8611_v56  ;;  %v1553_v56 = vadd.f32 %v9721_v48, %v6459_v55 }
 0x284   : > { %8616 = vmatprep.subr.bf16.mxu1 %v8615_v58 }
 0x287   : > { %8618 = vmatpush3.bf16.msra.mxu1 %v8615_v58 }
 0x288   : > { %8620 = vmatprep.subr.bf16.mxu1 %v8619_v60 }
 0x28a   : > { %7848 = vmatmul.mubr.msk.f32.vlgmr.msra.gmra.mrb[0].mxu1 %vm1446_vm3, %v2995_v1 }
 0x28b   : > { %8622 = vmatpush3.bf16.msra.mxu1 %v8619_v60  ;;  %7870 = vmatprep.mubr.msk.f32.mxu1 %vm1446_vm3, %v9625_v5  ;;  %v6663_v5 = vld [vmem:[%s10498_s3 + $0x598] sm:$0xff] }
 0x28c   : > { %8624 = vmatprep.subr.bf16.mxu1 %v8623_v0  ;;  %v8635_v11 = vpack.c.bf16 %v6663_v5, %v6662_v10 }
 0x28f   : > { %8626 = vmatpush3.bf16.msra.mxu1 %v8623_v0 }
 0x290   : > { %8628 = vmatprep.subr.bf16.mxu1 %v8627_v4 }
 0x293   : > { %8630 = vmatpush3.bf16.msra.mxu1 %v8627_v4 }
 0x294   : > { %8632 = vmatprep.subr.bf16.mxu1 %v8631_v9 }
 0x297   : > { %8634 = vmatpush3.bf16.msra.mxu1 %v8631_v9  ;;  %v8687_v9 = vpack.c.bf16 %v6702_v7, %v6701_v53  ;;  %v4529_v53 = vld [vmem:[%s10502_s7 + $0x18] sm:$0xff] }
 0x298   : > { %8636 = vmatprep.subr.bf16.mxu1 %v8635_v11 }
 0x29b   : > { %8638 = vmatpush3.bf16.msra.mxu1 %v8635_v11  ;;  %v3512_v11 = vld [vmem:[#allocation4 + $0x1] sm:$0xff] }
 0x29c   : > { %8640 = vmatprep.subr.bf16.mxu1 %v8639_v8 }
 0x29e   : > { %7871 = vmatmul.mubr.msk.f32.vlgmr.msra.gmra.mrb[0].mxu1 %vm1446_vm3, %v3091_v18  ;;  %v3620_v18 = vld [vmem:[#allocation4 + $0x2] sm:$0xff] }
 0x29f   : > { %8642 = vmatpush3.bf16.msra.mxu1 %v8639_v8  ;;  %7893 = vmatprep.mubr.msk.f32.mxu1 %vm1446_vm3, %v9661_v22  ;;  %v6675_v22 = vld [vmem:[%s10498_s3 + $0x5e8] sm:$0xff]  ;;  %v6708_v8 = vld [vmem:[%s10500_s5 + $0x38] sm:$0xff] }
 0x2a0   : > { %8644 = vmatprep.subr.bf16.mxu1 %v8643_v17  ;;  %v8655_v27 = vpack.c.bf16 %v6675_v22, %v6674_v26  ;;  %v8691_v14 = vpack.c.bf16 %v6708_v8, %v6707_v13  ;;  %v3623_v26 = vld [vmem:[#allocation4 + $0x1a] sm:$0x7]  ;;  %v6719_v22 = vld [vmem:[%s10500_s5 + $0x50] sm:$0xff] }
 0x2a3   : > { %8646 = vmatpush3.bf16.msra.mxu1 %v8643_v17 }
 0x2a4   : > { %8648 = vmatprep.subr.bf16.mxu1 %v8647_v16 }
 0x2a7   : > { %8650 = vmatpush3.bf16.msra.mxu1 %v8647_v16  ;;  %v6714_v16 = vld [vmem:[%s10500_s5 + $0x48] sm:$0xff] }
 0x2a8   : > { %8652 = vmatprep.subr.bf16.mxu1 %v8651_v24  ;;  %v8695_v21 = vpack.c.bf16 %v6714_v16, %v6713_v20 }
 0x2ab   : > { %8654 = vmatpush3.bf16.msra.mxu1 %v8651_v24 }
 0x2ac   : > { %8656 = vmatprep.subr.bf16.mxu1 %v8655_v27 }
 0x2af   : > { %8658 = vmatpush3.bf16.msra.mxu1 %v8655_v27  ;;  %v6720_v27 = vld [vmem:[%s10500_s5 + $0x58] sm:$0xff] }
 0x2b0   : > { %8660 = vmatprep.subr.bf16.mxu1 %v8659_v30  ;;  %v8699_v29 = vpack.c.bf16 %v6720_v27, %v6719_v22 }
 0x2b2   : > { %7894 = vmatmul.mubr.msk.f32.vlgmr.msra.gmra.mrb[0].mxu1 %vm1446_vm3, %v3187_v33  ;;  %v6726_v33 = vld [vmem:[%s10500_s5 + $0x68] sm:$0xff] }
 0x2b3   : > { %8662 = vmatpush3.bf16.msra.mxu1 %v8659_v30  ;;  %7916 = vmatprep.mubr.msk.f32.mxu1 %vm1446_vm3, %v9697_v39  ;;  %v6687_v39 = vld [vmem:[%s10498_s3 + $0x638] sm:$0xff] }
 0x2b4   : > { %8664 = vmatprep.subr.bf16.mxu1 %v8663_v32  ;;  %v8675_v52 = vpack.c.bf16 %v6687_v39, %v6686_v41  ;;  %v6732_v41 = vld [vmem:[%s10500_s5 + $0x78] sm:$0xff] }
 0x2b7   : > { %8666 = vmatpush3.bf16.msra.mxu1 %v8663_v32  ;;  %v6725_v32 = vld [vmem:[%s10500_s5 + $0x60] sm:$0xff] }
 0x2b8   : > { %8668 = vmatprep.subr.bf16.mxu1 %v8667_v37  ;;  %v8703_v36 = vpack.c.bf16 %v6726_v33, %v6725_v32 }
 0x2bb   : > { %8670 = vmatpush3.bf16.msra.mxu1 %v8667_v37 }
 0x2bc   : > { %8672 = vmatprep.subr.bf16.mxu1 %v8671_v40 }
 0x2bf   : > { %8674 = vmatpush3.bf16.msra.mxu1 %v8671_v40  ;;  %v6731_v40 = vld [vmem:[%s10500_s5 + $0x70] sm:$0xff] }
 0x2c0   : > { %8676 = vmatprep.subr.bf16.mxu1 %v8675_v52 }
 0x2c3   : > { %8678 = vmatpush3.bf16.msra.mxu1 %v8675_v52  ;;  %v8707_v52 = vpack.c.bf16 %v6732_v41, %v6731_v40  ;;  %v6754_v40 = vld [vmem:[%s10502_s7 + $0x38] sm:$0xff]  ;;  %v6755_v41 = vld [vmem:[%s10502_s7 + $0x40] sm:$0xff] }
 0x2c6   : > { %7917 = vmatmul.mubr.msk.f32.vlgmr.msra.gmra.mrb[0].mxu1 %vm1446_vm3, %v3283_v43 }
 0x399   : > { %v7918_v50 = vpop.f32.mrb[0].mxu1 }
 0x39a   : > { %v8884_v58 = vadd.f32 %v7918_v50, %v1553_v56  ;;  %v3367_v59 = vpop.f32.mrb[1].mxu1  ;;  %v4055_v56 = vld [vmem:[#allocation4 + $0x1e] sm:$0x7]  ;;  %v6744_v50 = vld [vmem:[%s10500_s5 + $0x98] sm:$0xff] }
 0x39b   : > { %v8886_v54 = vadd.f32 %v3367_v59, %v1552_v57  ;;  %v6743_v57 = vld [vmem:[%s10500_s5 + $0x90] sm:$0xff] }
 0x39c   : > { %v3379_v60 = vsub.f32 0.0, %v8884_v58  ;;  %v8715_v59 = vpack.c.bf16 %v6744_v50, %v6743_v57  ;;  %v6763_v50 = vld [vmem:[%s10502_s7 + $0x70] sm:$0xff] }
 0x39d   : > { %v3378_v62 = vsub.f32 0.0, %v8886_v54 }
 0x39e   : > { %v3382_v63 = vmul.f32 1.442695, %v3379_v60 }
 0x39f   : > { %v3380_v0 = vmul.f32 1.442695, %v3378_v62  ;;  %v4163_v62 = vld [vmem:[#allocation4 + $0x1f] sm:$0x7] }
 0x3a0   : > { %9064 = vpow2.f32 %v3382_v63 }
 0x3a1   : > { %9066 = vpow2.f32 %v3380_v0  ;;  %v4271_v0 = vld [vmem:[#allocation4 + $0x20] sm:$0x7] }
 0x3aa   : > { %v9065_v1 = vpop.eup %9064 }
 0x3ab   : > { %v9067_v3 = vpop.eup %9066  ;;  %v3385_v61 = vadd.f32 1.0, %v9065_v1 }
 0x3ac   : > { %v3384_v4 = vadd.f32 1.0, %v9067_v3  ;;  %v4379_v3 = vld [vmem:[#allocation4 + $0x21] sm:$0x7] }
 0x3ad   : > { %9068 = vrcp.f32 %v3385_v61  ;;  %v4526_v61 = vld [vmem:[%s10502_s7] sm:$0xff] }
 0x3ae   : > { %9070 = vrcp.f32 %v3384_v4  ;;  %v4527_v4 = vld [vmem:[%s10502_s7 + $0x8] sm:$0xff] }
 0x3b7   : > { %v9069_v6 = vpop.eup %9068 }
 0x3b8   : > { %v9071_v48 = vpop.eup %9070  ;;  %3397 = vst.msk [vmem:[#allocation4 + $0x12] sm:$0xff] %vm3390_vm5, %v9069_v6  ;;  %v8719_v6 = vpack.c.bf16 %v4527_v4, %v4526_v61  ;;  %v6773_v61 = vld [vmem:[%s10502_s7 + $0xa0] sm:$0xff]  ;;  %v6774_v4 = vld [vmem:[%s10502_s7 + $0xa8] sm:$0xff] }
 0x3b9   : > { %3396 = vst.msk [vmem:[#allocation4 + $0xa] sm:$0xff] %vm3390_vm5, %v9071_v48  ;;  %v4528_v48 = vld [vmem:[%s10502_s7 + $0x10] sm:$0xff] }
 0x3ba   : > { %v8723_v7 = vpack.c.bf16 %v4529_v53, %v4528_v48  ;;  %v6776_v48 = vld [vmem:[%s10502_s7 + $0xb8] sm:$0xff]  ;;  %v8751_v53 = vpack.c.bf16 %v6774_v4, %v6773_v61 }
 0x3bf   : > { %v3408_v12 = vld [vmem:[#allocation4 + $0x18] sm:$0x7] }
 0x3c0   : > { %v9989_v10 = vld [vmem:[#allocation4 + $0x8] sm:$0xff]  ;;  %v9991_v5 = vld [vmem:[#allocation4 + $0x10] sm:$0xff]  ;;  %v3515_v19 = vld [vmem:[#allocation4 + $0x19] sm:$0x7] }
 0x3c1   : > { %7924 = vmatmul.mubr.msk.f32.vlgmr.msra.gmra.mrb[6].mxu0 %vm3390_vm5, %v9989_v10  ;;  %v10005_v15 = vld [vmem:[#allocation4 + $0x9] sm:$0xff]  ;;  %v10009_v17 = vld [vmem:[#allocation4 + $0x11] sm:$0xff]  ;;  %v4378_v1 = vld [vmem:[#allocation4 + $0x19] sm:$0xff] }
 0x3c2   : > { %7926 = vmatprep.mubr.msk.f32.mxu0 %vm3390_vm5, %v9991_v5  ;;  %8686 = vmatpush3.bf16.msra.mxu0 %v8683_v51  ;;  %v3621_v23 = vld [vmem:[#allocation4 + $0xa] sm:$0xff]  ;;  %v3622_v24 = vld [vmem:[#allocation4 + $0x12] sm:$0xff] }
 0x3c3   : > { %8688 = vmatprep.subr.bf16.mxu0 %v8687_v9  ;;  %v3728_v28 = vld [vmem:[#allocation4 + $0x3] sm:$0xff]  ;;  %v3729_v30 = vld [vmem:[#allocation4 + $0xb] sm:$0xff]  ;;  %v3730_v25 = vld [vmem:[#allocation4 + $0x13] sm:$0xff] }
 0x3c4   : > { %v3836_v35 = vld [vmem:[#allocation4 + $0x4] sm:$0xff]  ;;  %v3837_v37 = vld [vmem:[#allocation4 + $0xc] sm:$0xff]  ;;  %v3838_v34 = vld [vmem:[#allocation4 + $0x14] sm:$0xff] }
 0x3c5   : > { %7927 = vmatmul.mubr.msk.f32.gmra.mrb[8].mxu0 %vm3390_vm5, %v3408_v12  ;;  %v3944_v39 = vld [vmem:[#allocation4 + $0x5] sm:$0xff]  ;;  %v3945_v43 = vld [vmem:[#allocation4 + $0xd] sm:$0xff]  ;;  %v3946_v44 = vld [vmem:[#allocation4 + $0x15] sm:$0xff] }
 0x3c6   : > { %7933 = vmatprep.mubr.msk.f32.mxu0 %vm3390_vm5, %v3512_v11  ;;  %v4052_v47 = vld [vmem:[#allocation4 + $0x6] sm:$0xff]  ;;  %v4053_v51 = vld [vmem:[#allocation4 + $0xe] sm:$0xff]  ;;  %v4054_v55 = vld [vmem:[#allocation4 + $0x16] sm:$0xff] }
 0x3c7   : > { %v4160_v58 = vld [vmem:[#allocation4 + $0x7] sm:$0xff]  ;;  %v4161_v54 = vld [vmem:[#allocation4 + $0xf] sm:$0xff]  ;;  %v4162_v60 = vld [vmem:[#allocation4 + $0x17] sm:$0xff] }
 0x3c8   : > { %v4270_v63 = vld [vmem:[#allocation4 + $0x18] sm:$0xff] }
 0x3c9   : > { %7934 = vmatmul.mubr.msk.f32.vlgmr.msra.gmra.mrb[6].mxu0 %vm3390_vm5, %v10005_v15 }
 0x3ca   : > { %7936 = vmatprep.mubr.msk.f32.mxu0 %vm3390_vm5, %v10009_v17  ;;  %8690 = vmatpush3.bf16.msra.mxu0 %v8687_v9  ;;  %v4530_v9 = vld [vmem:[%s10502_s7 + $0x20] sm:$0xff] }
 0x3cb   : > { %8692 = vmatprep.subr.bf16.mxu0 %v8691_v14 }
 0x3cd   : > { %7937 = vmatmul.mubr.msk.f32.gmra.mrb[8].mxu0 %vm3390_vm5, %v3515_v19 }
 0x3ce   : > { %7943 = vmatprep.mubr.msk.f32.mxu0 %vm3390_vm5, %v3620_v18 }
 0x3d1   : > { %7944 = vmatmul.mubr.msk.f32.vlgmr.msra.gmra.mrb[6].mxu0 %vm3390_vm5, %v3621_v23 }
 0x3d2   : > { %7946 = vmatprep.mubr.msk.f32.mxu0 %vm3390_vm5, %v3622_v24  ;;  %8694 = vmatpush3.bf16.msra.mxu0 %v8691_v14 }
 0x3d3   : > { %8696 = vmatprep.subr.bf16.mxu0 %v8695_v21 }
 0x3d5   : > { %7947 = vmatmul.mubr.msk.f32.gmra.mrb[8].mxu0 %vm3390_vm5, %v3623_v26 }
 0x3d6   : > { %7953 = vmatprep.mubr.msk.f32.mxu0 %vm3390_vm5, %v3728_v28 }
 0x3d9   : > { %7954 = vmatmul.mubr.msk.f32.vlgmr.msra.gmra.mrb[6].mxu0 %vm3390_vm5, %v3729_v30 }
 0x3da   : > { %7956 = vmatprep.mubr.msk.f32.mxu0 %vm3390_vm5, %v3730_v25  ;;  %8698 = vmatpush3.bf16.msra.mxu0 %v8695_v21 }
 0x3db   : > { %8700 = vmatprep.subr.bf16.mxu0 %v8699_v29 }
 0x3dd   : > { %7957 = vmatmul.mubr.msk.f32.gmra.mrb[8].mxu0 %vm3390_vm5, %v3731_v31 }
 0x3de   : > { %7963 = vmatprep.mubr.msk.f32.mxu0 %vm3390_vm5, %v3836_v35 }
 0x3e1   : > { %7964 = vmatmul.mubr.msk.f32.vlgmr.msra.gmra.mrb[6].mxu0 %vm3390_vm5, %v3837_v37 }
 0x3e2   : > { %7966 = vmatprep.mubr.msk.f32.mxu0 %vm3390_vm5, %v3838_v34  ;;  %8702 = vmatpush3.bf16.msra.mxu0 %v8699_v29 }
 0x3e3   : > { %8704 = vmatprep.subr.bf16.mxu0 %v8703_v36 }
 0x3e5   : > { %7967 = vmatmul.mubr.msk.f32.gmra.mrb[8].mxu0 %vm3390_vm5, %v3839_v38 }
 0x3e6   : > { %7973 = vmatprep.mubr.msk.f32.mxu0 %vm3390_vm5, %v3944_v39 }
 0x3e9   : > { %7974 = vmatmul.mubr.msk.f32.vlgmr.msra.gmra.mrb[6].mxu0 %vm3390_vm5, %v3945_v43  ;;  %v8731_v43 = vpack.c.bf16 %v6755_v41, %v6754_v40  ;;  %v6804_v40 = vld [vmem:[%s10502_s7 + $0x158] sm:$0xff] }
 0x3ea   : > { %7976 = vmatprep.mubr.msk.f32.mxu0 %vm3390_vm5, %v3946_v44  ;;  %8706 = vmatpush3.bf16.msra.mxu0 %v8703_v36 }
 0x3eb   : > { %8708 = vmatprep.subr.bf16.mxu0 %v8707_v52 }
 0x3ed   : > { %7977 = vmatmul.mubr.msk.f32.gmra.mrb[8].mxu0 %vm3390_vm5, %v3947_v45  ;;  %v6756_v45 = vld [vmem:[%s10502_s7 + $0x48] sm:$0xff] }
 0x3ee   : > { %7983 = vmatprep.mubr.msk.f32.mxu0 %vm3390_vm5, %v4052_v47  ;;  %v6761_v47 = vld [vmem:[%s10502_s7 + $0x60] sm:$0xff] }
 0x3f1   : > { %7984 = vmatmul.mubr.msk.f32.vlgmr.msra.gmra.mrb[6].mxu0 %vm3390_vm5, %v4053_v51  ;;  %v8735_v51 = vpack.c.bf16 %v6760_v42, %v6759_v46  ;;  %v6809_v46 = vld [vmem:[%s10502_s7 + $0x170] sm:$0xff]  ;;  %v6810_v42 = vld [vmem:[%s10502_s7 + $0x178] sm:$0xff] }
 0x3f2   : > { %7986 = vmatprep.mubr.msk.f32.mxu0 %vm3390_vm5, %v4054_v55  ;;  %8710 = vmatpush3.bf16.msra.mxu0 %v8707_v52 }
 0x3f3   : > { %8712 = vmatprep.subr.bf16.mxu0 %v8711_v49 }
 0x3f5   : > { %7987 = vmatmul.mubr.msk.f32.gmra.mrb[8].mxu0 %vm3390_vm5, %v4055_v56 }
 0x3f6   : > { %7993 = vmatprep.mubr.msk.f32.mxu0 %vm3390_vm5, %v4160_v58  ;;  %v6766_v58 = vld [vmem:[%s10502_s7 + $0x78] sm:$0xff] }
 0x3f9   : > { %7994 = vmatmul.mubr.msk.f32.vlgmr.msra.gmra.mrb[6].mxu0 %vm3390_vm5, %v4161_v54  ;;  %v6768_v54 = vld [vmem:[%s10502_s7 + $0x88] sm:$0xff] }
 0x3fa   : > { %7996 = vmatprep.mubr.msk.f32.mxu0 %vm3390_vm5, %v4162_v60  ;;  %8714 = vmatpush3.bf16.msra.mxu0 %v8711_v49  ;;  %v6762_v49 = vld [vmem:[%s10502_s7 + $0x68] sm:$0xff]  ;;  %v6769_v60 = vld [vmem:[%s10502_s7 + $0x90] sm:$0xff] }
 0x3fb   : > { %8716 = vmatprep.subr.bf16.mxu0 %v8715_v59  ;;  %v8739_v55 = vpack.c.bf16 %v6762_v49, %v6761_v47 }
 0x3fd   : > { %7997 = vmatmul.mubr.msk.f32.gmra.mrb[8].mxu0 %vm3390_vm5, %v4163_v62 }
 0x3fe   : > { %8003 = vmatprep.mubr.msk.f32.mxu0 %vm3390_vm5, %v9989_v10  ;;  %v6752_v10 = vld [vmem:[%s10502_s7 + $0x28] sm:$0xff] }
 0x401   : > { %8004 = vmatmul.mubr.msk.f32.vlgmr.msra.gmra.mrb[6].mxu0 %vm3390_vm5, %v9991_v5  ;;  %v6753_v5 = vld [vmem:[%s10502_s7 + $0x30] sm:$0xff] }
 0x402   : > { %8006 = vmatprep.mubr.msk.f32.mxu0 %vm3390_vm5, %v4270_v63  ;;  %8718 = vmatpush3.bf16.msra.mxu0 %v8715_v59  ;;  %v8727_v11 = vpack.c.bf16 %v6753_v5, %v6752_v10  ;;  %v6767_v59 = vld [vmem:[%s10502_s7 + $0x80] sm:$0xff]  ;;  %v8747_v63 = vpack.c.bf16 %v6769_v60, %v6768_v54 }
 0x403   : > { %8720 = vmatprep.subr.bf16.mxu0 %v8719_v6  ;;  %v8743_v62 = vpack.c.bf16 %v6767_v59, %v6766_v58  ;;  %v6777_v5 = vld [vmem:[%s10502_s7 + $0xc0] sm:$0xff] }
 0x404   : > { %v6817_v58 = vld [vmem:[%s10502_s7 + $0x1a0] sm:$0xff] }
 0x405   : > { %8007 = vmatmul.mubr.msk.f32.gmra.mrb[8].mxu0 %vm3390_vm5, %v4271_v0 }
 0x406   : > { %8013 = vmatprep.mubr.msk.f32.mxu0 %vm3390_vm5, %v10005_v15 }
 0x409   : > { %8014 = vmatmul.mubr.msk.f32.vlgmr.msra.gmra.mrb[6].mxu0 %vm3390_vm5, %v10009_v17 }
 0x40a   : > { %8016 = vmatprep.mubr.msk.f32.mxu0 %vm3390_vm5, %v4378_v1  ;;  %8722 = vmatpush3.bf16.msra.mxu0 %v8719_v6  ;;  %v6775_v6 = vld [vmem:[%s10502_s7 + $0xb0] sm:$0xff] }
 0x40b   : > { %8724 = vmatprep.subr.bf16.mxu0 %v8723_v7 }
 0x40d   : > { %8017 = vmatmul.mubr.msk.f32.gmra.mrb[8].mxu0 %vm3390_vm5, %v4379_v3  ;;  %v6770_v3 = vld [vmem:[%s10502_s7 + $0x98] sm:$0xff] }
 0x40e   : > { %8726 = vmatpush3.bf16.msra.mxu0 %v8723_v7  ;;  %v8755_v7 = vpack.c.bf16 %v6776_v48, %v6775_v6  ;;  %v6826_v48 = vld [vmem:[%s10502_s7 + $0x1d8] sm:$0xff] }
 0x40f   : > { %8027 = vmatprep.subr.mxu0 %v4530_v9 }
 0x412   : > { %8028 = vmatpush3.msra.mxu0 %v4530_v9 }
 0x413   : > { %8728 = vmatprep.subr.bf16.mxu0 %v8727_v11 }
 0x4dc   : > { %v8015_v12 = vpop.f32.mrb[6].mxu0 }
 0x4dd   : > { %v8887_v13 = vadd.f32 %v8015_v12, %v6690_v2  ;;  %v4461_v8 = vpop.f32.mrb[7].mxu0  ;;  %v6782_v12 = vld [vmem:[%s10502_s7 + $0xd8] sm:$0xff] }
 0x4de   : > { %v8888_v14 = vadd.f32 %v6690_v2, %v4461_v8 }
 0x4df   : > { %v4485_v15 = vsub.f32 0.0, %v8887_v13  ;;  %v6783_v13 = vld [vmem:[%s10502_s7 + $0xe0] sm:$0xff] }
 0x4e0   : > { %v4484_v17 = vsub.f32 0.0, %v8888_v14  ;;  %v8018_v18 = vpop.f32.mrb[8].mxu0  ;;  %v8763_v14 = vpack.c.bf16 %v6783_v13, %v6782_v12  ;;  %v6833_v12 = vld [vmem:[%s10502_s7 + $0x200] sm:$0xff]  ;;  %v6836_v13 = vld [vmem:[%s10502_s7 + $0x208] sm:$0xff] }
 0x4e1   : > { %v4490_v19 = vmul.f32 1.442695, %v4485_v15  ;;  %v8889_v20 = vadd.f32 %v8018_v18, %v6690_v2  ;;  %v4471_v16 = vpop.f32.mrb[9].mxu0  ;;  %v6784_v18 = vld [vmem:[%s10502_s7 + $0xe8] sm:$0xff] }
 0x4e2   : > { %v4488_v21 = vmul.f32 1.442695, %v4484_v17  ;;  %v8890_v23 = vadd.f32 %v6690_v2, %v4471_v16  ;;  %v6781_v2 = vld [vmem:[%s10502_s7 + $0xd0] sm:$0xff]  ;;  %v6789_v16 = vld [vmem:[%s10502_s7 + $0x100] sm:$0xff] }
 0x4e3   : > { %9072 = vpow2.f32 %v4490_v19  ;;  %v4487_v24 = vsub.f32 0.0, %v8889_v20  ;;  %v6787_v19 = vld [vmem:[%s10502_s7 + $0xf0] sm:$0xff]  ;;  %v6788_v20 = vld [vmem:[%s10502_s7 + $0xf8] sm:$0xff] }
 0x4e4   : > { %9074 = vpow2.f32 %v4488_v21  ;;  %v4486_v26 = vsub.f32 0.0, %v8890_v23  ;;  %v6790_v21 = vld [vmem:[%s10502_s7 + $0x108] sm:$0xff]  ;;  %v8767_v23 = vpack.c.bf16 %v6788_v20, %v6787_v19 }
 0x4e5   : > { %v4494_v22 = vmul.f32 1.442695, %v4487_v24  ;;  %v8771_v24 = vpack.c.bf16 %v6790_v21, %v6789_v16  ;;  %v6840_v20 = vld [vmem:[%s10502_s7 + $0x228] sm:$0xff]  ;;  %v6843_v16 = vld [vmem:[%s10502_s7 + $0x230] sm:$0xff]  ;;  %v6844_v21 = vld [vmem:[%s10502_s7 + $0x238] sm:$0xff] }
 0x4e6   : > { %v4492_v27 = vmul.f32 1.442695, %v4486_v26 }
 0x4e7   : > { %9076 = vpow2.f32 %v4494_v22 }
 0x4e8   : > { %9078 = vpow2.f32 %v4492_v27  ;;  %v6791_v27 = vld [vmem:[%s10502_s7 + $0x110] sm:$0xff] }
 0x4ed   : > { %v9073_v28 = vpop.eup %9072 }
 0x4ee   : > { %v9075_v29 = vpop.eup %9074  ;;  %v4497_v30 = vadd.f32 1.0, %v9073_v28  ;;  %v6794_v28 = vld [vmem:[%s10502_s7 + $0x118] sm:$0xff] }
 0x4ef   : > { %v4496_v25 = vadd.f32 1.0, %v9075_v29  ;;  %v6795_v29 = vld [vmem:[%s10502_s7 + $0x120] sm:$0xff] }
 0x4f0   : > { %9080 = vrcp.f32 %v4497_v30  ;;  %v6796_v30 = vld [vmem:[%s10502_s7 + $0x128] sm:$0xff] }
 0x4f1   : > { %v9077_v31 = vpop.eup %9076  ;;  %9082 = vrcp.f32 %v4496_v25  ;;  %v6797_v25 = vld [vmem:[%s10502_s7 + $0x130] sm:$0xff] }
 0x4f2   : > { %v9079_v32 = vpop.eup %9078  ;;  %v4499_v33 = vadd.f32 1.0, %v9077_v31  ;;  %v8775_v31 = vpack.c.bf16 %v6795_v29, %v6794_v28  ;;  %v6847_v28 = vld [vmem:[%s10502_s7 + $0x250] sm:$0xff]  ;;  %v6850_v29 = vld [vmem:[%s10502_s7 + $0x258] sm:$0xff] }
 0x4f3   : > { %v4498_v35 = vadd.f32 1.0, %v9079_v32  ;;  %v8779_v32 = vpack.c.bf16 %v6797_v25, %v6796_v30  ;;  %v6851_v30 = vld [vmem:[%s10502_s7 + $0x260] sm:$0xff]  ;;  %v6852_v25 = vld [vmem:[%s10502_s7 + $0x268] sm:$0xff] }
 0x4f4   : > { %9084 = vrcp.f32 %v4499_v33 }
 0x4f5   : > { %9086 = vrcp.f32 %v4498_v35 }
 0x4fa   : > { %v9081_v36 = vpop.eup %9080 }
 0x4fb   : > { %v9083_v37 = vpop.eup %9082  ;;  %4513 = vst.msk [vmem:[#allocation5 + $0xc] sm:$0xff] %vm4511_vm8, %v9081_v36  ;;  %v6798_v36 = vld [vmem:[%s10502_s7 + $0x138] sm:$0xff] }
 0x4fc   : > { %4512 = vst.msk [vmem:[#allocation5 + $0x4] sm:$0xff] %vm4511_vm8, %v9083_v37  ;;  %v6801_v37 = vld [vmem:[%s10502_s7 + $0x140] sm:$0xff] }
 0x4fe   : > { %v9085_v34 = vpop.eup %9084 }
 0x4ff   : > { %v9087_v38 = vpop.eup %9086  ;;  %4516 = vst.msk [vmem:[#allocation5 + $0x1c] sm:$0x7] %vm4515_vm9, %v9085_v34  ;;  %v6802_v34 = vld [vmem:[%s10502_s7 + $0x148] sm:$0xff] }
 0x500   : > { %4514 = vst.msk [vmem:[#allocation5 + $0x14] sm:$0xff] %vm4511_vm8, %v9087_v38  ;;  %v6803_v38 = vld [vmem:[%s10502_s7 + $0x150] sm:$0xff]  ;;  %v8783_v41 = vpack.c.bf16 %v6802_v34, %v6801_v37  ;;  %v6857_v37 = vld [vmem:[%s10502_s7 + $0x280] sm:$0xff]  ;;  %v6858_v34 = vld [vmem:[%s10502_s7 + $0x288] sm:$0xff] }
 0x502   : > { %v10202_v15 = vld [vmem:[#allocation5 + $0xc] sm:$0xff] }
 0x503   : > { %v4524_v39 = vld [vmem:[#allocation5] sm:$0xff]  ;;  %v10121_v52 = vld [vmem:[#allocation5 + $0x8] sm:$0xff] }
 0x504   : > { %8029 = vmatprep.mubr.msk.f32.mxu0 %vm4511_vm8, %v4524_v39  ;;  %v4614_v44 = vld [vmem:[#allocation5 + $0x1] sm:$0xff]  ;;  %v10142_v56 = vld [vmem:[#allocation5 + $0x9] sm:$0xff]  ;;  %v8787_v39 = vpack.c.bf16 %v6804_v40, %v6803_v38  ;;  %v6859_v38 = vld [vmem:[%s10502_s7 + $0x290] sm:$0xff] }
 0x505   : > { %8030 = vmatmul.mubr.msk.f32.vlgmr.msra.gmra.mrb[10].mxu0 %vm4511_vm8, %v10121_v52  ;;  %v4705_v57 = vld [vmem:[#allocation5 + $0x2] sm:$0xff]  ;;  %v10162_v0 = vld [vmem:[#allocation5 + $0xa] sm:$0xff] }
 0x506   : > { %8730 = vmatpush3.bf16.msra.mxu0 %v8727_v11  ;;  %8042 = vmatprep.mubr.msk.f32.mxu0 %vm4511_vm8, %v4614_v44  ;;  %v4796_v1 = vld [vmem:[#allocation5 + $0x3] sm:$0xff]  ;;  %v10182_v9 = vld [vmem:[#allocation5 + $0xb] sm:$0xff] }
 0x507   : > { %8732 = vmatprep.subr.bf16.mxu0 %v8731_v43  ;;  %v4887_v10 = vld [vmem:[#allocation5 + $0x4] sm:$0xff]  ;;  %v6780_v11 = vld [vmem:[%s10502_s7 + $0xc8] sm:$0xff] }
 0x508   : > { %v8759_v8 = vpack.c.bf16 %v6781_v2, %v6780_v11  ;;  %v4978_v17 = vld [vmem:[#allocation5 + $0x5] sm:$0xff]  ;;  %v10222_v26 = vld [vmem:[#allocation5 + $0xd] sm:$0xff] }
 0x509   : > { %v5069_v22 = vld [vmem:[#allocation5 + $0x6] sm:$0xff]  ;;  %v10242_v33 = vld [vmem:[#allocation5 + $0xe] sm:$0xff] }
 0x50a   : > { %8734 = vmatpush3.bf16.msra.mxu0 %v8731_v43  ;;  %v5160_v35 = vld [vmem:[#allocation5 + $0x7] sm:$0xff]  ;;  %v10262_v43 = vld [vmem:[#allocation5 + $0xf] sm:$0xff] }
 0x50b   : > { %8040 = vmatprep.subr.mxu0 %v6756_v45  ;;  %v6805_v44 = vld [vmem:[%s10502_s7 + $0x160] sm:$0xff]  ;;  %v10304_v60 = vld [vmem:[#allocation5 + $0x11] sm:$0xff]  ;;  %v6860_v40 = vld [vmem:[%s10502_s7 + $0x298] sm:$0xff] }
 0x50c   : > { %v10325_v6 = vld [vmem:[#allocation5 + $0x12] sm:$0xff] }
 0x50d   : > { %v10346_v2 = vld [vmem:[#allocation5 + $0x13] sm:$0xff] }
 0x50e   : > { %8041 = vmatpush3.msra.mxu0 %v6756_v45  ;;  %v6808_v45 = vld [vmem:[%s10502_s7 + $0x168] sm:$0xff] }
 0x50f   : > { %8043 = vmatmul.mubr.msk.f32.vlgmr.msra.gmra.mrb[10].mxu0 %vm4511_vm8, %v10142_v56  ;;  %8736 = vmatprep.subr.bf16.mxu0 %v8735_v51  ;;  %v8791_v47 = vpack.c.bf16 %v6809_v46, %v6808_v45  ;;  %v5616_v19 = vld [vmem:[#allocation5 + $0x14] sm:$0xff] }
 0x510   : > { %8738 = vmatpush3.bf16.msra.mxu0 %v8735_v51  ;;  %8055 = vmatprep.mubr.msk.f32.mxu0 %vm4511_vm8, %v4705_v57  ;;  %v10283_v51 = vld [vmem:[#allocation5 + $0x10] sm:$0xff]  ;;  %v6815_v57 = vld [vmem:[%s10502_s7 + $0x190] sm:$0xff] }
 0x511   : > { %8740 = vmatprep.subr.bf16.mxu0 %v8739_v55  ;;  %v6864_v45 = vld [vmem:[%s10502_s7 + $0x2a8] sm:$0xff]  ;;  %v6865_v46 = vld [vmem:[%s10502_s7 + $0x2b0] sm:$0xff] }
 0x514   : > { %8742 = vmatpush3.bf16.msra.mxu0 %v8739_v55  ;;  %v6812_v55 = vld [vmem:[%s10502_s7 + $0x188] sm:$0xff] }
 0x515   : > { %8053 = vmatprep.subr.mxu0 %v6763_v50 }
 0x518   : > { %8054 = vmatpush3.msra.mxu0 %v6763_v50  ;;  %v6816_v50 = vld [vmem:[%s10502_s7 + $0x198] sm:$0xff] }
 0x519   : > { %8056 = vmatmul.mubr.msk.f32.vlgmr.msra.gmra.mrb[10].mxu0 %vm4511_vm8, %v10162_v0  ;;  %8744 = vmatprep.subr.bf16.mxu0 %v8743_v62  ;;  %v8799_v59 = vpack.c.bf16 %v6816_v50, %v6815_v57  ;;  %v6871_v57 = vld [vmem:[%s10502_s7 + $0x2d0] sm:$0xff]  ;;  %v6872_v50 = vld [vmem:[%s10502_s7 + $0x2d8] sm:$0xff] }
 0x51a   : > { %8746 = vmatpush3.bf16.msra.mxu0 %v8743_v62  ;;  %8068 = vmatprep.mubr.msk.f32.mxu0 %vm4511_vm8, %v4796_v1  ;;  %v6819_v62 = vld [vmem:[%s10502_s7 + $0x1b0] sm:$0xff]  ;;  %v6823_v1 = vld [vmem:[%s10502_s7 + $0x1c0] sm:$0xff] }
 0x51b   : > { %8748 = vmatprep.subr.bf16.mxu0 %v8747_v63 }
 0x51e   : > { %8750 = vmatpush3.bf16.msra.mxu0 %v8747_v63  ;;  %v6822_v63 = vld [vmem:[%s10502_s7 + $0x1b8] sm:$0xff] }
 0x51f   : > { %8066 = vmatprep.subr.mxu0 %v6770_v3  ;;  %v8807_v61 = vpack.c.bf16 %v6823_v1, %v6822_v63  ;;  %v6878_v63 = vld [vmem:[%s10502_s7 + $0x2f8] sm:$0xff]  ;;  %v6879_v1 = vld [vmem:[%s10502_s7 + $0x300] sm:$0xff] }
 0x522   : > { %8067 = vmatpush3.msra.mxu0 %v6770_v3  ;;  %v6824_v3 = vld [vmem:[%s10502_s7 + $0x1c8] sm:$0xff] }
 0x523   : > { %8069 = vmatmul.mubr.msk.f32.vlgmr.msra.gmra.mrb[10].mxu0 %vm4511_vm8, %v10182_v9  ;;  %8752 = vmatprep.subr.bf16.mxu0 %v8751_v53 }
 0x524   : > { %8754 = vmatpush3.bf16.msra.mxu0 %v8751_v53  ;;  %8081 = vmatprep.mubr.msk.f32.mxu0 %vm4511_vm8, %v4887_v10  ;;  %v6829_v53 = vld [vmem:[%s10502_s7 + $0x1e0] sm:$0xff]  ;;  %v6831_v10 = vld [vmem:[%s10502_s7 + $0x1f0] sm:$0xff] }
 0x525   : > { %8756 = vmatprep.subr.bf16.mxu0 %v8755_v7 }
 0x528   : > { %8758 = vmatpush3.bf16.msra.mxu0 %v8755_v7  ;;  %v6830_v7 = vld [vmem:[%s10502_s7 + $0x1e8] sm:$0xff] }
 0x529   : > { %8079 = vmatprep.subr.mxu0 %v6777_v5 }
 0x52c   : > { %8080 = vmatpush3.msra.mxu0 %v6777_v5  ;;  %v8815_v5 = vpack.c.bf16 %v6830_v7, %v6829_v53  ;;  %v6253_v53 = vld [vmem:[#allocation5 + $0x1b] sm:$0xff]  ;;  %v6749_v7 = vld [vmem:[%s10503_s8] ss:$0 sm:$0xff] }
 0x52d   : > { %8082 = vmatmul.mubr.msk.f32.vlgmr.msra.gmra.mrb[10].mxu0 %vm4511_vm8, %v10202_v15  ;;  %8760 = vmatprep.subr.bf16.mxu0 %v8759_v8 }
 0x52e   : > { %8762 = vmatpush3.bf16.msra.mxu0 %v8759_v8  ;;  %8094 = vmatprep.mubr.msk.f32.mxu0 %vm4511_vm8, %v4978_v17  ;;  %v6837_v8 = vld [vmem:[%s10502_s7 + $0x210] sm:$0xff] }
 0x52f   : > { %8764 = vmatprep.subr.bf16.mxu0 %v8763_v14  ;;  %v8823_v17 = vpack.c.bf16 %v6837_v8, %v6836_v13 }
 0x532   : > { %8766 = vmatpush3.bf16.msra.mxu0 %v8763_v14  ;;  %v6838_v14 = vld [vmem:[%s10502_s7 + $0x218] sm:$0xff] }
 0x533   : > { %8092 = vmatprep.subr.mxu0 %v6784_v18 }
 0x536   : > { %8093 = vmatpush3.msra.mxu0 %v6784_v18 }
 0x537   : > { %8095 = vmatmul.mubr.msk.f32.vlgmr.msra.gmra.mrb[10].mxu0 %vm4511_vm8, %v10222_v26  ;;  %8768 = vmatprep.subr.bf16.mxu0 %v8767_v23 }
 0x538   : > { %8770 = vmatpush3.bf16.msra.mxu0 %v8767_v23  ;;  %8107 = vmatprep.mubr.msk.f32.mxu0 %vm4511_vm8, %v5069_v22  ;;  %v6845_v23 = vld [vmem:[%s10502_s7 + $0x240] sm:$0xff] }
 0x539   : > { %8772 = vmatprep.subr.bf16.mxu0 %v8771_v24 }
 0x53c   : > { %8774 = vmatpush3.bf16.msra.mxu0 %v8771_v24  ;;  %v6846_v24 = vld [vmem:[%s10502_s7 + $0x248] sm:$0xff] }
 0x53d   : > { %8105 = vmatprep.subr.mxu0 %v6791_v27  ;;  %v8835_v22 = vpack.c.bf16 %v6846_v24, %v6845_v23 }
 0x540   : > { %8106 = vmatpush3.msra.mxu0 %v6791_v27  ;;  %v5707_v27 = vld [vmem:[#allocation5 + $0x15] sm:$0xff] }
 0x541   : > { %8108 = vmatmul.mubr.msk.f32.vlgmr.msra.gmra.mrb[10].mxu0 %vm4511_vm8, %v10242_v33  ;;  %8776 = vmatprep.subr.bf16.mxu0 %v8775_v31 }
 0x542   : > { %8778 = vmatpush3.bf16.msra.mxu0 %v8775_v31  ;;  %8120 = vmatprep.mubr.msk.f32.mxu0 %vm4511_vm8, %v5160_v35  ;;  %v6853_v31 = vld [vmem:[%s10502_s7 + $0x270] sm:$0xff] }
 0x543   : > { %8780 = vmatprep.subr.bf16.mxu0 %v8779_v32  ;;  %v5798_v35 = vld [vmem:[#allocation5 + $0x16] sm:$0xff] }
 0x546   : > { %8782 = vmatpush3.bf16.msra.mxu0 %v8779_v32  ;;  %v8839_v32 = vpack.c.bf16 %v6851_v30, %v6850_v29 }
 0x547   : > { %8118 = vmatprep.subr.mxu0 %v6798_v36 }
 0x54a   : > { %8119 = vmatpush3.msra.mxu0 %v6798_v36  ;;  %v6854_v36 = vld [vmem:[%s10502_s7 + $0x278] sm:$0xff] }
 0x54b   : > { %8121 = vmatmul.mubr.msk.f32.vlgmr.msra.gmra.mrb[10].mxu0 %vm4511_vm8, %v10262_v43  ;;  %8784 = vmatprep.subr.bf16.mxu0 %v8783_v41 }
 0x54c   : > { %8786 = vmatpush3.bf16.msra.mxu0 %v8783_v41  ;;  %8133 = vmatprep.mubr.msk.f32.mxu0 %vm4511_vm8, %v10121_v52  ;;  %v6811_v52 = vld [vmem:[%s10502_s7 + $0x180] sm:$0xff]  ;;  %v8847_v41 = vpack.c.bf16 %v6858_v34, %v6857_v37 }
 0x54d   : > { %8788 = vmatprep.subr.bf16.mxu0 %v8787_v39  ;;  %v8795_v49 = vpack.c.bf16 %v6811_v52, %v6810_v42  ;;  %v6866_v42 = vld [vmem:[%s10502_s7 + $0x2b8] sm:$0xff]  ;;  %v6867_v52 = vld [vmem:[%s10502_s7 + $0x2c0] sm:$0xff] }
 0x550   : > { %8790 = vmatpush3.bf16.msra.mxu0 %v8787_v39  ;;  %v8851_v39 = vpack.c.bf16 %v6860_v40, %v6859_v38 }
 0x551   : > { %8131 = vmatprep.subr.mxu0 %v6805_v44 }
 0x554   : > { %8132 = vmatpush3.msra.mxu0 %v6805_v44  ;;  %v6861_v44 = vld [vmem:[%s10502_s7 + $0x2a0] sm:$0xff] }
 0x555   : > { %8134 = vmatmul.mubr.msk.f32.vlgmr.msra.gmra.mrb[10].mxu0 %vm4511_vm8, %v10283_v51  ;;  %8792 = vmatprep.subr.bf16.mxu0 %v8791_v47 }
 0x556   : > { %8794 = vmatpush3.bf16.msra.mxu0 %v8791_v47  ;;  %8146 = vmatprep.mubr.msk.f32.mxu0 %vm4511_vm8, %v10142_v56  ;;  %v6818_v56 = vld [vmem:[%s10502_s7 + $0x1a8] sm:$0xff]  ;;  %v8855_v47 = vpack.c.bf16 %v6865_v46, %v6864_v45 }
 0x557   : > { %8796 = vmatprep.subr.bf16.mxu0 %v8795_v49  ;;  %v8803_v54 = vpack.c.bf16 %v6818_v56, %v6817_v58  ;;  %v6873_v58 = vld [vmem:[%s10502_s7 + $0x2e0] sm:$0xff]  ;;  %v6874_v56 = vld [vmem:[%s10502_s7 + $0x2e8] sm:$0xff] }
 0x55a   : > { %8798 = vmatpush3.bf16.msra.mxu0 %v8795_v49  ;;  %v8859_v49 = vpack.c.bf16 %v6867_v52, %v6866_v42 }
 0x55b   : > { %8144 = vmatprep.subr.mxu0 %v6812_v55 }
 0x55e   : > { %8145 = vmatpush3.msra.mxu0 %v6812_v55  ;;  %v6868_v55 = vld [vmem:[%s10502_s7 + $0x2c8] sm:$0xff] }
 0x55f   : > { %8147 = vmatmul.mubr.msk.f32.vlgmr.msra.gmra.mrb[10].mxu0 %vm4511_vm8, %v10304_v60  ;;  %8800 = vmatprep.subr.bf16.mxu0 %v8799_v59 }
 0x560   : > { %8802 = vmatpush3.bf16.msra.mxu0 %v8799_v59  ;;  %8159 = vmatprep.mubr.msk.f32.mxu0 %vm4511_vm8, %v10162_v0  ;;  %v6825_v0 = vld [vmem:[%s10502_s7 + $0x1d0] sm:$0xff]  ;;  %v8863_v59 = vpack.c.bf16 %v6872_v50, %v6871_v57 }
 0x561   : > { %8804 = vmatprep.subr.bf16.mxu0 %v8803_v54  ;;  %v8811_v4 = vpack.c.bf16 %v6825_v0, %v6824_v3  ;;  %v6880_v3 = vld [vmem:[%s10502_s7 + $0x308] sm:$0xff]  ;;  %v6881_v0 = vld [vmem:[%s10502_s7 + $0x310] sm:$0xff] }
 0x564   : > { %8806 = vmatpush3.bf16.msra.mxu0 %v8803_v54  ;;  %v8867_v54 = vpack.c.bf16 %v6874_v56, %v6873_v58 }
 0x565   : > { %8157 = vmatprep.subr.mxu0 %v6819_v62 }
 0x568   : > { %8158 = vmatpush3.msra.mxu0 %v6819_v62  ;;  %v6875_v62 = vld [vmem:[%s10502_s7 + $0x2f0] sm:$0xff] }
 0x569   : > { %8160 = vmatmul.mubr.msk.f32.vlgmr.msra.gmra.mrb[10].mxu0 %vm4511_vm8, %v10325_v6  ;;  %8808 = vmatprep.subr.bf16.mxu0 %v8807_v61 }
 0x56a   : > { %8810 = vmatpush3.bf16.msra.mxu0 %v8807_v61  ;;  %8172 = vmatprep.mubr.msk.f32.mxu0 %vm4511_vm8, %v10182_v9  ;;  %v6832_v9 = vld [vmem:[%s10502_s7 + $0x1f8] sm:$0xff]  ;;  %v8871_v61 = vpack.c.bf16 %v6879_v1, %v6878_v63 }
 0x56b   : > { %8812 = vmatprep.subr.bf16.mxu0 %v8811_v4  ;;  %v8819_v11 = vpack.c.bf16 %v6832_v9, %v6831_v10 }
 0x56e   : > { %8814 = vmatpush3.bf16.msra.mxu0 %v8811_v4  ;;  %v8875_v4 = vpack.c.bf16 %v6881_v0, %v6880_v3 }
 0x56f   : > { %8170 = vmatprep.subr.mxu0 %v6826_v48 }
 0x572   : > { %8171 = vmatpush3.msra.mxu0 %v6826_v48  ;;  %v6882_v48 = vld [vmem:[%s10502_s7 + $0x318] sm:$0xff] }
 0x573   : > { %8173 = vmatmul.mubr.msk.f32.vlgmr.msra.gmra.mrb[10].mxu0 %vm4511_vm8, %v10346_v2  ;;  %8816 = vmatprep.subr.bf16.mxu0 %v8815_v5 }
 0x574   : > { %8818 = vmatpush3.bf16.msra.mxu0 %v8815_v5  ;;  %8185 = vmatprep.mubr.msk.f32.mxu0 %vm4511_vm8, %v10202_v15  ;;  %v6839_v15 = vld [vmem:[%s10502_s7 + $0x220] sm:$0xff] }
 0x575   : > { %8820 = vmatprep.subr.bf16.mxu0 %v8819_v11  ;;  %v8827_v18 = vpack.c.bf16 %v6839_v15, %v6838_v14 }
 0x578   : > { %8822 = vmatpush3.bf16.msra.mxu0 %v8819_v11 }
 0x579   : > { %8183 = vmatprep.subr.mxu0 %v6833_v12 }
 0x57c   : > { %8184 = vmatpush3.msra.mxu0 %v6833_v12 }
 0x57d   : > { %8186 = vmatmul.mubr.msk.f32.vlgmr.msra.gmra.mrb[10].mxu0 %vm4511_vm8, %v5616_v19  ;;  %8824 = vmatprep.subr.bf16.mxu0 %v8823_v17 }
 0x57e   : > { %8826 = vmatpush3.bf16.msra.mxu0 %v8823_v17  ;;  %8198 = vmatprep.mubr.msk.f32.mxu0 %vm4511_vm8, %v10222_v26  ;;  %v8831_v26 = vpack.c.bf16 %v6844_v21, %v6843_v16 }
 0x57f   : > { %8828 = vmatprep.subr.bf16.mxu0 %v8827_v18 }
 0x582   : > { %8830 = vmatpush3.bf16.msra.mxu0 %v8827_v18 }
 0x583   : > { %8196 = vmatprep.subr.mxu0 %v6840_v20 }
 0x586   : > { %8197 = vmatpush3.msra.mxu0 %v6840_v20 }
 0x587   : > { %8199 = vmatmul.mubr.msk.f32.vlgmr.msra.gmra.mrb[10].mxu0 %vm4511_vm8, %v5707_v27  ;;  %8832 = vmatprep.subr.bf16.mxu0 %v8831_v26 }
 0x588   : > { %8834 = vmatpush3.bf16.msra.mxu0 %v8831_v26  ;;  %8211 = vmatprep.mubr.msk.f32.mxu0 %vm4511_vm8, %v10242_v33  ;;  %v8843_v33 = vpack.c.bf16 %v6853_v31, %v6852_v25 }
 0x589   : > { %8836 = vmatprep.subr.bf16.mxu0 %v8835_v22 }
 0x58c   : > { %8838 = vmatpush3.bf16.msra.mxu0 %v8835_v22 }
 0x58d   : > { %8209 = vmatprep.subr.mxu0 %v6847_v28 }
 0x590   : > { %8210 = vmatpush3.msra.mxu0 %v6847_v28 }
 0x591   : > { %8212 = vmatmul.mubr.msk.f32.vlgmr.msra.gmra.mrb[10].mxu0 %vm4511_vm8, %v5798_v35  ;;  %8840 = vmatprep.subr.bf16.mxu0 %v8839_v32 }
 0x592   : > { %8842 = vmatpush3.bf16.msra.mxu0 %v8839_v32  ;;  %8224 = vmatprep.mubr.msk.f32.mxu0 %vm4511_vm8, %v10262_v43  ;;  %v5889_v43 = vld [vmem:[#allocation5 + $0x17] sm:$0xff] }
 0x593   : > { %8844 = vmatprep.subr.bf16.mxu0 %v8843_v33 }
 0x596   : > { %8846 = vmatpush3.bf16.msra.mxu0 %v8843_v33 }
 0x597   : > { %8222 = vmatprep.subr.mxu0 %v6854_v36 }
 0x59a   : > { %8223 = vmatpush3.msra.mxu0 %v6854_v36 }
 0x59b   : > { %8225 = vmatmul.mubr.msk.f32.vlgmr.msra.gmra.mrb[10].mxu0 %vm4511_vm8, %v5889_v43  ;;  %8848 = vmatprep.subr.bf16.mxu0 %v8847_v41 }
 0x59c   : > { %8850 = vmatpush3.bf16.msra.mxu0 %v8847_v41  ;;  %8237 = vmatprep.mubr.msk.f32.mxu0 %vm4511_vm8, %v10283_v51  ;;  %v5980_v51 = vld [vmem:[#allocation5 + $0x18] sm:$0xff] }
 0x59d   : > { %8852 = vmatprep.subr.bf16.mxu0 %v8851_v39 }
 0x5a0   : > { %8854 = vmatpush3.bf16.msra.mxu0 %v8851_v39 }
 0x5a1   : > { %8235 = vmatprep.subr.mxu0 %v6861_v44 }
 0x5a4   : > { %8236 = vmatpush3.msra.mxu0 %v6861_v44 }
 0x5a5   : > { %8238 = vmatmul.mubr.msk.f32.vlgmr.msra.gmra.mrb[10].mxu0 %vm4511_vm8, %v5980_v51  ;;  %8856 = vmatprep.subr.bf16.mxu0 %v8855_v47 }
 0x5a6   : > { %8858 = vmatpush3.bf16.msra.mxu0 %v8855_v47  ;;  %8250 = vmatprep.mubr.msk.f32.mxu0 %vm4511_vm8, %v10304_v60  ;;  %v6071_v60 = vld [vmem:[#allocation5 + $0x19] sm:$0xff] }
 0x5a7   : > { %8860 = vmatprep.subr.bf16.mxu0 %v8859_v49 }
 0x5aa   : > { %8862 = vmatpush3.bf16.msra.mxu0 %v8859_v49 }
 0x5ab   : > { %8248 = vmatprep.subr.mxu0 %v6868_v55 }
 0x5ae   : > { %8249 = vmatpush3.msra.mxu0 %v6868_v55 }
 0x5af   : > { %8251 = vmatmul.mubr.msk.f32.vlgmr.msra.gmra.mrb[10].mxu0 %vm4511_vm8, %v6071_v60  ;;  %8864 = vmatprep.subr.bf16.mxu0 %v8863_v59 }
 0x5b0   : > { %8866 = vmatpush3.bf16.msra.mxu0 %v8863_v59  ;;  %8263 = vmatprep.mubr.msk.f32.mxu0 %vm4511_vm8, %v10325_v6  ;;  %v6162_v6 = vld [vmem:[#allocation5 + $0x1a] sm:$0xff] }
 0x5b1   : > { %8868 = vmatprep.subr.bf16.mxu0 %v8867_v54 }
 0x5b4   : > { %8870 = vmatpush3.bf16.msra.mxu0 %v8867_v54 }
 0x5b5   : > { %8261 = vmatprep.subr.mxu0 %v6875_v62 }
 0x5b8   : > { %8262 = vmatpush3.msra.mxu0 %v6875_v62 }
 0x5b9   : > { %8264 = vmatmul.mubr.msk.f32.vlgmr.msra.gmra.mrb[10].mxu0 %vm4511_vm8, %v6162_v6  ;;  %8872 = vmatprep.subr.bf16.mxu0 %v8871_v61 }
 0x5ba   : > { %8874 = vmatpush3.bf16.msra.mxu0 %v8871_v61  ;;  %8276 = vmatprep.mubr.msk.f32.mxu0 %vm4511_vm8, %v10346_v2 }
 0x5bb   : > { %8876 = vmatprep.subr.bf16.mxu0 %v8875_v4 }
 0x5be   : > { %8878 = vmatpush3.bf16.msra.mxu0 %v8875_v4 }
 0x5bf   : > { %8274 = vmatprep.subr.mxu0 %v6882_v48 }
 0x5c2   : > { %8275 = vmatpush3.msra.mxu0 %v6882_v48 }
 0x5c3   : > { %8277 = vmatmul.mubr.msk.f32.vlgmr.msra.gmra.mrb[10].mxu0 %vm4511_vm8, %v6253_v53 }
 0x696   : > { %v8278_v10 = vpop.f32.mrb[10].mxu0 }
 0x697   : > { %v8891_v9 = vadd.f32 %v8278_v10, %v6749_v7  ;;  %v6332_v5 = vpop.f32.mrb[11].mxu0 }
 0x698   : > { %v8892_v11 = vadd.f32 %v6749_v7, %v6332_v5 }
 0x699   : > { %6344 = vst.msk [vmem:[%s332_s19 + $0x8] sm:$0xff] %vm333_vm0, %v8891_v9 }
 0x69a   : > { %6343 = vst.msk [vmem:[%s332_s19] sm:$0xff] %vm333_vm0, %v8892_v11 }
 0x69b PF: > { %s19_s30 = sadd.s32 1, %s9094_s30  }
 0x69c   : > { %p16_p4 = scmp.ge.s32.totalorder %s19_s30, 4  }
 0x69e   :  { %18 = sbr.rel (!%p16_p4) target bundleno = 1 (0x1), region = 142 }

</bundles_post_ra>
